<compile_context>
chip_gen: v6e
topology: v6e:2x2x1
jax: 0.10.0
libtpu: 0.0.40
codegen_flags: <defaults>
</compile_context>

<pallas_src>
import functools

import jax
import jax.numpy as jnp
from jax import lax
from jax.experimental import pallas as pl
from jax.experimental.pallas import tpu as pltpu

LANE = 128          # f32 lane count
SUBLANE_BF16 = 16   # sublane granule for bf16-packed activations


def _round_up(n, m):
    return ((n + m - 1) // m) * m


# ----------------------------------------------------------------------------
# Fused kernel: stacked LSTM over (batch block, time chunk) + head at the end
# ----------------------------------------------------------------------------
def _make_kernel(num_layers, time_chunk, bblk, hp):
    """Build the fused RearLSTM kernel for static (num_layers, Tc, Bblk, Hp)."""

    def kernel(*refs):
        n_w = 3 * num_layers
        x_ref = refs[0]                                  # (Tc*Bblk, Din)  rows = (t, b)
        layer_w = refs[1:1 + n_w]                        # per layer: wih_t, whh_t, b
        (xs_ref, wsta_ref, bsta_ref,
         wfch_ref, wfcr_ref, bfc_ref) = refs[1 + n_w:7 + n_w]
        out_ref = refs[7 + n_w]                          # (Bblk, O)
        gx_scr = refs[8 + n_w]                           # (Tc*Bblk, 4*Hp) f32
        seq_scr = refs[9 + n_w]                          # (Tc*Bblk, Hp) bf16 inter-layer
        hc_refs = refs[10 + n_w:]                        # h0, c0, h1, c1, ...

        chunk = pl.program_id(1)

        @pl.when(chunk == 0)
        def _init_carries():
            for r in hc_refs:
                r[...] = jnp.zeros_like(r)

        # Layer-0 input: this chunk's x rows; bf16 for the MXU (f32 accum).
        inp = x_ref[...].astype(jnp.bfloat16)
        for l in range(num_layers):
            wih_ref, whh_ref, b_ref = layer_w[3 * l:3 * l + 3]
            h_ref, c_ref = hc_refs[2 * l], hc_refs[2 * l + 1]
            last_layer = (l == num_layers - 1)

            # Hoisted input projection + folded bias for the whole chunk, into
            # dedicated VMEM scratch (bounds vreg pressure at production sizes).
            gx_scr[...] = (
                jnp.dot(inp, wih_ref[...], preferred_element_type=jnp.float32)
                + b_ref[...])

            whh = whh_ref[...]                           # bf16 (Hp, 4*Hp), VMEM-resident

            def step(t, carry, whh=whh, last=last_layer):
                h, c = carry
                row = pl.multiple_of(t * bblk, bblk)
                g = gx_scr[pl.ds(row, bblk), :] + jnp.dot(
                    h.astype(jnp.bfloat16), whh,
                    preferred_element_type=jnp.float32)
                # PyTorch gate order i, f, g, o; o computed after the c update
                # so all four (Bblk, Hp) gate tensors are never live at once.
                i_g = jax.nn.sigmoid(g[:, 0 * hp:1 * hp])
                f_g = jax.nn.sigmoid(g[:, 1 * hp:2 * hp])
                g_g = jnp.tanh(g[:, 2 * hp:3 * hp])
                c = f_g * c + i_g * g_g
                o_g = jax.nn.sigmoid(g[:, 3 * hp:4 * hp])
                h = o_g * jnp.tanh(c)
                if not last:
                    # Feed the next layer through VMEM only (never HBM).
                    seq_scr[pl.ds(row, bblk), :] = h.astype(seq_scr.dtype)
                return h, c

            h, c = lax.fori_loop(0, time_chunk, step,
                                 (h_ref[...], c_ref[...]), unroll=True)
            h_ref[...] = h
            c_ref[...] = c
            if not last_layer:
                inp = seq_scr[...]

        # Fused head on the last chunk of this batch block; only (Bblk, O)
        # is ever written back to HBM (f32 path).
        @pl.when(chunk == pl.num_programs(1) - 1)
        def _head():
            h_last = hc_refs[2 * (num_layers - 1)][...]          # (Bblk, Hp) f32
            rear = (jnp.dot(xs_ref[...], wsta_ref[...],
                            preferred_element_type=jnp.float32) + bsta_ref[...])
            # concat([h_last, rear]) @ W_fc expressed as a split matmul.
            z = (jnp.dot(h_last, wfch_ref[...], preferred_element_type=jnp.float32)
                 + jnp.dot(rear, wfcr_ref[...], preferred_element_type=jnp.float32)
                 + bfc_ref[...])
            out_ref[...] = jnp.maximum(z, 0.0)

    return kernel


# ----------------------------------------------------------------------------
# Wrapper
# ----------------------------------------------------------------------------
def _auto_time_chunk(T, bblk, din, hp):
    # Bytes per (t, b) row: x block (double-buffered f32) + gx (f32) + seq (bf16).
    per_row = din * 4 * 2 + 4 * hp * 4 + hp * 2
    budget = 8 << 20
    tc = max(1, min(T, budget // max(per_row * bblk, 1)))
    while T % tc:                       # snap to a divisor of T
        tc -= 1
    return tc


def _vmem_budget(weight_args, head_w, tc, bblk, din, dsta, hp, out_dim, nl):
    w_bytes = sum(int(a.size) * a.dtype.itemsize for a in weight_args)   # 1 buffer each
    w_bytes += sum(int(a.size) * a.dtype.itemsize for a in head_w)
    x_blk = tc * bblk * din * 4 * 2          # double-buffered x block
    xs_blk = bblk * dsta * 4 * 2
    out_blk = bblk * out_dim * 4 * 2
    scratch = (tc * bblk * 4 * hp * 4        # gx (f32)
               + tc * bblk * hp * 2          # inter-layer seq (bf16)
               + 2 * nl * bblk * hp * 4)     # h/c carries (f32)
    need = w_bytes + x_blk + xs_blk + out_blk + scratch
    # Never below the 32 MiB default scoped limit; cap at 64 MiB so a
    # v6e-tuned config still fits v7x's physical VMEM.
    return int(min(max(int(need * 1.5) + (4 << 20), 32 << 20), 64 << 20))


def rear_lstm_forward(kp, x_s, x_d, *, time_chunk=None, batch_block=None):
    """Forward pass equivalent to RearLSTM.forward (eval mode)."""
    B, T, din = x_d.shape
    dsta = x_s.shape[-1]
    hp = kp["Hp"]
    num_layers = len(kp["layers"])
    out_dim = kp["bfc"].shape[-1]

    # Batch blocking: leading "parallel" grid axis (v7x megacore) and
    # per-block VMEM scratch sizing.  bf16 activations -> 16-row granule.
    if batch_block is None:
        bblk = _round_up(B, SUBLANE_BF16)
    else:
        bblk = _round_up(min(batch_block, _round_up(B, SUBLANE_BF16)),
                         SUBLANE_BF16)
    b_pad = _round_up(B, bblk)
    n_b = b_pad // bblk

    if time_chunk is None:
        tc = _auto_time_chunk(T, bblk, din, hp)
    else:
        tc = min(time_chunk, T)
        assert T % tc == 0, "sequence length must be a multiple of the time chunk"
    n_chunks = T // tc

    # Pad batch only (D_dyn stays at its true width: block last dim == full
    # array dim is legal and the MXU pads K internally).  Time-major within
    # each batch block, (t, b) flattened into rows.
    xd = jnp.zeros((b_pad, T, din), jnp.float32).at[:B].set(x_d)
    xd = xd.reshape(n_b, bblk, T, din).transpose(0, 2, 1, 3)
    xd = xd.reshape(n_b, T * bblk, din)
    xs = jnp.zeros((b_pad, dsta), jnp.float32).at[:B].set(x_s)
    xs = xs.reshape(n_b, bblk, dsta)

    def _const2d(w):
        # Grid-invariant block: never re-DMA'd (constant index_map) and
        # single-buffered to halve its VMEM footprint.
        return pl.BlockSpec(w.shape, lambda b, c: (0, 0),
                            pipeline_mode=pl.Buffered(buffer_count=1))

    weight_args, weight_specs = [], []
    for lp in kp["layers"]:
        for name in ("wih_t", "whh_t", "b"):
            weight_args.append(lp[name])
            weight_specs.append(_const2d(lp[name]))
    head_w = [kp["wsta_t"], kp["bsta"], kp["wfc_h_t"], kp["wfc_r_t"], kp["bfc"]]
    head_specs = ([pl.BlockSpec((None, bblk, dsta), lambda b, c: (b, 0, 0))]
                  + [_const2d(w) for w in head_w])

    in_specs = ([pl.BlockSpec((None, tc * bblk, din), lambda b, c: (b, c, 0))]
                + weight_specs + head_specs)
    out_specs = pl.BlockSpec((None, bblk, out_dim), lambda b, c: (b, 0, 0))
    scratch_shapes = (
        [pltpu.VMEM((tc * bblk, 4 * hp), jnp.float32),          # gx buffer
         pltpu.VMEM((tc * bblk, hp), jnp.bfloat16)]             # inter-layer chunk buffer
        + [pltpu.VMEM((bblk, hp), jnp.float32)] * (2 * num_layers))  # h/c carries

    vmem_limit = _vmem_budget(weight_args, head_w, tc, bblk, din, dsta, hp,
                              out_dim, num_layers)

    kernel = _make_kernel(num_layers, tc, bblk, hp)
    out = pl.pallas_call(
        kernel,
        out_shape=jax.ShapeDtypeStruct((n_b, bblk, out_dim), jnp.float32),
        grid=(n_b, n_chunks),
        in_specs=in_specs,
        out_specs=out_specs,
        scratch_shapes=scratch_shapes,
        compiler_params=pltpu.CompilerParams(
            # Batch blocks are independent (megacore); time chunks carry h/c.
            dimension_semantics=("parallel", "arbitrary"),
            vmem_limit_bytes=vmem_limit),
    )(xd, *weight_args, xs, *head_w)
    return out.reshape(b_pad, out_dim)[:B]


# ----------------------------------------------------------------------------
# Parameters: raw (torch-like) + padded kernel layout
# ----------------------------------------------------------------------------
def make_raw_params(key, input_size_sta, input_size_dyn, hidden_size,
                    output_size, num_layers, rear_size):
    def uniform(k, shape, bound):
        return jax.random.uniform(k, shape, jnp.float32, -bound, bound)

    keys = jax.random.split(key, 4 * num_layers + 4)
    kb = 1.0 / float(hidden_size) ** 0.5
    layers = []
    for l in range(num_layers):
        din = input_size_dyn if l == 0 else hidden_size
        layers.append(dict(
            wih=uniform(keys[4 * l + 0], (4 * hidden_size, din), kb),
            whh=uniform(keys[4 * l + 1], (4 * hidden_size, hidden_size), kb),
            bih=uniform(keys[4 * l + 2], (4 * hidden_size,), kb),
            bhh=uniform(keys[4 * l + 3], (4 * hidden_size,), kb),
        ))
    ko = keys[4 * num_layers:]
    k_sta = 1.0 / float(input_size_sta) ** 0.5
    k_fc = 1.0 / float(hidden_size + rear_size) ** 0.5
    return dict(
        lstm=layers,
        w_sta=uniform(ko[0], (rear_size, input_size_sta), k_sta),
        b_sta=uniform(ko[1], (rear_size,), k_sta),
        w_fc=uniform(ko[2], (output_size, hidden_size + rear_size), k_fc),
        b_fc=uniform(ko[3], (output_size,), k_fc),
        hidden_size=hidden_size,
    )


def _pad_rows(w, rows_p):
    if w.shape[0] == rows_p:
        return w
    return jnp.zeros((rows_p,) + w.shape[1:], w.dtype).at[:w.shape[0]].set(w)


def _pad_gate_cols(w, h, hp):
    """(.., 4H) -> (.., 4Hp): gate g occupies lane-aligned cols [g*Hp, g*Hp+H)."""
    if h == hp:
        return w
    out = jnp.zeros(w.shape[:-1] + (4 * hp,), w.dtype)
    for g in range(4):
        out = out.at[..., g * hp:g * hp + h].set(w[..., g * h:(g + 1) * h])
    return out


def prepare_kernel_params(raw):
    h = raw["hidden_size"]
    hp = _round_up(h, LANE)
    layers = []
    for li, lp in enumerate(raw["lstm"]):
        wih_t = lp["wih"].T                       # (Din, 4H)
        whh_t = lp["whh"].T                       # (H, 4H)
        b = (lp["bih"] + lp["bhh"])[None, :]      # (1, 4H), biases folded
        # Layer 0: keep the true D_dyn (no K padding); layers > 0 consume the
        # lane-padded hidden state, so pad rows to Hp (padded rows are zero).
        rows_ih = wih_t.shape[0] if li == 0 else hp
        layers.append(dict(
            # bf16 weights for the MXU; padded weights/biases stay exactly
            # zero in bf16, so padded h/c columns remain exactly zero.
            wih_t=_pad_gate_cols(_pad_rows(wih_t, rows_ih), h, hp).astype(jnp.bfloat16),
            whh_t=_pad_gate_cols(_pad_rows(whh_t, hp), h, hp).astype(jnp.bfloat16),
            b=_pad_gate_cols(b, h, hp),                          # f32 (1, 4Hp)
        ))
    return dict(
        layers=layers,
        wsta_t=raw["w_sta"].T,                            # (D_sta, R)  f32 head
        bsta=raw["b_sta"][None, :],                       # (1, R)
        wfc_h_t=_pad_rows(raw["w_fc"][:, :h].T, hp),      # (Hp, O) fc split: h part
        wfc_r_t=raw["w_fc"][:, h:].T,                     # (R, O)  fc split: rear part
        bfc=raw["b_fc"][None, :],                         # (1, O)
        H=h, Hp=hp,
    )


# ----------------------------------------------------------------------------
# Pure-JAX references (unpadded math)
# ----------------------------------------------------------------------------
def _lstm_scan(raw, x_d, cast_bf16):
    h_size = raw["hidden_size"]
    out = x_d
    for lp in raw["lstm"]:
        wih_t, whh_t = lp["wih"].T, lp["whh"].T
        if cast_bf16:
            wih_t, whh_t = wih_t.astype(jnp.bfloat16), whh_t.astype(jnp.bfloat16)
        b = lp["bih"] + lp["bhh"]
        batch = out.shape[0]

        def step(carry, x_t, wih_t=wih_t, whh_t=whh_t, b=b):
            h, c = carry
            if cast_bf16:
                gates = (jnp.dot(x_t.astype(jnp.bfloat16), wih_t,
                                 preferred_element_type=jnp.float32)
                         + jnp.dot(h.astype(jnp.bfloat16), whh_t,
                                   preferred_element_type=jnp.float32) + b)
            else:
                gates = x_t @ wih_t + h @ whh_t + b
            i_g = jax.nn.sigmoid(gates[:, 0 * h_size:1 * h_size])
            f_g = jax.nn.sigmoid(gates[:, 1 * h_size:2 * h_size])
            g_g = jnp.tanh(gates[:, 2 * h_size:3 * h_size])
            o_g = jax.nn.sigmoid(gates[:, 3 * h_size:4 * h_size])
            c_new = f_g * c + i_g * g_g
            h_new = o_g * jnp.tanh(c_new)
            return (h_new, c_new), h_new

        init = (jnp.zeros((batch, h_size), jnp.float32),
                jnp.zeros((batch, h_size), jnp.float32))
        _, hs = lax.scan(step, init, jnp.swapaxes(out, 0, 1))
        out = jnp.swapaxes(hs, 0, 1)
    return out


def _head_ref(raw, x_s, h_last):
    rear = x_s @ raw["w_sta"].T + raw["b_sta"]
    z = jnp.concatenate([h_last, rear], axis=-1) @ raw["w_fc"].T + raw["b_fc"]
    return jnp.maximum(z, 0.0)


def rear_lstm_reference(raw, x_s, x_d):
    """Exact f32 reference (matches the PyTorch module in eval mode)."""
    return _head_ref(raw, x_s, _lstm_scan(raw, x_d, cast_bf16=False)[:, -1, :])


def rear_lstm_reference_bf16(raw, x_s, x_d):
    """Reference matching the kernel's numerics: bf16 matmul operands with f32
    accumulation; gates / state / head in f32."""
    return _head_ref(raw, x_s, _lstm_scan(raw, x_d, cast_bf16=True)[:, -1, :])


# ----------------------------------------------------------------------------
if __name__ == "__main__":
    input_size_dyn = 10
    input_size_sta = 5
    hidden_size = 32
    rear_size = 16
    output_size = 3
    num_layers = 2
    T = 8

    key = jax.random.PRNGKey(0)
    k_p, k_xs, k_xd, k_xs2, k_xd2 = jax.random.split(key, 5)

    raw = make_raw_params(k_p, input_size_sta, input_size_dyn, hidden_size,
                          output_size, num_layers, rear_size)
    kp = prepare_kernel_params(raw)

    # --- config 1: small batch, auto-selected single time chunk -------------
    B = 2
    x_s = jax.random.normal(k_xs, (B, input_size_sta), jnp.float32)
    x_d = jax.random.normal(k_xd, (B, T, input_size_dyn), jnp.float32)
    fwd = jax.jit(functools.partial(rear_lstm_forward, kp))
    out = jax.block_until_ready(fwd(x_s, x_d))
    assert out.shape == (B, output_size), out.shape
    with jax.default_matmul_precision("highest"):
        ref_q = rear_lstm_reference_bf16(raw, x_s, x_d)
        ref_f = rear_lstm_reference(raw, x_s, x_d)
    assert jnp.allclose(out, ref_q, rtol=1e-2, atol=5e-3), (out, ref_q)
    assert jnp.allclose(out, ref_f, rtol=5e-2, atol=5e-2), (out, ref_f)

    # --- config 2: multiple time chunks + multiple batch blocks -------------
    # (exercises the carried h/c state across sequential chunks and the
    #  batch-parallel leading grid axis.)
    B2 = 20
    x_s2 = jax.random.normal(k_xs2, (B2, input_size_sta), jnp.float32)
    x_d2 = jax.random.normal(k_xd2, (B2, T, input_size_dyn), jnp.float32)
    fwd2 = jax.jit(functools.partial(rear_lstm_forward, kp,
                                     time_chunk=4, batch_block=16))
    out2 = jax.block_until_ready(fwd2(x_s2, x_d2))
    assert out2.shape == (B2, output_size), out2.shape
    with jax.default_matmul_precision("highest"):
        ref_q2 = rear_lstm_reference_bf16(raw, x_s2, x_d2)
        ref_f2 = rear_lstm_reference(raw, x_s2, x_d2)
    assert jnp.allclose(out2, ref_q2, rtol=1e-2, atol=5e-3), (out2, ref_q2)
    assert jnp.allclose(out2, ref_f2, rtol=5e-2, atol=5e-2), (out2, ref_f2)

    print("KERNEL_OK")
</pallas_src>

<mosaic_0001>
module attributes {stable_mosaic.version = 11 : i64} {
  func.func @kernel(%arg0: i32, %arg1: i32, %arg2: memref<1x128x10xf32, #tpu.memory_space<vmem>>, %arg3: memref<10x512xbf16, #tpu.memory_space<vmem>>, %arg4: memref<128x512xbf16, #tpu.memory_space<vmem>>, %arg5: memref<1x512xf32, #tpu.memory_space<vmem>>, %arg6: memref<128x512xbf16, #tpu.memory_space<vmem>>, %arg7: memref<128x512xbf16, #tpu.memory_space<vmem>>, %arg8: memref<1x512xf32, #tpu.memory_space<vmem>>, %arg9: memref<1x16x5xf32, #tpu.memory_space<vmem>>, %arg10: memref<5x16xf32, #tpu.memory_space<vmem>>, %arg11: memref<1x16xf32, #tpu.memory_space<vmem>>, %arg12: memref<128x3xf32, #tpu.memory_space<vmem>>, %arg13: memref<16x3xf32, #tpu.memory_space<vmem>>, %arg14: memref<1x3xf32, #tpu.memory_space<vmem>>, %arg15: memref<1x16x3xf32, #tpu.memory_space<vmem>>, %arg16: memref<128x512xf32, #tpu.memory_space<vmem>>, %arg17: memref<128x128xbf16, #tpu.memory_space<vmem>>, %arg18: memref<16x128xf32, #tpu.memory_space<vmem>>, %arg19: memref<16x128xf32, #tpu.memory_space<vmem>>, %arg20: memref<16x128xf32, #tpu.memory_space<vmem>>, %arg21: memref<16x128xf32, #tpu.memory_space<vmem>>) attributes {dimension_semantics = [#tpu.dimension_semantics<parallel>, #tpu.dimension_semantics<arbitrary>], iteration_bounds = array<i64: 1, 1>, scalar_prefetch = 0 : i64, scratch_operands = 6 : i64, tpu.core_type = #tpu.core_type<tc>, window_params = [{transform_indices = @transform_0, window_bounds = array<i64: 1, 128, 10>}, {pipeline_mode = #tpu.pipeline_mode<synchronous>, transform_indices = @transform_1, window_bounds = array<i64: 10, 512>}, {pipeline_mode = #tpu.pipeline_mode<synchronous>, transform_indices = @transform_2, window_bounds = array<i64: 128, 512>}, {pipeline_mode = #tpu.pipeline_mode<synchronous>, transform_indices = @transform_3, window_bounds = array<i64: 1, 512>}, {pipeline_mode = #tpu.pipeline_mode<synchronous>, transform_indices = @transform_4, window_bounds = array<i64: 128, 512>}, {pipeline_mode = #tpu.pipeline_mode<synchronous>, transform_indices = @transform_5, window_bounds = array<i64: 128, 512>}, {pipeline_mode = #tpu.pipeline_mode<synchronous>, transform_indices = @transform_6, window_bounds = array<i64: 1, 512>}, {transform_indices = @transform_7, window_bounds = array<i64: 1, 16, 5>}, {pipeline_mode = #tpu.pipeline_mode<synchronous>, transform_indices = @transform_8, window_bounds = array<i64: 5, 16>}, {pipeline_mode = #tpu.pipeline_mode<synchronous>, transform_indices = @transform_9, window_bounds = array<i64: 1, 16>}, {pipeline_mode = #tpu.pipeline_mode<synchronous>, transform_indices = @transform_10, window_bounds = array<i64: 128, 3>}, {pipeline_mode = #tpu.pipeline_mode<synchronous>, transform_indices = @transform_11, window_bounds = array<i64: 16, 3>}, {pipeline_mode = #tpu.pipeline_mode<synchronous>, transform_indices = @transform_12, window_bounds = array<i64: 1, 3>}, {transform_indices = @transform_13, window_bounds = array<i64: 1, 16, 3>}]} {
    %c0_i32 = arith.constant 0 : i32
    %0 = arith.cmpi eq, %arg1, %c0_i32 : i32
    %1 = arith.extui %0 : i1 to i32
    %c0_i32_0 = arith.constant 0 : i32
    %2 = arith.cmpi ne, %1, %c0_i32_0 : i32
    scf.if %2 {
      %cst_153 = arith.constant 0.000000e+00 : f32
      %568 = vector.broadcast %cst_153 : f32 to vector<16x128xf32>
      %c0_154 = arith.constant 0 : index
      %c0_155 = arith.constant 0 : index
      %569 = vector.load %arg18[%c0_154, %c0_155] : memref<16x128xf32, #tpu.memory_space<vmem>>, vector<16x128xf32>
      tpu.vector_store %arg18[%c0_154, %c0_155], %568 {strides = array<i32>} : memref<16x128xf32, #tpu.memory_space<vmem>>, vector<16x128xf32>,
      %cst_156 = arith.constant 0.000000e+00 : f32
      %570 = vector.broadcast %cst_156 : f32 to vector<16x128xf32>
      %c0_157 = arith.constant 0 : index
      %c0_158 = arith.constant 0 : index
      %571 = vector.load %arg19[%c0_157, %c0_158] : memref<16x128xf32, #tpu.memory_space<vmem>>, vector<16x128xf32>
      tpu.vector_store %arg19[%c0_157, %c0_158], %570 {strides = array<i32>} : memref<16x128xf32, #tpu.memory_space<vmem>>, vector<16x128xf32>,
      %cst_159 = arith.constant 0.000000e+00 : f32
      %572 = vector.broadcast %cst_159 : f32 to vector<16x128xf32>
      %c0_160 = arith.constant 0 : index
      %c0_161 = arith.constant 0 : index
      %573 = vector.load %arg20[%c0_160, %c0_161] : memref<16x128xf32, #tpu.memory_space<vmem>>, vector<16x128xf32>
      tpu.vector_store %arg20[%c0_160, %c0_161], %572 {strides = array<i32>} : memref<16x128xf32, #tpu.memory_space<vmem>>, vector<16x128xf32>,
      %cst_162 = arith.constant 0.000000e+00 : f32
      %574 = vector.broadcast %cst_162 : f32 to vector<16x128xf32>
      %c0_163 = arith.constant 0 : index
      %c0_164 = arith.constant 0 : index
      %575 = vector.load %arg21[%c0_163, %c0_164] : memref<16x128xf32, #tpu.memory_space<vmem>>, vector<16x128xf32>
      tpu.vector_store %arg21[%c0_163, %c0_164], %574 {strides = array<i32>} : memref<16x128xf32, #tpu.memory_space<vmem>>, vector<16x128xf32>,
    } else {
    }
    %c0 = arith.constant 0 : index
    %c0_1 = arith.constant 0 : index
    %c0_2 = arith.constant 0 : index
    %3 = vector.load %arg2[%c0, %c0_1, %c0_2] : memref<1x128x10xf32, #tpu.memory_space<vmem>>, vector<1x128x10xf32>
    %4 = vector.shape_cast %3 : vector<1x128x10xf32> to vector<128x10xf32>
    %5 = arith.truncf %4 : vector<128x10xf32> to vector<128x10xbf16>
    %c0_3 = arith.constant 0 : index
    %c0_4 = arith.constant 0 : index
    %6 = vector.load %arg3[%c0_3, %c0_4] : memref<10x512xbf16, #tpu.memory_space<vmem>>, vector<10x512xbf16>
    %cst = arith.constant dense<0.000000e+00> : vector<128x512xf32>
    %7 = tpu.matmul %5, %6, %cst {dimension_numbers = #tpu.dot_dimension_numbers<[1], [0], [0], [1], [0, 0, 1, 1], [], []>} : vector<128x10xbf16>, vector<10x512xbf16>, vector<128x512xf32> -> vector<128x512xf32>
    %c0_5 = arith.constant 0 : index
    %c0_6 = arith.constant 0 : index
    %8 = vector.load %arg5[%c0_5, %c0_6] : memref<1x512xf32, #tpu.memory_space<vmem>>, vector<1x512xf32>
    %9 = vector.broadcast %8 : vector<1x512xf32> to vector<128x512xf32>
    %10 = arith.addf %7, %9 : vector<128x512xf32>
    %c0_7 = arith.constant 0 : index
    %c0_8 = arith.constant 0 : index
    %11 = vector.load %arg16[%c0_7, %c0_8] : memref<128x512xf32, #tpu.memory_space<vmem>>, vector<128x512xf32>
    tpu.vector_store %arg16[%c0_7, %c0_8], %10 {strides = array<i32>} : memref<128x512xf32, #tpu.memory_space<vmem>>, vector<128x512xf32>,
    %c0_9 = arith.constant 0 : index
    %c0_10 = arith.constant 0 : index
    %12 = vector.load %arg4[%c0_9, %c0_10] : memref<128x512xbf16, #tpu.memory_space<vmem>>, vector<128x512xbf16>
    %c0_11 = arith.constant 0 : index
    %c0_12 = arith.constant 0 : index
    %13 = vector.load %arg18[%c0_11, %c0_12] : memref<16x128xf32, #tpu.memory_space<vmem>>, vector<16x128xf32>
    %c0_13 = arith.constant 0 : index
    %c0_14 = arith.constant 0 : index
    %14 = vector.load %arg19[%c0_13, %c0_14] : memref<16x128xf32, #tpu.memory_space<vmem>>, vector<16x128xf32>
    %c0_i32_15 = arith.constant 0 : i32
    %c16_i32 = arith.constant 16 : i32
    %15 = arith.muli %c0_i32_15, %c16_i32 : i32
    %16 = tpu.assume_multiple %15, 16 : i32
    %17 = arith.index_cast %16 : i32 to index
    %c0_16 = arith.constant 0 : index
    %18 = vector.load %arg16[%17, %c0_16] : memref<128x512xf32, #tpu.memory_space<vmem>>, vector<16x512xf32>
    %19 = arith.truncf %13 : vector<16x128xf32> to vector<16x128xbf16>
    %cst_17 = arith.constant dense<0.000000e+00> : vector<16x512xf32>
    %20 = tpu.matmul %19, %12, %cst_17 {dimension_numbers = #tpu.dot_dimension_numbers<[1], [0], [0], [1], [0, 0, 1, 1], [], []>} : vector<16x128xbf16>, vector<128x512xbf16>, vector<16x512xf32> -> vector<16x512xf32>
    %21 = arith.addf %18, %20 : vector<16x512xf32>
    %22 = vector.extract_strided_slice %21 {offsets = [0, 0], sizes = [16, 128], strides = [1, 1]} : vector<16x512xf32> to vector<16x128xf32>
    %23 = arith.negf %22 : vector<16x128xf32>
    %24 = math.exp %23 : vector<16x128xf32>
    %cst_18 = arith.constant 1.000000e+00 : f32
    %25 = vector.broadcast %cst_18 : f32 to vector<16x128xf32>
    %26 = arith.addf %25, %24 : vector<16x128xf32>
    %27 = arith.divf %25, %26 : vector<16x128xf32>
    %28 = vector.extract_strided_slice %21 {offsets = [0, 128], sizes = [16, 128], strides = [1, 1]} : vector<16x512xf32> to vector<16x128xf32>
    %29 = arith.negf %28 : vector<16x128xf32>
    %30 = math.exp %29 : vector<16x128xf32>
    %cst_19 = arith.constant 1.000000e+00 : f32
    %31 = vector.broadcast %cst_19 : f32 to vector<16x128xf32>
    %32 = arith.addf %31, %30 : vector<16x128xf32>
    %33 = arith.divf %31, %32 : vector<16x128xf32>
    %34 = vector.extract_strided_slice %21 {offsets = [0, 256], sizes = [16, 128], strides = [1, 1]} : vector<16x512xf32> to vector<16x128xf32>
    %35 = math.tanh %34 : vector<16x128xf32>
    %36 = arith.mulf %33, %14 : vector<16x128xf32>
    %37 = arith.mulf %27, %35 : vector<16x128xf32>
    %38 = arith.addf %36, %37 : vector<16x128xf32>
    %39 = vector.extract_strided_slice %21 {offsets = [0, 384], sizes = [16, 128], strides = [1, 1]} : vector<16x512xf32> to vector<16x128xf32>
    %40 = arith.negf %39 : vector<16x128xf32>
    %41 = math.exp %40 : vector<16x128xf32>
    %cst_20 = arith.constant 1.000000e+00 : f32
    %42 = vector.broadcast %cst_20 : f32 to vector<16x128xf32>
    %43 = arith.addf %42, %41 : vector<16x128xf32>
    %44 = arith.divf %42, %43 : vector<16x128xf32>
    %45 = math.tanh %38 : vector<16x128xf32>
    %46 = arith.mulf %44, %45 : vector<16x128xf32>
    %47 = arith.truncf %46 : vector<16x128xf32> to vector<16x128xbf16>
    %48 = arith.index_cast %16 : i32 to index
    %c0_21 = arith.constant 0 : index
    %49 = vector.load %arg17[%48, %c0_21] : memref<128x128xbf16, #tpu.memory_space<vmem>>, vector<16x128xbf16>
    tpu.vector_store %arg17[%48, %c0_21], %47 {strides = array<i32>} : memref<128x128xbf16, #tpu.memory_space<vmem>>, vector<16x128xbf16>,
    %c1_i32 = arith.constant 1 : i32
    %c16_i32_22 = arith.constant 16 : i32
    %50 = arith.muli %c1_i32, %c16_i32_22 : i32
    %51 = tpu.assume_multiple %50, 16 : i32
    %52 = arith.index_cast %51 : i32 to index
    %c0_23 = arith.constant 0 : index
    %53 = vector.load %arg16[%52, %c0_23] : memref<128x512xf32, #tpu.memory_space<vmem>>, vector<16x512xf32>
    %54 = arith.truncf %46 : vector<16x128xf32> to vector<16x128xbf16>
    %cst_24 = arith.constant dense<0.000000e+00> : vector<16x512xf32>
    %55 = tpu.matmul %54, %12, %cst_24 {dimension_numbers = #tpu.dot_dimension_numbers<[1], [0], [0], [1], [0, 0, 1, 1], [], []>} : vector<16x128xbf16>, vector<128x512xbf16>, vector<16x512xf32> -> vector<16x512xf32>
    %56 = arith.addf %53, %55 : vector<16x512xf32>
    %57 = vector.extract_strided_slice %56 {offsets = [0, 0], sizes = [16, 128], strides = [1, 1]} : vector<16x512xf32> to vector<16x128xf32>
    %58 = arith.negf %57 : vector<16x128xf32>
    %59 = math.exp %58 : vector<16x128xf32>
    %cst_25 = arith.constant 1.000000e+00 : f32
    %60 = vector.broadcast %cst_25 : f32 to vector<16x128xf32>
    %61 = arith.addf %60, %59 : vector<16x128xf32>
    %62 = arith.divf %60, %61 : vector<16x128xf32>
    %63 = vector.extract_strided_slice %56 {offsets = [0, 128], sizes = [16, 128], strides = [1, 1]} : vector<16x512xf32> to vector<16x128xf32>
    %64 = arith.negf %63 : vector<16x128xf32>
    %65 = math.exp %64 : vector<16x128xf32>
    %cst_26 = arith.constant 1.000000e+00 : f32
    %66 = vector.broadcast %cst_26 : f32 to vector<16x128xf32>
    %67 = arith.addf %66, %65 : vector<16x128xf32>
    %68 = arith.divf %66, %67 : vector<16x128xf32>
    %69 = vector.extract_strided_slice %56 {offsets = [0, 256], sizes = [16, 128], strides = [1, 1]} : vector<16x512xf32> to vector<16x128xf32>
    %70 = math.tanh %69 : vector<16x128xf32>
    %71 = arith.mulf %68, %38 : vector<16x128xf32>
    %72 = arith.mulf %62, %70 : vector<16x128xf32>
    %73 = arith.addf %71, %72 : vector<16x128xf32>
    %74 = vector.extract_strided_slice %56 {offsets = [0, 384], sizes = [16, 128], strides = [1, 1]} : vector<16x512xf32> to vector<16x128xf32>
    %75 = arith.negf %74 : vector<16x128xf32>
    %76 = math.exp %75 : vector<16x128xf32>
    %cst_27 = arith.constant 1.000000e+00 : f32
    %77 = vector.broadcast %cst_27 : f32 to vector<16x128xf32>
    %78 = arith.addf %77, %76 : vector<16x128xf32>
    %79 = arith.divf %77, %78 : vector<16x128xf32>
    %80 = math.tanh %73 : vector<16x128xf32>
    %81 = arith.mulf %79, %80 : vector<16x128xf32>
    %82 = arith.truncf %81 : vector<16x128xf32> to vector<16x128xbf16>
    %83 = arith.index_cast %51 : i32 to index
    %c0_28 = arith.constant 0 : index
    %84 = vector.load %arg17[%83, %c0_28] : memref<128x128xbf16, #tpu.memory_space<vmem>>, vector<16x128xbf16>
    tpu.vector_store %arg17[%83, %c0_28], %82 {strides = array<i32>} : memref<128x128xbf16, #tpu.memory_space<vmem>>, vector<16x128xbf16>,
    %c2_i32 = arith.constant 2 : i32
    %c16_i32_29 = arith.constant 16 : i32
    %85 = arith.muli %c2_i32, %c16_i32_29 : i32
    %86 = tpu.assume_multiple %85, 16 : i32
    %87 = arith.index_cast %86 : i32 to index
    %c0_30 = arith.constant 0 : index
    %88 = vector.load %arg16[%87, %c0_30] : memref<128x512xf32, #tpu.memory_space<vmem>>, vector<16x512xf32>
    %89 = arith.truncf %81 : vector<16x128xf32> to vector<16x128xbf16>
    %cst_31 = arith.constant dense<0.000000e+00> : vector<16x512xf32>
    %90 = tpu.matmul %89, %12, %cst_31 {dimension_numbers = #tpu.dot_dimension_numbers<[1], [0], [0], [1], [0, 0, 1, 1], [], []>} : vector<16x128xbf16>, vector<128x512xbf16>, vector<16x512xf32> -> vector<16x512xf32>
    %91 = arith.addf %88, %90 : vector<16x512xf32>
    %92 = vector.extract_strided_slice %91 {offsets = [0, 0], sizes = [16, 128], strides = [1, 1]} : vector<16x512xf32> to vector<16x128xf32>
    %93 = arith.negf %92 : vector<16x128xf32>
    %94 = math.exp %93 : vector<16x128xf32>
    %cst_32 = arith.constant 1.000000e+00 : f32
    %95 = vector.broadcast %cst_32 : f32 to vector<16x128xf32>
    %96 = arith.addf %95, %94 : vector<16x128xf32>
    %97 = arith.divf %95, %96 : vector<16x128xf32>
    %98 = vector.extract_strided_slice %91 {offsets = [0, 128], sizes = [16, 128], strides = [1, 1]} : vector<16x512xf32> to vector<16x128xf32>
    %99 = arith.negf %98 : vector<16x128xf32>
    %100 = math.exp %99 : vector<16x128xf32>
    %cst_33 = arith.constant 1.000000e+00 : f32
    %101 = vector.broadcast %cst_33 : f32 to vector<16x128xf32>
    %102 = arith.addf %101, %100 : vector<16x128xf32>
    %103 = arith.divf %101, %102 : vector<16x128xf32>
    %104 = vector.extract_strided_slice %91 {offsets = [0, 256], sizes = [16, 128], strides = [1, 1]} : vector<16x512xf32> to vector<16x128xf32>
    %105 = math.tanh %104 : vector<16x128xf32>
    %106 = arith.mulf %103, %73 : vector<16x128xf32>
    %107 = arith.mulf %97, %105 : vector<16x128xf32>
    %108 = arith.addf %106, %107 : vector<16x128xf32>
    %109 = vector.extract_strided_slice %91 {offsets = [0, 384], sizes = [16, 128], strides = [1, 1]} : vector<16x512xf32> to vector<16x128xf32>
    %110 = arith.negf %109 : vector<16x128xf32>
    %111 = math.exp %110 : vector<16x128xf32>
    %cst_34 = arith.constant 1.000000e+00 : f32
    %112 = vector.broadcast %cst_34 : f32 to vector<16x128xf32>
    %113 = arith.addf %112, %111 : vector<16x128xf32>
    %114 = arith.divf %112, %113 : vector<16x128xf32>
    %115 = math.tanh %108 : vector<16x128xf32>
    %116 = arith.mulf %114, %115 : vector<16x128xf32>
    %117 = arith.truncf %116 : vector<16x128xf32> to vector<16x128xbf16>
    %118 = arith.index_cast %86 : i32 to index
    %c0_35 = arith.constant 0 : index
    %119 = vector.load %arg17[%118, %c0_35] : memref<128x128xbf16, #tpu.memory_space<vmem>>, vector<16x128xbf16>
    tpu.vector_store %arg17[%118, %c0_35], %117 {strides = array<i32>} : memref<128x128xbf16, #tpu.memory_space<vmem>>, vector<16x128xbf16>,
    %c3_i32 = arith.constant 3 : i32
    %c16_i32_36 = arith.constant 16 : i32
    %120 = arith.muli %c3_i32, %c16_i32_36 : i32
    %121 = tpu.assume_multiple %120, 16 : i32
    %122 = arith.index_cast %121 : i32 to index
    %c0_37 = arith.constant 0 : index
    %123 = vector.load %arg16[%122, %c0_37] : memref<128x512xf32, #tpu.memory_space<vmem>>, vector<16x512xf32>
    %124 = arith.truncf %116 : vector<16x128xf32> to vector<16x128xbf16>
    %cst_38 = arith.constant dense<0.000000e+00> : vector<16x512xf32>
    %125 = tpu.matmul %124, %12, %cst_38 {dimension_numbers = #tpu.dot_dimension_numbers<[1], [0], [0], [1], [0, 0, 1, 1], [], []>} : vector<16x128xbf16>, vector<128x512xbf16>, vector<16x512xf32> -> vector<16x512xf32>
    %126 = arith.addf %123, %125 : vector<16x512xf32>
    %127 = vector.extract_strided_slice %126 {offsets = [0, 0], sizes = [16, 128], strides = [1, 1]} : vector<16x512xf32> to vector<16x128xf32>
    %128 = arith.negf %127 : vector<16x128xf32>
    %129 = math.exp %128 : vector<16x128xf32>
    %cst_39 = arith.constant 1.000000e+00 : f32
    %130 = vector.broadcast %cst_39 : f32 to vector<16x128xf32>
    %131 = arith.addf %130, %129 : vector<16x128xf32>
    %132 = arith.divf %130, %131 : vector<16x128xf32>
    %133 = vector.extract_strided_slice %126 {offsets = [0, 128], sizes = [16, 128], strides = [1, 1]} : vector<16x512xf32> to vector<16x128xf32>
    %134 = arith.negf %133 : vector<16x128xf32>
    %135 = math.exp %134 : vector<16x128xf32>
    %cst_40 = arith.constant 1.000000e+00 : f32
    %136 = vector.broadcast %cst_40 : f32 to vector<16x128xf32>
    %137 = arith.addf %136, %135 : vector<16x128xf32>
    %138 = arith.divf %136, %137 : vector<16x128xf32>
    %139 = vector.extract_strided_slice %126 {offsets = [0, 256], sizes = [16, 128], strides = [1, 1]} : vector<16x512xf32> to vector<16x128xf32>
    %140 = math.tanh %139 : vector<16x128xf32>
    %141 = arith.mulf %138, %108 : vector<16x128xf32>
    %142 = arith.mulf %132, %140 : vector<16x128xf32>
    %143 = arith.addf %141, %142 : vector<16x128xf32>
    %144 = vector.extract_strided_slice %126 {offsets = [0, 384], sizes = [16, 128], strides = [1, 1]} : vector<16x512xf32> to vector<16x128xf32>
    %145 = arith.negf %144 : vector<16x128xf32>
    %146 = math.exp %145 : vector<16x128xf32>
    %cst_41 = arith.constant 1.000000e+00 : f32
    %147 = vector.broadcast %cst_41 : f32 to vector<16x128xf32>
    %148 = arith.addf %147, %146 : vector<16x128xf32>
    %149 = arith.divf %147, %148 : vector<16x128xf32>
    %150 = math.tanh %143 : vector<16x128xf32>
    %151 = arith.mulf %149, %150 : vector<16x128xf32>
    %152 = arith.truncf %151 : vector<16x128xf32> to vector<16x128xbf16>
    %153 = arith.index_cast %121 : i32 to index
    %c0_42 = arith.constant 0 : index
    %154 = vector.load %arg17[%153, %c0_42] : memref<128x128xbf16, #tpu.memory_space<vmem>>, vector<16x128xbf16>
    tpu.vector_store %arg17[%153, %c0_42], %152 {strides = array<i32>} : memref<128x128xbf16, #tpu.memory_space<vmem>>, vector<16x128xbf16>,
    %c4_i32 = arith.constant 4 : i32
    %c16_i32_43 = arith.constant 16 : i32
    %155 = arith.muli %c4_i32, %c16_i32_43 : i32
    %156 = tpu.assume_multiple %155, 16 : i32
    %157 = arith.index_cast %156 : i32 to index
    %c0_44 = arith.constant 0 : index
    %158 = vector.load %arg16[%157, %c0_44] : memref<128x512xf32, #tpu.memory_space<vmem>>, vector<16x512xf32>
    %159 = arith.truncf %151 : vector<16x128xf32> to vector<16x128xbf16>
    %cst_45 = arith.constant dense<0.000000e+00> : vector<16x512xf32>
    %160 = tpu.matmul %159, %12, %cst_45 {dimension_numbers = #tpu.dot_dimension_numbers<[1], [0], [0], [1], [0, 0, 1, 1], [], []>} : vector<16x128xbf16>, vector<128x512xbf16>, vector<16x512xf32> -> vector<16x512xf32>
    %161 = arith.addf %158, %160 : vector<16x512xf32>
    %162 = vector.extract_strided_slice %161 {offsets = [0, 0], sizes = [16, 128], strides = [1, 1]} : vector<16x512xf32> to vector<16x128xf32>
    %163 = arith.negf %162 : vector<16x128xf32>
    %164 = math.exp %163 : vector<16x128xf32>
    %cst_46 = arith.constant 1.000000e+00 : f32
    %165 = vector.broadcast %cst_46 : f32 to vector<16x128xf32>
    %166 = arith.addf %165, %164 : vector<16x128xf32>
    %167 = arith.divf %165, %166 : vector<16x128xf32>
    %168 = vector.extract_strided_slice %161 {offsets = [0, 128], sizes = [16, 128], strides = [1, 1]} : vector<16x512xf32> to vector<16x128xf32>
    %169 = arith.negf %168 : vector<16x128xf32>
    %170 = math.exp %169 : vector<16x128xf32>
    %cst_47 = arith.constant 1.000000e+00 : f32
    %171 = vector.broadcast %cst_47 : f32 to vector<16x128xf32>
    %172 = arith.addf %171, %170 : vector<16x128xf32>
    %173 = arith.divf %171, %172 : vector<16x128xf32>
    %174 = vector.extract_strided_slice %161 {offsets = [0, 256], sizes = [16, 128], strides = [1, 1]} : vector<16x512xf32> to vector<16x128xf32>
    %175 = math.tanh %174 : vector<16x128xf32>
    %176 = arith.mulf %173, %143 : vector<16x128xf32>
    %177 = arith.mulf %167, %175 : vector<16x128xf32>
    %178 = arith.addf %176, %177 : vector<16x128xf32>
    %179 = vector.extract_strided_slice %161 {offsets = [0, 384], sizes = [16, 128], strides = [1, 1]} : vector<16x512xf32> to vector<16x128xf32>
    %180 = arith.negf %179 : vector<16x128xf32>
    %181 = math.exp %180 : vector<16x128xf32>
    %cst_48 = arith.constant 1.000000e+00 : f32
    %182 = vector.broadcast %cst_48 : f32 to vector<16x128xf32>
    %183 = arith.addf %182, %181 : vector<16x128xf32>
    %184 = arith.divf %182, %183 : vector<16x128xf32>
    %185 = math.tanh %178 : vector<16x128xf32>
    %186 = arith.mulf %184, %185 : vector<16x128xf32>
    %187 = arith.truncf %186 : vector<16x128xf32> to vector<16x128xbf16>
    %188 = arith.index_cast %156 : i32 to index
    %c0_49 = arith.constant 0 : index
    %189 = vector.load %arg17[%188, %c0_49] : memref<128x128xbf16, #tpu.memory_space<vmem>>, vector<16x128xbf16>
    tpu.vector_store %arg17[%188, %c0_49], %187 {strides = array<i32>} : memref<128x128xbf16, #tpu.memory_space<vmem>>, vector<16x128xbf16>,
    %c5_i32 = arith.constant 5 : i32
    %c16_i32_50 = arith.constant 16 : i32
    %190 = arith.muli %c5_i32, %c16_i32_50 : i32
    %191 = tpu.assume_multiple %190, 16 : i32
    %192 = arith.index_cast %191 : i32 to index
    %c0_51 = arith.constant 0 : index
    %193 = vector.load %arg16[%192, %c0_51] : memref<128x512xf32, #tpu.memory_space<vmem>>, vector<16x512xf32>
    %194 = arith.truncf %186 : vector<16x128xf32> to vector<16x128xbf16>
    %cst_52 = arith.constant dense<0.000000e+00> : vector<16x512xf32>
    %195 = tpu.matmul %194, %12, %cst_52 {dimension_numbers = #tpu.dot_dimension_numbers<[1], [0], [0], [1], [0, 0, 1, 1], [], []>} : vector<16x128xbf16>, vector<128x512xbf16>, vector<16x512xf32> -> vector<16x512xf32>
    %196 = arith.addf %193, %195 : vector<16x512xf32>
    %197 = vector.extract_strided_slice %196 {offsets = [0, 0], sizes = [16, 128], strides = [1, 1]} : vector<16x512xf32> to vector<16x128xf32>
    %198 = arith.negf %197 : vector<16x128xf32>
    %199 = math.exp %198 : vector<16x128xf32>
    %cst_53 = arith.constant 1.000000e+00 : f32
    %200 = vector.broadcast %cst_53 : f32 to vector<16x128xf32>
    %201 = arith.addf %200, %199 : vector<16x128xf32>
    %202 = arith.divf %200, %201 : vector<16x128xf32>
    %203 = vector.extract_strided_slice %196 {offsets = [0, 128], sizes = [16, 128], strides = [1, 1]} : vector<16x512xf32> to vector<16x128xf32>
    %204 = arith.negf %203 : vector<16x128xf32>
    %205 = math.exp %204 : vector<16x128xf32>
    %cst_54 = arith.constant 1.000000e+00 : f32
    %206 = vector.broadcast %cst_54 : f32 to vector<16x128xf32>
    %207 = arith.addf %206, %205 : vector<16x128xf32>
    %208 = arith.divf %206, %207 : vector<16x128xf32>
    %209 = vector.extract_strided_slice %196 {offsets = [0, 256], sizes = [16, 128], strides = [1, 1]} : vector<16x512xf32> to vector<16x128xf32>
    %210 = math.tanh %209 : vector<16x128xf32>
    %211 = arith.mulf %208, %178 : vector<16x128xf32>
    %212 = arith.mulf %202, %210 : vector<16x128xf32>
    %213 = arith.addf %211, %212 : vector<16x128xf32>
    %214 = vector.extract_strided_slice %196 {offsets = [0, 384], sizes = [16, 128], strides = [1, 1]} : vector<16x512xf32> to vector<16x128xf32>
    %215 = arith.negf %214 : vector<16x128xf32>
    %216 = math.exp %215 : vector<16x128xf32>
    %cst_55 = arith.constant 1.000000e+00 : f32
    %217 = vector.broadcast %cst_55 : f32 to vector<16x128xf32>
    %218 = arith.addf %217, %216 : vector<16x128xf32>
    %219 = arith.divf %217, %218 : vector<16x128xf32>
    %220 = math.tanh %213 : vector<16x128xf32>
    %221 = arith.mulf %219, %220 : vector<16x128xf32>
    %222 = arith.truncf %221 : vector<16x128xf32> to vector<16x128xbf16>
    %223 = arith.index_cast %191 : i32 to index
    %c0_56 = arith.constant 0 : index
    %224 = vector.load %arg17[%223, %c0_56] : memref<128x128xbf16, #tpu.memory_space<vmem>>, vector<16x128xbf16>
    tpu.vector_store %arg17[%223, %c0_56], %222 {strides = array<i32>} : memref<128x128xbf16, #tpu.memory_space<vmem>>, vector<16x128xbf16>,
    %c6_i32 = arith.constant 6 : i32
    %c16_i32_57 = arith.constant 16 : i32
    %225 = arith.muli %c6_i32, %c16_i32_57 : i32
    %226 = tpu.assume_multiple %225, 16 : i32
    %227 = arith.index_cast %226 : i32 to index
    %c0_58 = arith.constant 0 : index
    %228 = vector.load %arg16[%227, %c0_58] : memref<128x512xf32, #tpu.memory_space<vmem>>, vector<16x512xf32>
    %229 = arith.truncf %221 : vector<16x128xf32> to vector<16x128xbf16>
    %cst_59 = arith.constant dense<0.000000e+00> : vector<16x512xf32>
    %230 = tpu.matmul %229, %12, %cst_59 {dimension_numbers = #tpu.dot_dimension_numbers<[1], [0], [0], [1], [0, 0, 1, 1], [], []>} : vector<16x128xbf16>, vector<128x512xbf16>, vector<16x512xf32> -> vector<16x512xf32>
    %231 = arith.addf %228, %230 : vector<16x512xf32>
    %232 = vector.extract_strided_slice %231 {offsets = [0, 0], sizes = [16, 128], strides = [1, 1]} : vector<16x512xf32> to vector<16x128xf32>
    %233 = arith.negf %232 : vector<16x128xf32>
    %234 = math.exp %233 : vector<16x128xf32>
    %cst_60 = arith.constant 1.000000e+00 : f32
    %235 = vector.broadcast %cst_60 : f32 to vector<16x128xf32>
    %236 = arith.addf %235, %234 : vector<16x128xf32>
    %237 = arith.divf %235, %236 : vector<16x128xf32>
    %238 = vector.extract_strided_slice %231 {offsets = [0, 128], sizes = [16, 128], strides = [1, 1]} : vector<16x512xf32> to vector<16x128xf32>
    %239 = arith.negf %238 : vector<16x128xf32>
    %240 = math.exp %239 : vector<16x128xf32>
    %cst_61 = arith.constant 1.000000e+00 : f32
    %241 = vector.broadcast %cst_61 : f32 to vector<16x128xf32>
    %242 = arith.addf %241, %240 : vector<16x128xf32>
    %243 = arith.divf %241, %242 : vector<16x128xf32>
    %244 = vector.extract_strided_slice %231 {offsets = [0, 256], sizes = [16, 128], strides = [1, 1]} : vector<16x512xf32> to vector<16x128xf32>
    %245 = math.tanh %244 : vector<16x128xf32>
    %246 = arith.mulf %243, %213 : vector<16x128xf32>
    %247 = arith.mulf %237, %245 : vector<16x128xf32>
    %248 = arith.addf %246, %247 : vector<16x128xf32>
    %249 = vector.extract_strided_slice %231 {offsets = [0, 384], sizes = [16, 128], strides = [1, 1]} : vector<16x512xf32> to vector<16x128xf32>
    %250 = arith.negf %249 : vector<16x128xf32>
    %251 = math.exp %250 : vector<16x128xf32>
    %cst_62 = arith.constant 1.000000e+00 : f32
    %252 = vector.broadcast %cst_62 : f32 to vector<16x128xf32>
    %253 = arith.addf %252, %251 : vector<16x128xf32>
    %254 = arith.divf %252, %253 : vector<16x128xf32>
    %255 = math.tanh %248 : vector<16x128xf32>
    %256 = arith.mulf %254, %255 : vector<16x128xf32>
    %257 = arith.truncf %256 : vector<16x128xf32> to vector<16x128xbf16>
    %258 = arith.index_cast %226 : i32 to index
    %c0_63 = arith.constant 0 : index
    %259 = vector.load %arg17[%258, %c0_63] : memref<128x128xbf16, #tpu.memory_space<vmem>>, vector<16x128xbf16>
    tpu.vector_store %arg17[%258, %c0_63], %257 {strides = array<i32>} : memref<128x128xbf16, #tpu.memory_space<vmem>>, vector<16x128xbf16>,
    %c7_i32 = arith.constant 7 : i32
    %c16_i32_64 = arith.constant 16 : i32
    %260 = arith.muli %c7_i32, %c16_i32_64 : i32
    %261 = tpu.assume_multiple %260, 16 : i32
    %262 = arith.index_cast %261 : i32 to index
    %c0_65 = arith.constant 0 : index
    %263 = vector.load %arg16[%262, %c0_65] : memref<128x512xf32, #tpu.memory_space<vmem>>, vector<16x512xf32>
    %264 = arith.truncf %256 : vector<16x128xf32> to vector<16x128xbf16>
    %cst_66 = arith.constant dense<0.000000e+00> : vector<16x512xf32>
    %265 = tpu.matmul %264, %12, %cst_66 {dimension_numbers = #tpu.dot_dimension_numbers<[1], [0], [0], [1], [0, 0, 1, 1], [], []>} : vector<16x128xbf16>, vector<128x512xbf16>, vector<16x512xf32> -> vector<16x512xf32>
    %266 = arith.addf %263, %265 : vector<16x512xf32>
    %267 = vector.extract_strided_slice %266 {offsets = [0, 0], sizes = [16, 128], strides = [1, 1]} : vector<16x512xf32> to vector<16x128xf32>
    %268 = arith.negf %267 : vector<16x128xf32>
    %269 = math.exp %268 : vector<16x128xf32>
    %cst_67 = arith.constant 1.000000e+00 : f32
    %270 = vector.broadcast %cst_67 : f32 to vector<16x128xf32>
    %271 = arith.addf %270, %269 : vector<16x128xf32>
    %272 = arith.divf %270, %271 : vector<16x128xf32>
    %273 = vector.extract_strided_slice %266 {offsets = [0, 128], sizes = [16, 128], strides = [1, 1]} : vector<16x512xf32> to vector<16x128xf32>
    %274 = arith.negf %273 : vector<16x128xf32>
    %275 = math.exp %274 : vector<16x128xf32>
    %cst_68 = arith.constant 1.000000e+00 : f32
    %276 = vector.broadcast %cst_68 : f32 to vector<16x128xf32>
    %277 = arith.addf %276, %275 : vector<16x128xf32>
    %278 = arith.divf %276, %277 : vector<16x128xf32>
    %279 = vector.extract_strided_slice %266 {offsets = [0, 256], sizes = [16, 128], strides = [1, 1]} : vector<16x512xf32> to vector<16x128xf32>
    %280 = math.tanh %279 : vector<16x128xf32>
    %281 = arith.mulf %278, %248 : vector<16x128xf32>
    %282 = arith.mulf %272, %280 : vector<16x128xf32>
    %283 = arith.addf %281, %282 : vector<16x128xf32>
    %284 = vector.extract_strided_slice %266 {offsets = [0, 384], sizes = [16, 128], strides = [1, 1]} : vector<16x512xf32> to vector<16x128xf32>
    %285 = arith.negf %284 : vector<16x128xf32>
    %286 = math.exp %285 : vector<16x128xf32>
    %cst_69 = arith.constant 1.000000e+00 : f32
    %287 = vector.broadcast %cst_69 : f32 to vector<16x128xf32>
    %288 = arith.addf %287, %286 : vector<16x128xf32>
    %289 = arith.divf %287, %288 : vector<16x128xf32>
    %290 = math.tanh %283 : vector<16x128xf32>
    %291 = arith.mulf %289, %290 : vector<16x128xf32>
    %292 = arith.truncf %291 : vector<16x128xf32> to vector<16x128xbf16>
    %293 = arith.index_cast %261 : i32 to index
    %c0_70 = arith.constant 0 : index
    %294 = vector.load %arg17[%293, %c0_70] : memref<128x128xbf16, #tpu.memory_space<vmem>>, vector<16x128xbf16>
    tpu.vector_store %arg17[%293, %c0_70], %292 {strides = array<i32>} : memref<128x128xbf16, #tpu.memory_space<vmem>>, vector<16x128xbf16>,
    %c8_i32 = arith.constant 8 : i32
    %c0_71 = arith.constant 0 : index
    %c0_72 = arith.constant 0 : index
    %295 = vector.load %arg18[%c0_71, %c0_72] : memref<16x128xf32, #tpu.memory_space<vmem>>, vector<16x128xf32>
    tpu.vector_store %arg18[%c0_71, %c0_72], %291 {strides = array<i32>} : memref<16x128xf32, #tpu.memory_space<vmem>>, vector<16x128xf32>,
    %c0_73 = arith.constant 0 : index
    %c0_74 = arith.constant 0 : index
    %296 = vector.load %arg19[%c0_73, %c0_74] : memref<16x128xf32, #tpu.memory_space<vmem>>, vector<16x128xf32>
    tpu.vector_store %arg19[%c0_73, %c0_74], %283 {strides = array<i32>} : memref<16x128xf32, #tpu.memory_space<vmem>>, vector<16x128xf32>,
    %c0_75 = arith.constant 0 : index
    %c0_76 = arith.constant 0 : index
    %297 = vector.load %arg17[%c0_75, %c0_76] : memref<128x128xbf16, #tpu.memory_space<vmem>>, vector<128x128xbf16>
    %c0_77 = arith.constant 0 : index
    %c0_78 = arith.constant 0 : index
    %298 = vector.load %arg6[%c0_77, %c0_78] : memref<128x512xbf16, #tpu.memory_space<vmem>>, vector<128x512xbf16>
    %cst_79 = arith.constant dense<0.000000e+00> : vector<128x512xf32>
    %299 = tpu.matmul %297, %298, %cst_79 {dimension_numbers = #tpu.dot_dimension_numbers<[1], [0], [0], [1], [0, 0, 1, 1], [], []>} : vector<128x128xbf16>, vector<128x512xbf16>, vector<128x512xf32> -> vector<128x512xf32>
    %c0_80 = arith.constant 0 : index
    %c0_81 = arith.constant 0 : index
    %300 = vector.load %arg8[%c0_80, %c0_81] : memref<1x512xf32, #tpu.memory_space<vmem>>, vector<1x512xf32>
    %301 = vector.broadcast %300 : vector<1x512xf32> to vector<128x512xf32>
    %302 = arith.addf %299, %301 : vector<128x512xf32>
    %c0_82 = arith.constant 0 : index
    %c0_83 = arith.constant 0 : index
    %303 = vector.load %arg16[%c0_82, %c0_83] : memref<128x512xf32, #tpu.memory_space<vmem>>, vector<128x512xf32>
    tpu.vector_store %arg16[%c0_82, %c0_83], %302 {strides = array<i32>} : memref<128x512xf32, #tpu.memory_space<vmem>>, vector<128x512xf32>,
    %c0_84 = arith.constant 0 : index
    %c0_85 = arith.constant 0 : index
    %304 = vector.load %arg7[%c0_84, %c0_85] : memref<128x512xbf16, #tpu.memory_space<vmem>>, vector<128x512xbf16>
    %c0_86 = arith.constant 0 : index
    %c0_87 = arith.constant 0 : index
    %305 = vector.load %arg20[%c0_86, %c0_87] : memref<16x128xf32, #tpu.memory_space<vmem>>, vector<16x128xf32>
    %c0_88 = arith.constant 0 : index
    %c0_89 = arith.constant 0 : index
    %306 = vector.load %arg21[%c0_88, %c0_89] : memref<16x128xf32, #tpu.memory_space<vmem>>, vector<16x128xf32>
    %c0_i32_90 = arith.constant 0 : i32
    %c16_i32_91 = arith.constant 16 : i32
    %307 = arith.muli %c0_i32_90, %c16_i32_91 : i32
    %308 = tpu.assume_multiple %307, 16 : i32
    %309 = arith.index_cast %308 : i32 to index
    %c0_92 = arith.constant 0 : index
    %310 = vector.load %arg16[%309, %c0_92] : memref<128x512xf32, #tpu.memory_space<vmem>>, vector<16x512xf32>
    %311 = arith.truncf %305 : vector<16x128xf32> to vector<16x128xbf16>
    %cst_93 = arith.constant dense<0.000000e+00> : vector<16x512xf32>
    %312 = tpu.matmul %311, %304, %cst_93 {dimension_numbers = #tpu.dot_dimension_numbers<[1], [0], [0], [1], [0, 0, 1, 1], [], []>} : vector<16x128xbf16>, vector<128x512xbf16>, vector<16x512xf32> -> vector<16x512xf32>
    %313 = arith.addf %310, %312 : vector<16x512xf32>
    %314 = vector.extract_strided_slice %313 {offsets = [0, 0], sizes = [16, 128], strides = [1, 1]} : vector<16x512xf32> to vector<16x128xf32>
    %315 = arith.negf %314 : vector<16x128xf32>
    %316 = math.exp %315 : vector<16x128xf32>
    %cst_94 = arith.constant 1.000000e+00 : f32
    %317 = vector.broadcast %cst_94 : f32 to vector<16x128xf32>
    %318 = arith.addf %317, %316 : vector<16x128xf32>
    %319 = arith.divf %317, %318 : vector<16x128xf32>
    %320 = vector.extract_strided_slice %313 {offsets = [0, 128], sizes = [16, 128], strides = [1, 1]} : vector<16x512xf32> to vector<16x128xf32>
    %321 = arith.negf %320 : vector<16x128xf32>
    %322 = math.exp %321 : vector<16x128xf32>
    %cst_95 = arith.constant 1.000000e+00 : f32
    %323 = vector.broadcast %cst_95 : f32 to vector<16x128xf32>
    %324 = arith.addf %323, %322 : vector<16x128xf32>
    %325 = arith.divf %323, %324 : vector<16x128xf32>
    %326 = vector.extract_strided_slice %313 {offsets = [0, 256], sizes = [16, 128], strides = [1, 1]} : vector<16x512xf32> to vector<16x128xf32>
    %327 = math.tanh %326 : vector<16x128xf32>
    %328 = arith.mulf %325, %306 : vector<16x128xf32>
    %329 = arith.mulf %319, %327 : vector<16x128xf32>
    %330 = arith.addf %328, %329 : vector<16x128xf32>
    %331 = vector.extract_strided_slice %313 {offsets = [0, 384], sizes = [16, 128], strides = [1, 1]} : vector<16x512xf32> to vector<16x128xf32>
    %332 = arith.negf %331 : vector<16x128xf32>
    %333 = math.exp %332 : vector<16x128xf32>
    %cst_96 = arith.constant 1.000000e+00 : f32
    %334 = vector.broadcast %cst_96 : f32 to vector<16x128xf32>
    %335 = arith.addf %334, %333 : vector<16x128xf32>
    %336 = arith.divf %334, %335 : vector<16x128xf32>
    %337 = math.tanh %330 : vector<16x128xf32>
    %338 = arith.mulf %336, %337 : vector<16x128xf32>
    %c1_i32_97 = arith.constant 1 : i32
    %c16_i32_98 = arith.constant 16 : i32
    %339 = arith.muli %c1_i32_97, %c16_i32_98 : i32
    %340 = tpu.assume_multiple %339, 16 : i32
    %341 = arith.index_cast %340 : i32 to index
    %c0_99 = arith.constant 0 : index
    %342 = vector.load %arg16[%341, %c0_99] : memref<128x512xf32, #tpu.memory_space<vmem>>, vector<16x512xf32>
    %343 = arith.truncf %338 : vector<16x128xf32> to vector<16x128xbf16>
    %cst_100 = arith.constant dense<0.000000e+00> : vector<16x512xf32>
    %344 = tpu.matmul %343, %304, %cst_100 {dimension_numbers = #tpu.dot_dimension_numbers<[1], [0], [0], [1], [0, 0, 1, 1], [], []>} : vector<16x128xbf16>, vector<128x512xbf16>, vector<16x512xf32> -> vector<16x512xf32>
    %345 = arith.addf %342, %344 : vector<16x512xf32>
    %346 = vector.extract_strided_slice %345 {offsets = [0, 0], sizes = [16, 128], strides = [1, 1]} : vector<16x512xf32> to vector<16x128xf32>
    %347 = arith.negf %346 : vector<16x128xf32>
    %348 = math.exp %347 : vector<16x128xf32>
    %cst_101 = arith.constant 1.000000e+00 : f32
    %349 = vector.broadcast %cst_101 : f32 to vector<16x128xf32>
    %350 = arith.addf %349, %348 : vector<16x128xf32>
    %351 = arith.divf %349, %350 : vector<16x128xf32>
    %352 = vector.extract_strided_slice %345 {offsets = [0, 128], sizes = [16, 128], strides = [1, 1]} : vector<16x512xf32> to vector<16x128xf32>
    %353 = arith.negf %352 : vector<16x128xf32>
    %354 = math.exp %353 : vector<16x128xf32>
    %cst_102 = arith.constant 1.000000e+00 : f32
    %355 = vector.broadcast %cst_102 : f32 to vector<16x128xf32>
    %356 = arith.addf %355, %354 : vector<16x128xf32>
    %357 = arith.divf %355, %356 : vector<16x128xf32>
    %358 = vector.extract_strided_slice %345 {offsets = [0, 256], sizes = [16, 128], strides = [1, 1]} : vector<16x512xf32> to vector<16x128xf32>
    %359 = math.tanh %358 : vector<16x128xf32>
    %360 = arith.mulf %357, %330 : vector<16x128xf32>
    %361 = arith.mulf %351, %359 : vector<16x128xf32>
    %362 = arith.addf %360, %361 : vector<16x128xf32>
    %363 = vector.extract_strided_slice %345 {offsets = [0, 384], sizes = [16, 128], strides = [1, 1]} : vector<16x512xf32> to vector<16x128xf32>
    %364 = arith.negf %363 : vector<16x128xf32>
    %365 = math.exp %364 : vector<16x128xf32>
    %cst_103 = arith.constant 1.000000e+00 : f32
    %366 = vector.broadcast %cst_103 : f32 to vector<16x128xf32>
    %367 = arith.addf %366, %365 : vector<16x128xf32>
    %368 = arith.divf %366, %367 : vector<16x128xf32>
    %369 = math.tanh %362 : vector<16x128xf32>
    %370 = arith.mulf %368, %369 : vector<16x128xf32>
    %c2_i32_104 = arith.constant 2 : i32
    %c16_i32_105 = arith.constant 16 : i32
    %371 = arith.muli %c2_i32_104, %c16_i32_105 : i32
    %372 = tpu.assume_multiple %371, 16 : i32
    %373 = arith.index_cast %372 : i32 to index
    %c0_106 = arith.constant 0 : index
    %374 = vector.load %arg16[%373, %c0_106] : memref<128x512xf32, #tpu.memory_space<vmem>>, vector<16x512xf32>
    %375 = arith.truncf %370 : vector<16x128xf32> to vector<16x128xbf16>
    %cst_107 = arith.constant dense<0.000000e+00> : vector<16x512xf32>
    %376 = tpu.matmul %375, %304, %cst_107 {dimension_numbers = #tpu.dot_dimension_numbers<[1], [0], [0], [1], [0, 0, 1, 1], [], []>} : vector<16x128xbf16>, vector<128x512xbf16>, vector<16x512xf32> -> vector<16x512xf32>
    %377 = arith.addf %374, %376 : vector<16x512xf32>
    %378 = vector.extract_strided_slice %377 {offsets = [0, 0], sizes = [16, 128], strides = [1, 1]} : vector<16x512xf32> to vector<16x128xf32>
    %379 = arith.negf %378 : vector<16x128xf32>
    %380 = math.exp %379 : vector<16x128xf32>
    %cst_108 = arith.constant 1.000000e+00 : f32
    %381 = vector.broadcast %cst_108 : f32 to vector<16x128xf32>
    %382 = arith.addf %381, %380 : vector<16x128xf32>
    %383 = arith.divf %381, %382 : vector<16x128xf32>
    %384 = vector.extract_strided_slice %377 {offsets = [0, 128], sizes = [16, 128], strides = [1, 1]} : vector<16x512xf32> to vector<16x128xf32>
    %385 = arith.negf %384 : vector<16x128xf32>
    %386 = math.exp %385 : vector<16x128xf32>
    %cst_109 = arith.constant 1.000000e+00 : f32
    %387 = vector.broadcast %cst_109 : f32 to vector<16x128xf32>
    %388 = arith.addf %387, %386 : vector<16x128xf32>
    %389 = arith.divf %387, %388 : vector<16x128xf32>
    %390 = vector.extract_strided_slice %377 {offsets = [0, 256], sizes = [16, 128], strides = [1, 1]} : vector<16x512xf32> to vector<16x128xf32>
    %391 = math.tanh %390 : vector<16x128xf32>
    %392 = arith.mulf %389, %362 : vector<16x128xf32>
    %393 = arith.mulf %383, %391 : vector<16x128xf32>
    %394 = arith.addf %392, %393 : vector<16x128xf32>
    %395 = vector.extract_strided_slice %377 {offsets = [0, 384], sizes = [16, 128], strides = [1, 1]} : vector<16x512xf32> to vector<16x128xf32>
    %396 = arith.negf %395 : vector<16x128xf32>
    %397 = math.exp %396 : vector<16x128xf32>
    %cst_110 = arith.constant 1.000000e+00 : f32
    %398 = vector.broadcast %cst_110 : f32 to vector<16x128xf32>
    %399 = arith.addf %398, %397 : vector<16x128xf32>
    %400 = arith.divf %398, %399 : vector<16x128xf32>
    %401 = math.tanh %394 : vector<16x128xf32>
    %402 = arith.mulf %400, %401 : vector<16x128xf32>
    %c3_i32_111 = arith.constant 3 : i32
    %c16_i32_112 = arith.constant 16 : i32
    %403 = arith.muli %c3_i32_111, %c16_i32_112 : i32
    %404 = tpu.assume_multiple %403, 16 : i32
    %405 = arith.index_cast %404 : i32 to index
    %c0_113 = arith.constant 0 : index
    %406 = vector.load %arg16[%405, %c0_113] : memref<128x512xf32, #tpu.memory_space<vmem>>, vector<16x512xf32>
    %407 = arith.truncf %402 : vector<16x128xf32> to vector<16x128xbf16>
    %cst_114 = arith.constant dense<0.000000e+00> : vector<16x512xf32>
    %408 = tpu.matmul %407, %304, %cst_114 {dimension_numbers = #tpu.dot_dimension_numbers<[1], [0], [0], [1], [0, 0, 1, 1], [], []>} : vector<16x128xbf16>, vector<128x512xbf16>, vector<16x512xf32> -> vector<16x512xf32>
    %409 = arith.addf %406, %408 : vector<16x512xf32>
    %410 = vector.extract_strided_slice %409 {offsets = [0, 0], sizes = [16, 128], strides = [1, 1]} : vector<16x512xf32> to vector<16x128xf32>
    %411 = arith.negf %410 : vector<16x128xf32>
    %412 = math.exp %411 : vector<16x128xf32>
    %cst_115 = arith.constant 1.000000e+00 : f32
    %413 = vector.broadcast %cst_115 : f32 to vector<16x128xf32>
    %414 = arith.addf %413, %412 : vector<16x128xf32>
    %415 = arith.divf %413, %414 : vector<16x128xf32>
    %416 = vector.extract_strided_slice %409 {offsets = [0, 128], sizes = [16, 128], strides = [1, 1]} : vector<16x512xf32> to vector<16x128xf32>
    %417 = arith.negf %416 : vector<16x128xf32>
    %418 = math.exp %417 : vector<16x128xf32>
    %cst_116 = arith.constant 1.000000e+00 : f32
    %419 = vector.broadcast %cst_116 : f32 to vector<16x128xf32>
    %420 = arith.addf %419, %418 : vector<16x128xf32>
    %421 = arith.divf %419, %420 : vector<16x128xf32>
    %422 = vector.extract_strided_slice %409 {offsets = [0, 256], sizes = [16, 128], strides = [1, 1]} : vector<16x512xf32> to vector<16x128xf32>
    %423 = math.tanh %422 : vector<16x128xf32>
    %424 = arith.mulf %421, %394 : vector<16x128xf32>
    %425 = arith.mulf %415, %423 : vector<16x128xf32>
    %426 = arith.addf %424, %425 : vector<16x128xf32>
    %427 = vector.extract_strided_slice %409 {offsets = [0, 384], sizes = [16, 128], strides = [1, 1]} : vector<16x512xf32> to vector<16x128xf32>
    %428 = arith.negf %427 : vector<16x128xf32>
    %429 = math.exp %428 : vector<16x128xf32>
    %cst_117 = arith.constant 1.000000e+00 : f32
    %430 = vector.broadcast %cst_117 : f32 to vector<16x128xf32>
    %431 = arith.addf %430, %429 : vector<16x128xf32>
    %432 = arith.divf %430, %431 : vector<16x128xf32>
    %433 = math.tanh %426 : vector<16x128xf32>
    %434 = arith.mulf %432, %433 : vector<16x128xf32>
    %c4_i32_118 = arith.constant 4 : i32
    %c16_i32_119 = arith.constant 16 : i32
    %435 = arith.muli %c4_i32_118, %c16_i32_119 : i32
    %436 = tpu.assume_multiple %435, 16 : i32
    %437 = arith.index_cast %436 : i32 to index
    %c0_120 = arith.constant 0 : index
    %438 = vector.load %arg16[%437, %c0_120] : memref<128x512xf32, #tpu.memory_space<vmem>>, vector<16x512xf32>
    %439 = arith.truncf %434 : vector<16x128xf32> to vector<16x128xbf16>
    %cst_121 = arith.constant dense<0.000000e+00> : vector<16x512xf32>
    %440 = tpu.matmul %439, %304, %cst_121 {dimension_numbers = #tpu.dot_dimension_numbers<[1], [0], [0], [1], [0, 0, 1, 1], [], []>} : vector<16x128xbf16>, vector<128x512xbf16>, vector<16x512xf32> -> vector<16x512xf32>
    %441 = arith.addf %438, %440 : vector<16x512xf32>
    %442 = vector.extract_strided_slice %441 {offsets = [0, 0], sizes = [16, 128], strides = [1, 1]} : vector<16x512xf32> to vector<16x128xf32>
    %443 = arith.negf %442 : vector<16x128xf32>
    %444 = math.exp %443 : vector<16x128xf32>
    %cst_122 = arith.constant 1.000000e+00 : f32
    %445 = vector.broadcast %cst_122 : f32 to vector<16x128xf32>
    %446 = arith.addf %445, %444 : vector<16x128xf32>
    %447 = arith.divf %445, %446 : vector<16x128xf32>
    %448 = vector.extract_strided_slice %441 {offsets = [0, 128], sizes = [16, 128], strides = [1, 1]} : vector<16x512xf32> to vector<16x128xf32>
    %449 = arith.negf %448 : vector<16x128xf32>
    %450 = math.exp %449 : vector<16x128xf32>
    %cst_123 = arith.constant 1.000000e+00 : f32
    %451 = vector.broadcast %cst_123 : f32 to vector<16x128xf32>
    %452 = arith.addf %451, %450 : vector<16x128xf32>
    %453 = arith.divf %451, %452 : vector<16x128xf32>
    %454 = vector.extract_strided_slice %441 {offsets = [0, 256], sizes = [16, 128], strides = [1, 1]} : vector<16x512xf32> to vector<16x128xf32>
    %455 = math.tanh %454 : vector<16x128xf32>
    %456 = arith.mulf %453, %426 : vector<16x128xf32>
    %457 = arith.mulf %447, %455 : vector<16x128xf32>
    %458 = arith.addf %456, %457 : vector<16x128xf32>
    %459 = vector.extract_strided_slice %441 {offsets = [0, 384], sizes = [16, 128], strides = [1, 1]} : vector<16x512xf32> to vector<16x128xf32>
    %460 = arith.negf %459 : vector<16x128xf32>
    %461 = math.exp %460 : vector<16x128xf32>
    %cst_124 = arith.constant 1.000000e+00 : f32
    %462 = vector.broadcast %cst_124 : f32 to vector<16x128xf32>
    %463 = arith.addf %462, %461 : vector<16x128xf32>
    %464 = arith.divf %462, %463 : vector<16x128xf32>
    %465 = math.tanh %458 : vector<16x128xf32>
    %466 = arith.mulf %464, %465 : vector<16x128xf32>
    %c5_i32_125 = arith.constant 5 : i32
    %c16_i32_126 = arith.constant 16 : i32
    %467 = arith.muli %c5_i32_125, %c16_i32_126 : i32
    %468 = tpu.assume_multiple %467, 16 : i32
    %469 = arith.index_cast %468 : i32 to index
    %c0_127 = arith.constant 0 : index
    %470 = vector.load %arg16[%469, %c0_127] : memref<128x512xf32, #tpu.memory_space<vmem>>, vector<16x512xf32>
    %471 = arith.truncf %466 : vector<16x128xf32> to vector<16x128xbf16>
    %cst_128 = arith.constant dense<0.000000e+00> : vector<16x512xf32>
    %472 = tpu.matmul %471, %304, %cst_128 {dimension_numbers = #tpu.dot_dimension_numbers<[1], [0], [0], [1], [0, 0, 1, 1], [], []>} : vector<16x128xbf16>, vector<128x512xbf16>, vector<16x512xf32> -> vector<16x512xf32>
    %473 = arith.addf %470, %472 : vector<16x512xf32>
    %474 = vector.extract_strided_slice %473 {offsets = [0, 0], sizes = [16, 128], strides = [1, 1]} : vector<16x512xf32> to vector<16x128xf32>
    %475 = arith.negf %474 : vector<16x128xf32>
    %476 = math.exp %475 : vector<16x128xf32>
    %cst_129 = arith.constant 1.000000e+00 : f32
    %477 = vector.broadcast %cst_129 : f32 to vector<16x128xf32>
    %478 = arith.addf %477, %476 : vector<16x128xf32>
    %479 = arith.divf %477, %478 : vector<16x128xf32>
    %480 = vector.extract_strided_slice %473 {offsets = [0, 128], sizes = [16, 128], strides = [1, 1]} : vector<16x512xf32> to vector<16x128xf32>
    %481 = arith.negf %480 : vector<16x128xf32>
    %482 = math.exp %481 : vector<16x128xf32>
    %cst_130 = arith.constant 1.000000e+00 : f32
    %483 = vector.broadcast %cst_130 : f32 to vector<16x128xf32>
    %484 = arith.addf %483, %482 : vector<16x128xf32>
    %485 = arith.divf %483, %484 : vector<16x128xf32>
    %486 = vector.extract_strided_slice %473 {offsets = [0, 256], sizes = [16, 128], strides = [1, 1]} : vector<16x512xf32> to vector<16x128xf32>
    %487 = math.tanh %486 : vector<16x128xf32>
    %488 = arith.mulf %485, %458 : vector<16x128xf32>
    %489 = arith.mulf %479, %487 : vector<16x128xf32>
    %490 = arith.addf %488, %489 : vector<16x128xf32>
    %491 = vector.extract_strided_slice %473 {offsets = [0, 384], sizes = [16, 128], strides = [1, 1]} : vector<16x512xf32> to vector<16x128xf32>
    %492 = arith.negf %491 : vector<16x128xf32>
    %493 = math.exp %492 : vector<16x128xf32>
    %cst_131 = arith.constant 1.000000e+00 : f32
    %494 = vector.broadcast %cst_131 : f32 to vector<16x128xf32>
    %495 = arith.addf %494, %493 : vector<16x128xf32>
    %496 = arith.divf %494, %495 : vector<16x128xf32>
    %497 = math.tanh %490 : vector<16x128xf32>
    %498 = arith.mulf %496, %497 : vector<16x128xf32>
    %c6_i32_132 = arith.constant 6 : i32
    %c16_i32_133 = arith.constant 16 : i32
    %499 = arith.muli %c6_i32_132, %c16_i32_133 : i32
    %500 = tpu.assume_multiple %499, 16 : i32
    %501 = arith.index_cast %500 : i32 to index
    %c0_134 = arith.constant 0 : index
    %502 = vector.load %arg16[%501, %c0_134] : memref<128x512xf32, #tpu.memory_space<vmem>>, vector<16x512xf32>
    %503 = arith.truncf %498 : vector<16x128xf32> to vector<16x128xbf16>
    %cst_135 = arith.constant dense<0.000000e+00> : vector<16x512xf32>
    %504 = tpu.matmul %503, %304, %cst_135 {dimension_numbers = #tpu.dot_dimension_numbers<[1], [0], [0], [1], [0, 0, 1, 1], [], []>} : vector<16x128xbf16>, vector<128x512xbf16>, vector<16x512xf32> -> vector<16x512xf32>
    %505 = arith.addf %502, %504 : vector<16x512xf32>
    %506 = vector.extract_strided_slice %505 {offsets = [0, 0], sizes = [16, 128], strides = [1, 1]} : vector<16x512xf32> to vector<16x128xf32>
    %507 = arith.negf %506 : vector<16x128xf32>
    %508 = math.exp %507 : vector<16x128xf32>
    %cst_136 = arith.constant 1.000000e+00 : f32
    %509 = vector.broadcast %cst_136 : f32 to vector<16x128xf32>
    %510 = arith.addf %509, %508 : vector<16x128xf32>
    %511 = arith.divf %509, %510 : vector<16x128xf32>
    %512 = vector.extract_strided_slice %505 {offsets = [0, 128], sizes = [16, 128], strides = [1, 1]} : vector<16x512xf32> to vector<16x128xf32>
    %513 = arith.negf %512 : vector<16x128xf32>
    %514 = math.exp %513 : vector<16x128xf32>
    %cst_137 = arith.constant 1.000000e+00 : f32
    %515 = vector.broadcast %cst_137 : f32 to vector<16x128xf32>
    %516 = arith.addf %515, %514 : vector<16x128xf32>
    %517 = arith.divf %515, %516 : vector<16x128xf32>
    %518 = vector.extract_strided_slice %505 {offsets = [0, 256], sizes = [16, 128], strides = [1, 1]} : vector<16x512xf32> to vector<16x128xf32>
    %519 = math.tanh %518 : vector<16x128xf32>
    %520 = arith.mulf %517, %490 : vector<16x128xf32>
    %521 = arith.mulf %511, %519 : vector<16x128xf32>
    %522 = arith.addf %520, %521 : vector<16x128xf32>
    %523 = vector.extract_strided_slice %505 {offsets = [0, 384], sizes = [16, 128], strides = [1, 1]} : vector<16x512xf32> to vector<16x128xf32>
    %524 = arith.negf %523 : vector<16x128xf32>
    %525 = math.exp %524 : vector<16x128xf32>
    %cst_138 = arith.constant 1.000000e+00 : f32
    %526 = vector.broadcast %cst_138 : f32 to vector<16x128xf32>
    %527 = arith.addf %526, %525 : vector<16x128xf32>
    %528 = arith.divf %526, %527 : vector<16x128xf32>
    %529 = math.tanh %522 : vector<16x128xf32>
    %530 = arith.mulf %528, %529 : vector<16x128xf32>
    %c7_i32_139 = arith.constant 7 : i32
    %c16_i32_140 = arith.constant 16 : i32
    %531 = arith.muli %c7_i32_139, %c16_i32_140 : i32
    %532 = tpu.assume_multiple %531, 16 : i32
    %533 = arith.index_cast %532 : i32 to index
    %c0_141 = arith.constant 0 : index
    %534 = vector.load %arg16[%533, %c0_141] : memref<128x512xf32, #tpu.memory_space<vmem>>, vector<16x512xf32>
    %535 = arith.truncf %530 : vector<16x128xf32> to vector<16x128xbf16>
    %cst_142 = arith.constant dense<0.000000e+00> : vector<16x512xf32>
    %536 = tpu.matmul %535, %304, %cst_142 {dimension_numbers = #tpu.dot_dimension_numbers<[1], [0], [0], [1], [0, 0, 1, 1], [], []>} : vector<16x128xbf16>, vector<128x512xbf16>, vector<16x512xf32> -> vector<16x512xf32>
    %537 = arith.addf %534, %536 : vector<16x512xf32>
    %538 = vector.extract_strided_slice %537 {offsets = [0, 0], sizes = [16, 128], strides = [1, 1]} : vector<16x512xf32> to vector<16x128xf32>
    %539 = arith.negf %538 : vector<16x128xf32>
    %540 = math.exp %539 : vector<16x128xf32>
    %cst_143 = arith.constant 1.000000e+00 : f32
    %541 = vector.broadcast %cst_143 : f32 to vector<16x128xf32>
    %542 = arith.addf %541, %540 : vector<16x128xf32>
    %543 = arith.divf %541, %542 : vector<16x128xf32>
    %544 = vector.extract_strided_slice %537 {offsets = [0, 128], sizes = [16, 128], strides = [1, 1]} : vector<16x512xf32> to vector<16x128xf32>
    %545 = arith.negf %544 : vector<16x128xf32>
    %546 = math.exp %545 : vector<16x128xf32>
    %cst_144 = arith.constant 1.000000e+00 : f32
    %547 = vector.broadcast %cst_144 : f32 to vector<16x128xf32>
    %548 = arith.addf %547, %546 : vector<16x128xf32>
    %549 = arith.divf %547, %548 : vector<16x128xf32>
    %550 = vector.extract_strided_slice %537 {offsets = [0, 256], sizes = [16, 128], strides = [1, 1]} : vector<16x512xf32> to vector<16x128xf32>
    %551 = math.tanh %550 : vector<16x128xf32>
    %552 = arith.mulf %549, %522 : vector<16x128xf32>
    %553 = arith.mulf %543, %551 : vector<16x128xf32>
    %554 = arith.addf %552, %553 : vector<16x128xf32>
    %555 = vector.extract_strided_slice %537 {offsets = [0, 384], sizes = [16, 128], strides = [1, 1]} : vector<16x512xf32> to vector<16x128xf32>
    %556 = arith.negf %555 : vector<16x128xf32>
    %557 = math.exp %556 : vector<16x128xf32>
    %cst_145 = arith.constant 1.000000e+00 : f32
    %558 = vector.broadcast %cst_145 : f32 to vector<16x128xf32>
    %559 = arith.addf %558, %557 : vector<16x128xf32>
    %560 = arith.divf %558, %559 : vector<16x128xf32>
    %561 = math.tanh %554 : vector<16x128xf32>
    %562 = arith.mulf %560, %561 : vector<16x128xf32>
    %c8_i32_146 = arith.constant 8 : i32
    %c0_147 = arith.constant 0 : index
    %c0_148 = arith.constant 0 : index
    %563 = vector.load %arg20[%c0_147, %c0_148] : memref<16x128xf32, #tpu.memory_space<vmem>>, vector<16x128xf32>
    tpu.vector_store %arg20[%c0_147, %c0_148], %562 {strides = array<i32>} : memref<16x128xf32, #tpu.memory_space<vmem>>, vector<16x128xf32>,
    %c0_149 = arith.constant 0 : index
    %c0_150 = arith.constant 0 : index
    %564 = vector.load %arg21[%c0_149, %c0_150] : memref<16x128xf32, #tpu.memory_space<vmem>>, vector<16x128xf32>
    tpu.vector_store %arg21[%c0_149, %c0_150], %554 {strides = array<i32>} : memref<16x128xf32, #tpu.memory_space<vmem>>, vector<16x128xf32>,
    %c0_i32_151 = arith.constant 0 : i32
    %565 = arith.cmpi eq, %arg1, %c0_i32_151 : i32
    %566 = arith.extui %565 : i1 to i32
    %c0_i32_152 = arith.constant 0 : i32
    %567 = arith.cmpi ne, %566, %c0_i32_152 : i32
    scf.if %567 {
      %c0_153 = arith.constant 0 : index
      %c0_154 = arith.constant 0 : index
      %568 = vector.load %arg20[%c0_153, %c0_154] : memref<16x128xf32, #tpu.memory_space<vmem>>, vector<16x128xf32>
      %c0_155 = arith.constant 0 : index
      %c0_156 = arith.constant 0 : index
      %c0_157 = arith.constant 0 : index
      %569 = vector.load %arg9[%c0_155, %c0_156, %c0_157] : memref<1x16x5xf32, #tpu.memory_space<vmem>>, vector<1x16x5xf32>
      %570 = vector.shape_cast %569 : vector<1x16x5xf32> to vector<16x5xf32>
      %c0_158 = arith.constant 0 : index
      %c0_159 = arith.constant 0 : index
      %571 = vector.load %arg10[%c0_158, %c0_159] : memref<5x16xf32, #tpu.memory_space<vmem>>, vector<5x16xf32>
      %cst_160 = arith.constant dense<0.000000e+00> : vector<16x16xf32>
      %572 = tpu.matmul %570, %571, %cst_160 {dimension_numbers = #tpu.dot_dimension_numbers<[1], [0], [0], [1], [0, 0, 1, 1], [], []>} : vector<16x5xf32>, vector<5x16xf32>, vector<16x16xf32> -> vector<16x16xf32>
      %c0_161 = arith.constant 0 : index
      %c0_162 = arith.constant 0 : index
      %573 = vector.load %arg11[%c0_161, %c0_162] : memref<1x16xf32, #tpu.memory_space<vmem>>, vector<1x16xf32>
      %574 = vector.broadcast %573 : vector<1x16xf32> to vector<16x16xf32>
      %575 = arith.addf %572, %574 : vector<16x16xf32>
      %c0_163 = arith.constant 0 : index
      %c0_164 = arith.constant 0 : index
      %576 = vector.load %arg12[%c0_163, %c0_164] : memref<128x3xf32, #tpu.memory_space<vmem>>, vector<128x3xf32>
      %cst_165 = arith.constant dense<0.000000e+00> : vector<16x3xf32>
      %577 = tpu.matmul %568, %576, %cst_165 {dimension_numbers = #tpu.dot_dimension_numbers<[1], [0], [0], [1], [0, 0, 1, 1], [], []>} : vector<16x128xf32>, vector<128x3xf32>, vector<16x3xf32> -> vector<16x3xf32>
      %c0_166 = arith.constant 0 : index
      %c0_167 = arith.constant 0 : index
      %578 = vector.load %arg13[%c0_166, %c0_167] : memref<16x3xf32, #tpu.memory_space<vmem>>, vector<16x3xf32>
      %cst_168 = arith.constant dense<0.000000e+00> : vector<16x3xf32>
      %579 = tpu.matmul %575, %578, %cst_168 {dimension_numbers = #tpu.dot_dimension_numbers<[1], [0], [0], [1], [0, 0, 1, 1], [], []>} : vector<16x16xf32>, vector<16x3xf32>, vector<16x3xf32> -> vector<16x3xf32>
      %580 = arith.addf %577, %579 : vector<16x3xf32>
      %c0_169 = arith.constant 0 : index
      %c0_170 = arith.constant 0 : index
      %581 = vector.load %arg14[%c0_169, %c0_170] : memref<1x3xf32, #tpu.memory_space<vmem>>, vector<1x3xf32>
      %582 = vector.broadcast %581 : vector<1x3xf32> to vector<16x3xf32>
      %583 = arith.addf %580, %582 : vector<16x3xf32>
      %cst_171 = arith.constant 0.000000e+00 : f32
      %584 = vector.broadcast %cst_171 : f32 to vector<16x3xf32>
      %585 = arith.maximumf %583, %584 : vector<16x3xf32>
      %c0_172 = arith.constant 0 : index
      %c0_173 = arith.constant 0 : index
      %c0_174 = arith.constant 0 : index
      %586 = vector.load %arg15[%c0_172, %c0_173, %c0_174] : memref<1x16x3xf32, #tpu.memory_space<vmem>>, vector<1x16x3xf32>
      %587 = vector.shape_cast %586 : vector<1x16x3xf32> to vector<16x3xf32>
      %588 = vector.shape_cast %585 : vector<16x3xf32> to vector<1x16x3xf32>
      tpu.vector_store %arg15[%c0_172, %c0_173, %c0_174], %588 {strides = array<i32>} : memref<1x16x3xf32, #tpu.memory_space<vmem>>, vector<1x16x3xf32>,
    } else {
    }
    return
  }
  func.func @transform_0(%arg0: i32, %arg1: i32) -> (i32, i32, i32) {
    %c0_i32 = arith.constant 0 : i32
    %c0_i32_0 = arith.constant 0 : i32
    return %arg0, %arg1, %c0_i32 : i32, i32, i32
  }
  func.func @transform_1(%arg0: i32, %arg1: i32) -> (i32, i32) {
    %c0_i32 = arith.constant 0 : i32
    %c0_i32_0 = arith.constant 0 : i32
    %c0_i32_1 = arith.constant 0 : i32
    return %c0_i32, %c0_i32_0 : i32, i32
  }
  func.func @transform_2(%arg0: i32, %arg1: i32) -> (i32, i32) {
    %c0_i32 = arith.constant 0 : i32
    %c0_i32_0 = arith.constant 0 : i32
    %c0_i32_1 = arith.constant 0 : i32
    return %c0_i32, %c0_i32_0 : i32, i32
  }
  func.func @transform_3(%arg0: i32, %arg1: i32) -> (i32, i32) {
    %c0_i32 = arith.constant 0 : i32
    %c0_i32_0 = arith.constant 0 : i32
    %c0_i32_1 = arith.constant 0 : i32
    return %c0_i32, %c0_i32_0 : i32, i32
  }
  func.func @transform_4(%arg0: i32, %arg1: i32) -> (i32, i32) {
    %c0_i32 = arith.constant 0 : i32
    %c0_i32_0 = arith.constant 0 : i32
    %c0_i32_1 = arith.constant 0 : i32
    return %c0_i32, %c0_i32_0 : i32, i32
  }
  func.func @transform_5(%arg0: i32, %arg1: i32) -> (i32, i32) {
    %c0_i32 = arith.constant 0 : i32
    %c0_i32_0 = arith.constant 0 : i32
    %c0_i32_1 = arith.constant 0 : i32
    return %c0_i32, %c0_i32_0 : i32, i32
  }
  func.func @transform_6(%arg0: i32, %arg1: i32) -> (i32, i32) {
    %c0_i32 = arith.constant 0 : i32
    %c0_i32_0 = arith.constant 0 : i32
    %c0_i32_1 = arith.constant 0 : i32
    return %c0_i32, %c0_i32_0 : i32, i32
  }
  func.func @transform_7(%arg0: i32, %arg1: i32) -> (i32, i32, i32) {
    %c0_i32 = arith.constant 0 : i32
    %c0_i32_0 = arith.constant 0 : i32
    %c0_i32_1 = arith.constant 0 : i32
    return %arg0, %c0_i32, %c0_i32_0 : i32, i32, i32
  }
  func.func @transform_8(%arg0: i32, %arg1: i32) -> (i32, i32) {
    %c0_i32 = arith.constant 0 : i32
    %c0_i32_0 = arith.constant 0 : i32
    %c0_i32_1 = arith.constant 0 : i32
    return %c0_i32, %c0_i32_0 : i32, i32
  }
  func.func @transform_9(%arg0: i32, %arg1: i32) -> (i32, i32) {
    %c0_i32 = arith.constant 0 : i32
    %c0_i32_0 = arith.constant 0 : i32
    %c0_i32_1 = arith.constant 0 : i32
    return %c0_i32, %c0_i32_0 : i32, i32
  }
  func.func @transform_10(%arg0: i32, %arg1: i32) -> (i32, i32) {
    %c0_i32 = arith.constant 0 : i32
    %c0_i32_0 = arith.constant 0 : i32
    %c0_i32_1 = arith.constant 0 : i32
    return %c0_i32, %c0_i32_0 : i32, i32
  }
  func.func @transform_11(%arg0: i32, %arg1: i32) -> (i32, i32) {
    %c0_i32 = arith.constant 0 : i32
    %c0_i32_0 = arith.constant 0 : i32
    %c0_i32_1 = arith.constant 0 : i32
    return %c0_i32, %c0_i32_0 : i32, i32
  }
  func.func @transform_12(%arg0: i32, %arg1: i32) -> (i32, i32) {
    %c0_i32 = arith.constant 0 : i32
    %c0_i32_0 = arith.constant 0 : i32
    %c0_i32_1 = arith.constant 0 : i32
    return %c0_i32, %c0_i32_0 : i32, i32
  }
  func.func @transform_13(%arg0: i32, %arg1: i32) -> (i32, i32, i32) {
    %c0_i32 = arith.constant 0 : i32
    %c0_i32_0 = arith.constant 0 : i32
    %c0_i32_1 = arith.constant 0 : i32
    return %arg0, %c0_i32, %c0_i32_0 : i32, i32, i32
  }
}

</mosaic_0001>

<bundles_post_ra>
// kernel: rear_lstm_forward.1
= control target key start
LH: loop header
LB: loop body
LE: loop exit
PB: predicated region body
PF: predicated region fallthrough
CT: control target
= control target key end

     0   :  { %18 = vsyncpa [#allocation9], 0  ;;  %s7479_s0 = inlined_call_operand.vmem [shape: f32[1,128,10], index: 0, kind: input, shape index: {}]   ;;  %s7480_s1 = inlined_call_operand.vmem [shape: bf16[10,512], index: 1, kind: input, shape index: {}]   ;;  %s7481_s2 = inlined_call_operand.vmem [shape: bf16[128,512], index: 2, kind: input, shape index: {}]   ;;  %s7482_s3 = inlined_call_operand.vmem [shape: f32[1,512], index: 3, kind: input, shape index: {}]   ;;  %s7483_s4 = inlined_call_operand.hbm [shape: bf16[128,512], index: 4, kind: input, shape index: {}]   ;;  %s7484_s5 = inlined_call_operand.hbm [shape: bf16[128,512], index: 5, kind: input, shape index: {}]   ;;  %s7485_s6 = inlined_call_operand.hbm [shape: f32[1,512], index: 6, kind: input, shape index: {}]   ;;  %s7486_s7 = inlined_call_operand.vmem [shape: f32[1,16,5], index: 7, kind: input, shape index: {}]   ;;  %s7487_s8 = inlined_call_operand.vmem [shape: f32[5,16], index: 8, kind: input, shape index: {}]   ;;  %s7488_s9 = inlined_call_operand.hbm [shape: f32[1,16], index: 9, kind: input, shape index: {}]   ;;  %s7489_s10 = inlined_call_operand.vmem [shape: f32[128,3], index: 10, kind: input, shape index: {}]   ;;  %s7490_s11 = inlined_call_operand.vmem [shape: f32[16,3], index: 11, kind: input, shape index: {}]   ;;  %s7491_s12 = inlined_call_operand.hbm [shape: f32[1,3], index: 12, kind: input, shape index: {}]   ;;  %s7492_s13 = inlined_call_operand.vmem [shape: f32[1,16,3], index: 13, kind: output, shape index: {}]  }
   0x1   :  { %19 = vsyncpa [#allocation11], 0 }
   0x2   :  { %20 = vsyncpa [#allocation14], 0  ;;  %s5528_s25 = smov [#allocation10]   ;;  %s5529_s27 = smov [#allocation13]  }
   0x3   :  { %s46_s26 = sshll.u32 %s5528_s25, 4  ;;  %s73_s28 = sshll.u32 %s5529_s27, 4  ;;  %s47_s26 = int_to_ptr.vmem [resolvable:$true] %s46_s26  ;;  %s74_s28 = int_to_ptr.vmem [resolvable:$true] %s73_s28 }
   0x4   :  { %s5430_s29 = scalar_lea.vmem %s47_s26, 4096  ;;  %p5435_p1 = scmp.lt.s32.totalorder %s47_s26, %s47_s26 }
   0x5   :  { %p5431_p0 = scmp.ne.s32.totalorder %s47_s26, %s5430_s29  ;;  %p5436_p2 = scmp.lt.s32.totalorder %s5430_s29, %s5430_s29 }
   0x7   :  { %p5437_p3 = por %p5436_p2, %p5435_p1 }
   0x9   :  { %p5438_p4 = pnand %p5437_p3, %p5431_p0 }
   0xb   :  { %5441 = shalt.err (!%p5438_p4)
}
   0xc   :  { %s5530_s30 = smov 256   ;;  %s5531_s14 = smov 16  }
   0xd   :  { %52 = dma.hbm_to_vmem [thread:$0]  %s7484_s5, 4096, %s47_s26, [#allocation11], %s5530_s30, %s5530_s30, %s5531_s14  }
   0xe   :  { %s5450_s17 = scalar_lea.vmem %s74_s28, 16  ;;  %s5454_s18 = scalar_lea.vmem %s74_s28, 32 }
   0xf   :  { %p5451_p5 = scmp.ne.s32.totalorder %s74_s28, %s5450_s17  ;;  %p5455_p6 = scmp.lt.s32.totalorder %s74_s28, %s74_s28 }
  0x10   :  { %p5456_p7 = scmp.lt.s32.totalorder %s5454_s18, %s5450_s17 }
  0x12   :  { %p5457_p8 = por %p5456_p7, %p5455_p6 }
  0x14   :  { %p5458_p9 = pnand %p5457_p8, %p5451_p5 }
  0x16   :  { %5461 = shalt.err (!%p5458_p9)
}
  0x17   :  { %76 = dma.hbm_to_vmem [thread:$0]  %s7488_s9, 16, %s74_s28, [#allocation14]  }
  0x18   :  { %s5532_s21 = smov [#allocation8]   ;;  %s5533_s23 = smov [#allocation12]  }
  0x19   :  { %s34_s22 = sshll.u32 %s5532_s21, 4  ;;  %s59_s24 = sshll.u32 %s5533_s23, 4  ;;  %s35_s22 = int_to_ptr.vmem [resolvable:$true] %s34_s22  ;;  %s60_s24 = int_to_ptr.vmem [resolvable:$true] %s59_s24 }
  0x1a   :  { %s5470_s25 = scalar_lea.vmem %s35_s22, 4096  ;;  %p5475_p11 = scmp.lt.s32.totalorder %s35_s22, %s35_s22 }
  0x1b   :  { %p5471_p10 = scmp.ne.s32.totalorder %s35_s22, %s5470_s25  ;;  %p5476_p12 = scmp.lt.s32.totalorder %s5470_s25, %s5470_s25 }
  0x1d   :  { %p5477_p13 = por %p5476_p12, %p5475_p11 }
  0x1f   :  { %p5478_p0 = pnand %p5477_p13, %p5471_p10 }
  0x21   :  { %5481 = shalt.err (!%p5478_p0)
}
  0x22   :  { %40 = dma.hbm_to_vmem [thread:$0]  %s7483_s4, 4096, %s35_s22, [#allocation9], %s5530_s30, %s5530_s30, %s5531_s14  }
  0x23   :  { %s5490_s27 = scalar_lea.vmem %s60_s24, 64  ;;  %p5495_p2 = scmp.lt.s32.totalorder %s60_s24, %s60_s24 }
  0x24   :  { %p5491_p1 = scmp.ne.s32.totalorder %s60_s24, %s5490_s27  ;;  %p5496_p3 = scmp.lt.s32.totalorder %s5490_s27, %s5490_s27 }
  0x26   :  { %p5497_p4 = por %p5496_p3, %p5495_p2 }
  0x28   :  { %p5498_p5 = pnand %p5497_p4, %p5491_p1 }
  0x2a   :  { %5501 = shalt.err (!%p5498_p5)
}
  0x2b   :  { %62 = dma.hbm_to_vmem [thread:$0]  %s7485_s6, 64, %s60_s24, [#allocation11]  }
  0x2c   :  { %s5534_s29 = smov [#allocation15]  }
  0x2d   :  { %s87_s15 = sshll.u32 %s5534_s29, 4  ;;  %s88_s15 = int_to_ptr.vmem [resolvable:$true] %s87_s15 }
  0x2e   :  { %s5510_s16 = scalar_lea.vmem %s88_s15, 16  ;;  %s5514_s17 = scalar_lea.vmem %s88_s15, 32 }
  0x2f   :  { %p5511_p6 = scmp.ne.s32.totalorder %s88_s15, %s5510_s16  ;;  %p5515_p7 = scmp.lt.s32.totalorder %s88_s15, %s88_s15 }
  0x30   :  { %p5516_p8 = scmp.lt.s32.totalorder %s5514_s17, %s5510_s16 }
  0x32   :  { %p5517_p9 = por %p5516_p8, %p5515_p7 }
  0x34   :  { %p5518_p10 = pnand %p5517_p9, %p5511_p6 }
  0x36   :  { %5521 = shalt.err (!%p5518_p10)
}
  0x37   :  { %90 = dma.hbm_to_vmem [thread:$0]  %s7491_s12, 16, %s88_s15, [#allocation14]  }
  0x38   :  { %5522 = dma.done.wait [#allocation9], 4096  }
  0x39   :  { %5523 = vsyncadd [#allocation9], 4294963200 }
  0x3a   :  { %5524 = dma.done.wait [#allocation11], 4160  }
  0x3b   :  { %5525 = vsyncadd [#allocation11], 4294963136 }
  0x3c   :  { %5526 = dma.done.wait [#allocation14], 32  }
  0x3d   :  { %5527 = vsyncadd [#allocation14], 4294967264  ;;  %v7497_v0 = vmov 0   ;;  %vm210_vm0 = vcmask 1044480   ;;  %v119_v3 = vld [vmem:[%s7479_s0] sm:$0xff]  ;;  %v120_v4 = vld [vmem:[%s7479_s0 + $0x8] sm:$0xff] }
  0x3e   :  { %255 = vmatprep.mubr.bf16.mxu0 %v7497_v0  ;;  %315 = vmatprep.mubr.bf16.mxu1 %v7497_v0  ;;  %v4688_v1 = vld [vmem:[%s7480_s1 + $0x4] ss:$16 sps:$4 sm:$0x1f]   ;;  %v4690_v2 = vld [vmem:[%s7480_s1] ss:$16 sps:$4 sm:$0x1f]   ;;  %v135_v8 = vpack.c.bf16 %v120_v4, %v119_v3 }
  0x3f   :  { %4308 = vmatprep.subr.msk.bf16.mxu0 %vm210_vm0, %v4688_v1  ;;  %4677 = vmatprep.subr.msk.bf16.mxu1 %vm210_vm0, %v4688_v1  ;;  %v131_v5 = vld [vmem:[%s7479_s0 + $0x60] sm:$0xff]  ;;  %v132_v6 = vld [vmem:[%s7479_s0 + $0x68] sm:$0xff]  ;;  %v212_v7 = vsel %vm210_vm0, %v4690_v2, 0  ;;  %vm185_vm1 = vcmask 80896   ;;  %v121_v13 = vld [vmem:[%s7479_s0 + $0x10] sm:$0xff]  ;;  %v7495_v63 = vmov 0.0|0.0   ;;  %v149_v1 = vlaneseq }
  0x40   :  { %v5645_v9 = vpack.c.bf16 %v132_v6, %v131_v5  ;;  %v4691_v10 = vld [vmem:[%s7480_s1 + $0xc] ss:$16 sps:$4 sm:$0x1f]   ;;  %238 = vmatpush1.bf16.msra.mxu0 %v212_v7  ;;  %4678 = vmatpush1.bf16.msra.mxu1 %v212_v7  ;;  %v4693_v11 = vld [vmem:[%s7480_s1 + $0x8] ss:$16 sps:$4 sm:$0x1f]  }
  0x41   :  { %4317 = vmatprep.subr.msk.bf16.mxu1 %vm210_vm0, %v4691_v10  ;;  %v218_v12 = vsel %vm210_vm0, %v4693_v11, 0  ;;  %v5661_v14 = vld [vmem:[%s7481_s2 + $0xe4] ss:$16 sps:$4 sm:$0xff]   ;;  %v5666_v15 = vld [vmem:[%s7481_s2 + $0xe0] ss:$16 sps:$4 sm:$0xff]   ;;  %v122_v16 = vld [vmem:[%s7479_s0 + $0x18] sm:$0xff] }
  0x42   :  { %v133_v17 = vld [vmem:[%s7479_s0 + $0x70] sm:$0xff]  ;;  %v134_v18 = vld [vmem:[%s7479_s0 + $0x78] sm:$0xff]  ;;  %721 = vmatprep.subr.bf16.mxu0 %v5661_v14  ;;  %v136_v22 = vpack.c.bf16 %v122_v16, %v121_v13  ;;  %v123_v26 = vld [vmem:[%s7479_s0 + $0x20] sm:$0xff]  ;;  %v5959_v2 = vshrl.u32 %v149_v1, 7  ;;  %vm4016_vm2 = vcmask 39936   ;;  %vm4119_vm3 = vcmask 130048  }
  0x43   :  { %4309 = vmatmul.mubr.msk.bf16.vlgmr.msra.gmra.mxu0 %vm185_vm1, %v135_v8  ;;  %4315 = vmatmul.mubr.msk.bf16.vlgmr.msra.gmra.mxu1 %vm185_vm1, %v5645_v9  ;;  %v5684_v19 = vld [vmem:[%s7481_s2 + $0xec] ss:$16 sps:$4 sm:$0xff]   ;;  %v5691_v20 = vld [vmem:[%s7481_s2 + $0xc4] ss:$16 sps:$4 sm:$0xff]   ;;  %v5698_v21 = vld [vmem:[%s7481_s2 + $0xc0] ss:$16 sps:$4 sm:$0xff]   ;;  %v5700_v23 = vpack.c.bf16 %v134_v18, %v133_v17 }
  0x44   :  { %351 = vmatpush1.bf16.msra.mxu1 %v218_v12  ;;  %265 = vmatprep.mubr.bf16.mxu0 %v7497_v0  ;;  %v5706_v24 = vld [vmem:[%s7481_s2 + $0xa4] ss:$16 sps:$4 sm:$0xff]   ;;  %v5712_v25 = vld [vmem:[%s7481_s2 + $0xa0] ss:$16 sps:$4 sm:$0xff]   ;;  %v124_v28 = vld [vmem:[%s7479_s0 + $0x28] sm:$0xff]  ;;  %7503 = vst [vmem:[#allocation19_spill] sm:$0xff] %v5959_v2 }
  0x45   :  { %325 = vmatprep.mubr.bf16.mxu1 %v7497_v0  ;;  %722 = vmatpush1.bf16.msra.mxu0 %v5666_v15  ;;  %v5723_v27 = vld [vmem:[%s7481_s2 + $0x84] ss:$16 sps:$4 sm:$0xff]   ;;  %v5735_v29 = vld [vmem:[%s7481_s2 + $0x80] ss:$16 sps:$4 sm:$0xff]   ;;  %v137_v30 = vpack.c.bf16 %v124_v28, %v123_v26  ;;  %v5741_v31 = vld [vmem:[%s7481_s2 + $0xe8] ss:$16 sps:$4 sm:$0xff]  }
  0x46   :  { %764 = vmatprep.subr.bf16.mxu1 %v5684_v19  ;;  %723 = vmatprep.subr.bf16.mxu0 %v5691_v20  ;;  %v5746_v32 = vld [vmem:[%s7481_s2 + $0xcc] ss:$16 sps:$4 sm:$0xff]   ;;  %v125_v33 = vld [vmem:[%s7479_s0 + $0x30] sm:$0xff]  ;;  %v5757_v35 = vld [vmem:[%s7481_s2 + $0xc8] ss:$16 sps:$4 sm:$0xff]   ;;  %v7494_v3 = vsub.s32 0, %v5959_v2 }
  0x47   :  { %v126_v34 = vld [vmem:[%s7479_s0 + $0x38] sm:$0xff]  ;;  %v5763_v36 = vld [vmem:[%s7481_s2 + $0x64] ss:$16 sps:$4 sm:$0xff]   ;;  %v5770_v37 = vld [vmem:[%s7481_s2 + $0x60] ss:$16 sps:$4 sm:$0xff]   ;;  %v7493_v5 = vsub.s32 1, %v5959_v2 }
  0x48   :  { %v5777_v38 = vld [vmem:[%s7481_s2 + $0x44] ss:$16 sps:$4 sm:$0xff]   ;;  %v5784_v39 = vld [vmem:[%s7481_s2 + $0xac] ss:$16 sps:$4 sm:$0xff]   ;;  %v138_v40 = vpack.c.bf16 %v126_v34, %v125_v33  ;;  %v5792_v41 = vld [vmem:[%s7481_s2 + $0xa8] ss:$16 sps:$4 sm:$0xff]  }
  0x49   :  { %724 = vmatpush1.bf16.msra.mxu0 %v5698_v21  ;;  %v5799_v42 = vld [vmem:[%s7481_s2 + $0x40] ss:$16 sps:$4 sm:$0xff]   ;;  %v5804_v43 = vld [vmem:[%s7481_s2 + $0x24] ss:$16 sps:$4 sm:$0xff]   ;;  %v5809_v44 = vld [vmem:[%s7481_s2 + $0x8c] ss:$16 sps:$4 sm:$0xff]  }
  0x4a   :  { %725 = vmatprep.subr.bf16.mxu0 %v5706_v24  ;;  %v127_v45 = vld [vmem:[%s7479_s0 + $0x40] sm:$0xff]  ;;  %v128_v46 = vld [vmem:[%s7479_s0 + $0x48] sm:$0xff]  ;;  %v129_v55 = vld [vmem:[%s7479_s0 + $0x50] sm:$0xff]  ;;  %vm4287_vm4 = vcmask 23552  }
  0x4b   :  { %4310 = vmatmul.mubr.msk.bf16.gmra.mxu0 %vm185_vm1, %v136_v22  ;;  %4316 = vmatmul.mubr.msk.bf16.gmra.mxu1 %vm185_vm1, %v5700_v23  ;;  %v5822_v47 = vld [vmem:[%s7481_s2 + $0x20] ss:$16 sps:$4 sm:$0xff]   ;;  %v5827_v48 = vld [vmem:[%s7481_s2 + $0x88] ss:$16 sps:$4 sm:$0xff]   ;;  %v5834_v49 = vld [vmem:[%s7481_s2 + $0x4] ss:$16 sps:$4 sm:$0xff]   ;;  %v139_v51 = vpack.c.bf16 %v128_v46, %v127_v45 }
  0x4c   :  { %275 = vmatprep.mubr.bf16.mxu0 %v7497_v0  ;;  %368 = vmatprep.mubr.bf16.mxu1 %v7497_v0  ;;  %v5839_v50 = vld [vmem:[%s7481_s2 + $0x6c] ss:$16 sps:$4 sm:$0xff]   ;;  %v5848_v52 = vld [vmem:[%s7481_s2] ss:$16 sps:$4 sm:$0xff]   ;;  %v5853_v53 = vld [vmem:[%s7481_s2 + $0x68] ss:$16 sps:$4 sm:$0xff]  }
  0x4d   :  { %726 = vmatpush1.bf16.msra.mxu0 %v5712_v25  ;;  %v5858_v54 = vld [vmem:[%s7481_s2 + $0x4c] ss:$16 sps:$4 sm:$0xff]   ;;  %v5875_v57 = vld [vmem:[%s7481_s2 + $0x48] ss:$16 sps:$4 sm:$0xff]   ;;  %v147_v4 = vld [vmem:[%s7482_s3] sm:$0xf] }
  0x4e   :  { %727 = vmatprep.subr.bf16.mxu0 %v5723_v27  ;;  %v130_v56 = vld [vmem:[%s7479_s0 + $0x58] sm:$0xff]  ;;  %v5968_v6 = vrot.slane %v147_v4, %v7494_v3  ;;  %v5972_v7 = vrot.slane %v147_v4, %v7493_v5 }
  0x4f   :  { %v5882_v58 = vld [vmem:[%s7481_s2 + $0x2c] ss:$16 sps:$4 sm:$0xff]   ;;  %v140_v59 = vpack.c.bf16 %v130_v56, %v129_v55  ;;  %v5891_v60 = vld [vmem:[%s7481_s2 + $0x28] ss:$16 sps:$4 sm:$0xff]  }
  0x50   :  { %v5896_v61 = vld [vmem:[%s7481_s2 + $0xc] ss:$16 sps:$4 sm:$0xff]   ;;  %v5905_v62 = vld [vmem:[%s7481_s2 + $0x8] ss:$16 sps:$4 sm:$0xff]  }
  0x51   :  { %728 = vmatpush1.bf16.msra.mxu0 %v5735_v29 }
  0x52   :  { %729 = vmatprep.subr.bf16.mxu0 %v5763_v36 }
  0x53   :  { %4311 = vmatmul.mubr.msk.bf16.gmra.mxu0 %vm185_vm1, %v137_v30  ;;  %4318 = vmatmul.mubr.msk.bf16.vlgmr.msra.gmra.mxu1 %vm185_vm1, %v135_v8 }
  0x54   :  { %765 = vmatpush1.bf16.msra.mxu1 %v5741_v31  ;;  %285 = vmatprep.mubr.bf16.mxu0 %v7497_v0 }
  0x55   :  { %378 = vmatprep.mubr.bf16.mxu1 %v7497_v0  ;;  %766 = vmatprep.subr.bf16.mxu1 %v5746_v32 }
  0x56   :  { %730 = vmatpush1.bf16.msra.mxu0 %v5770_v37 }
  0x57   :  { %731 = vmatprep.subr.bf16.mxu0 %v5777_v38 }
  0x58   :  { %767 = vmatpush1.bf16.msra.mxu1 %v5757_v35 }
  0x59   :  { %768 = vmatprep.subr.bf16.mxu1 %v5784_v39 }
  0x5a   :  { %732 = vmatpush1.bf16.msra.mxu0 %v5799_v42 }
  0x5b   :  { %4312 = vmatmul.mubr.msk.bf16.gmra.mxu0 %vm185_vm1, %v138_v40  ;;  %4319 = vmatmul.mubr.msk.bf16.gmra.mxu1 %vm185_vm1, %v136_v22 }
  0x5c   :  { %295 = vmatprep.mubr.bf16.mxu0 %v7497_v0  ;;  %388 = vmatprep.mubr.bf16.mxu1 %v7497_v0 }
  0x5d   :  { %769 = vmatpush1.bf16.msra.mxu1 %v5792_v41  ;;  %733 = vmatprep.subr.bf16.mxu0 %v5804_v43 }
  0x5e   :  { %770 = vmatprep.subr.bf16.mxu1 %v5809_v44  ;;  %734 = vmatpush1.bf16.msra.mxu0 %v5822_v47 }
  0x5f   :  { %735 = vmatprep.subr.bf16.mxu0 %v5834_v49 }
  0x61   :  { %771 = vmatpush1.bf16.msra.mxu1 %v5827_v48 }
  0x62   :  { %772 = vmatprep.subr.bf16.mxu1 %v5839_v50  ;;  %736 = vmatpush1.bf16.msra.mxu0 %v5848_v52 }
  0x63   :  { %4313 = vmatmul.mubr.msk.bf16.gmra.mxu0 %vm185_vm1, %v139_v51  ;;  %4320 = vmatmul.mubr.msk.bf16.gmra.mxu1 %vm185_vm1, %v137_v30 }
  0x64   :  { %305 = vmatprep.mubr.bf16.mxu0 %v7497_v0  ;;  %398 = vmatprep.mubr.bf16.mxu1 %v7497_v0 }
  0x65   :  { %773 = vmatpush1.bf16.msra.mxu1 %v5853_v53  ;;  %884 = vmatprep.subr.bf16.mxu0 %v5661_v14 }
  0x66   :  { %774 = vmatprep.subr.bf16.mxu1 %v5858_v54 }
  0x69   :  { %775 = vmatpush1.bf16.msra.mxu1 %v5875_v57 }
  0x6a   :  { %776 = vmatprep.subr.bf16.mxu1 %v5882_v58 }
  0x6b   :  { %4314 = vmatmul.mubr.msk.bf16.gmra.mxu0 %vm185_vm1, %v140_v59  ;;  %4321 = vmatmul.mubr.msk.bf16.gmra.mxu1 %vm185_vm1, %v138_v40 }
  0x6c   :  { %408 = vmatprep.mubr.bf16.mxu1 %v7497_v0  ;;  %753 = vmatprep.mubr.bf16.mxu0 %v7497_v0 }
  0x6d   :  { %777 = vmatpush1.bf16.msra.mxu1 %v5891_v60 }
  0x6e   :  { %778 = vmatprep.subr.bf16.mxu1 %v5896_v61 }
  0x71   :  { %779 = vmatpush1.bf16.msra.mxu1 %v5905_v62 }
  0x72   :  { %927 = vmatprep.subr.bf16.mxu1 %v5684_v19 }
  0x73   :  { %4322 = vmatmul.mubr.msk.bf16.gmra.mxu1 %vm185_vm1, %v139_v51  ;;  %754 = vmatmul.mubr.bf16.vlgmr.msra.gmra.mxu0 %v7495_v63 }
  0x74   :  { %418 = vmatprep.mubr.bf16.mxu1 %v7497_v0  ;;  %885 = vmatpush1.bf16.msra.mxu0 %v5666_v15 }
  0x75   :  { %886 = vmatprep.subr.bf16.mxu0 %v5691_v20  ;;  %916 = vmatprep.mubr.bf16.mxu0 %v7497_v0 }
  0x78   :  { %887 = vmatpush1.bf16.msra.mxu0 %v5698_v21 }
  0x79   :  { %888 = vmatprep.subr.bf16.mxu0 %v5706_v24 }
  0x7b   :  { %4323 = vmatmul.mubr.msk.bf16.gmra.mxu1 %vm185_vm1, %v140_v59 }
  0x7c   :  { %428 = vmatprep.mubr.bf16.mxu1 %v7497_v0  ;;  %889 = vmatpush1.bf16.msra.mxu0 %v5712_v25 }
  0x7d   :  { %890 = vmatprep.subr.bf16.mxu0 %v5723_v27 }
  0x80   :  { %891 = vmatpush1.bf16.msra.mxu0 %v5735_v29 }
  0x81   :  { %892 = vmatprep.subr.bf16.mxu0 %v5763_v36 }
  0x83   :  { %4324 = vmatmul.mubr.msk.bf16.gmra.mxu1 %vm185_vm1, %v5645_v9 }
  0x84   :  { %438 = vmatprep.mubr.bf16.mxu1 %v7497_v0  ;;  %893 = vmatpush1.bf16.msra.mxu0 %v5770_v37 }
  0x85   :  { %894 = vmatprep.subr.bf16.mxu0 %v5777_v38 }
  0x88   :  { %895 = vmatpush1.bf16.msra.mxu0 %v5799_v42 }
  0x89   :  { %896 = vmatprep.subr.bf16.mxu0 %v5804_v43 }
  0x8b   :  { %4325 = vmatmul.mubr.msk.bf16.gmra.mxu1 %vm185_vm1, %v5700_v23 }
  0x8c   :  { %796 = vmatprep.mubr.bf16.mxu1 %v7497_v0  ;;  %897 = vmatpush1.bf16.msra.mxu0 %v5822_v47 }
  0x8d   :  { %898 = vmatprep.subr.bf16.mxu0 %v5834_v49 }
  0x90   :  { %899 = vmatpush1.bf16.msra.mxu0 %v5848_v52 }
  0x91   :  { %1048 = vmatprep.subr.bf16.mxu0 %v5661_v14 }
  0x93   :  { %797 = vmatmul.mubr.bf16.vlgmr.msra.gmra.mxu1 %v7495_v63 }
  0x94   :  { %928 = vmatpush1.bf16.msra.mxu1 %v5741_v31  ;;  %959 = vmatprep.mubr.bf16.mxu1 %v7497_v0 }
  0x95   :  { %929 = vmatprep.subr.bf16.mxu1 %v5746_v32 }
  0x98   :  { %930 = vmatpush1.bf16.msra.mxu1 %v5757_v35 }
  0x99   :  { %931 = vmatprep.subr.bf16.mxu1 %v5784_v39 }
  0x9c   :  { %932 = vmatpush1.bf16.msra.mxu1 %v5792_v41 }
  0x9d   :  { %933 = vmatprep.subr.bf16.mxu1 %v5809_v44 }
  0xa0   :  { %934 = vmatpush1.bf16.msra.mxu1 %v5827_v48 }
  0xa1   :  { %935 = vmatprep.subr.bf16.mxu1 %v5839_v50 }
  0xa4   :  { %936 = vmatpush1.bf16.msra.mxu1 %v5853_v53 }
  0xa5   :  { %937 = vmatprep.subr.bf16.mxu1 %v5858_v54 }
  0xa8   :  { %938 = vmatpush1.bf16.msra.mxu1 %v5875_v57 }
  0xa9   :  { %939 = vmatprep.subr.bf16.mxu1 %v5882_v58 }
  0xac   :  { %940 = vmatpush1.bf16.msra.mxu1 %v5891_v60 }
  0xad   :  { %941 = vmatprep.subr.bf16.mxu1 %v5896_v61 }
  0xb0   :  { %942 = vmatpush1.bf16.msra.mxu1 %v5905_v62 }
  0xb1   :  { %1091 = vmatprep.subr.bf16.mxu1 %v5684_v19 }
 0x103   :  { %v5974_v8 = vpop.f32.mrf.mxu0  ;;  %v317_v9 = vpop.f32.mrf.mxu1 }
 0x104   :  { %v5977_v10 = vadd.f32 %v317_v9, %v5968_v6 }
 0x105   :  { %v5979_v11 = vpop.f32.mrf.mxu0  ;;  %v319_v12 = vpop.f32.mrf.mxu1 }
 0x106   :  { %7504 = vst [vmem:[#allocation20_spill] sm:$0xff] %v5977_v10  ;;  %v5982_v13 = vadd.f32 %v319_v12, %v5972_v7 }
 0x107   :  { %v5984_v16 = vpop.f32.mrf.mxu0  ;;  %v321_v17 = vpop.f32.mrf.mxu1 }
 0x108   :  { %7505 = vst [vmem:[#allocation21_spill] sm:$0xff] %v5982_v13  ;;  %v5987_v18 = vadd.f32 %v321_v17, %v5968_v6 }
 0x109   :  { %v5989_v22 = vpop.f32.mrf.mxu0  ;;  %v5991_v23 = vpop.f32.mrf.mxu1 }
 0x10a   :  { %7506 = vst [vmem:[#allocation22_spill] sm:$0xff] %v5987_v18  ;;  %7507 = vst [vmem:[#allocation23_spill] sm:$0xff] %v5991_v23 }
 0x10b   :  { %v267_v26 = vpop.f32.mrf.mxu0  ;;  %v327_v28 = vpop.f32.mrf.mxu1 }
 0x10c   :  { %v5994_v30 = vadd.f32 %v267_v26, %v5968_v6  ;;  %v5997_v33 = vadd.f32 %v327_v28, %v5968_v6 }
 0x10d   :  { %v269_v34 = vpop.f32.mrf.mxu0  ;;  %v329_v40 = vpop.f32.mrf.mxu1 }
 0x10e   :  { %7508 = vst [vmem:[#allocation24_spill] sm:$0xff] %v5997_v33  ;;  %v6000_v45 = vadd.f32 %v269_v34, %v5972_v7  ;;  %v6003_v46 = vadd.f32 %v329_v40, %v5972_v7  ;;  %v7499_v40 = vsub.s32 2, %v5959_v2 }
 0x10f   :  { %v271_v51 = vpop.f32.mrf.mxu0  ;;  %v331_v55 = vpop.f32.mrf.mxu1 }
 0x110   :  { %7509 = vst [vmem:[#allocation25_spill] sm:$0xff] %v6003_v46  ;;  %v6006_v56 = vadd.f32 %v271_v51, %v5968_v6  ;;  %v6009_v59 = vadd.f32 %v331_v55, %v5968_v6  ;;  %v7502_v55 = vsub.s32 3, %v5959_v2 }
 0x111   :  { %v6011_v1 = vpop.f32.mrf.mxu0  ;;  %v6013_v9 = vpop.f32.mrf.mxu1 }
 0x112   :  { %7510 = vst [vmem:[#allocation26_spill] sm:$0xff] %v6009_v59  ;;  %7511 = vst [vmem:[#allocation27_spill] sm:$0xff] %v6013_v9  ;;  %v6041_v46 = vrot.slane %v147_v4, %v7502_v55 }
 0x113   :  { %v277_v12 = vpop.f32.mrf.mxu0  ;;  %v6015_v17 = vpop.f32.mrf.mxu1 }
 0x114   :  { %v6018_v26 = vadd.f32 %v277_v12, %v5968_v6  ;;  %v6037_v12 = vrot.slane %v147_v4, %v7499_v40 }
 0x115   :  { %v6020_v28 = vpop.f32.mrf.mxu0  ;;  %v6022_v34 = vpop.f32.mrf.mxu1 }
 0x116   :  { %7512 = vst [vmem:[#allocation28_spill] sm:$0xff] %v6018_v26  ;;  %7513 = vst [vmem:[#allocation29_spill] sm:$0xff] %v6020_v28 }
 0x117   :  { %v281_v51 = vpop.f32.mrf.mxu0  ;;  %v6025_v5 = vpop.f32.mrf.mxu1 }
 0x118   :  { %v6029_v3 = vadd.f32 %v281_v51, %v5968_v6 }
 0x119   :  { %v6031_v63 = vpop.f32.mrf.mxu0  ;;  %v6033_v0 = vpop.f32.mrf.mxu1 }
 0x11a   :  { %7514 = vst [vmem:[#allocation30_spill] sm:$0xff] %v6029_v3  ;;  %7515 = vst [vmem:[#allocation31_spill] sm:$0xff] %v6031_v63 }
 0x11b   :  { %v287_v59 = vpop.f32.mrf.mxu0  ;;  %v380_v9 = vpop.f32.mrf.mxu1 }
 0x11c   :  { %v6044_v33 = vadd.f32 %v287_v59, %v5968_v6  ;;  %v6047_v51 = vadd.f32 %v380_v9, %v6037_v12 }
 0x11d   :  { %v289_v18 = vpop.f32.mrf.mxu0  ;;  %v382_v23 = vpop.f32.mrf.mxu1 }
 0x11e   :  { %7516 = vst [vmem:[#allocation32_spill] sm:$0xff] %v6044_v33  ;;  %7517 = vst [vmem:[#allocation33_spill] sm:$0xff] %v6047_v51  ;;  %v6050_v13 = vadd.f32 %v289_v18, %v5972_v7  ;;  %v6053_v40 = vadd.f32 %v382_v23, %v6041_v46 }
 0x11f   :  { %v291_v10 = vpop.f32.mrf.mxu0  ;;  %v384_v3 = vpop.f32.mrf.mxu1 }
 0x120   :  { %7518 = vst [vmem:[#allocation34_spill] sm:$0xff] %v6050_v13  ;;  %v6056_v2 = vadd.f32 %v291_v10, %v5968_v6  ;;  %v6059_v4 = vadd.f32 %v384_v3, %v6037_v12 }
 0x121   :  { %v293_v59 = vpop.f32.mrf.mxu0  ;;  %v6061_v55 = vpop.f32.mrf.mxu1 }
 0x122   :  { %7519 = vst [vmem:[#allocation35_spill] sm:$0xff] %v6056_v2  ;;  %7520 = vst [vmem:[#allocation36_spill] sm:$0xff] %v6059_v4  ;;  %v6064_v9 = vadd.f32 %v293_v59, %v5972_v7 }
 0x123   :  { %7521 = vst [vmem:[#allocation37_spill] sm:$0xff] %v6061_v55  ;;  %v297_v33 = vpop.f32.mrf.mxu0  ;;  %v390_v18 = vpop.f32.mrf.mxu1 }
 0x124   :  { %7522 = vst [vmem:[#allocation38_spill] sm:$0xff] %v6064_v9  ;;  %v6067_v13 = vadd.f32 %v297_v33, %v5968_v6  ;;  %v6070_v23 = vadd.f32 %v390_v18, %v6037_v12 }
 0x125   :  { %v299_v63 = vpop.f32.mrf.mxu0  ;;  %v392_v10 = vpop.f32.mrf.mxu1 }
 0x126   :  { %7523 = vst [vmem:[#allocation39_spill] sm:$0xff] %v6067_v13  ;;  %7524 = vst [vmem:[#allocation40_spill] sm:$0xff] %v6070_v23  ;;  %v6073_v2 = vadd.f32 %v299_v63, %v5972_v7  ;;  %v6076_v3 = vadd.f32 %v392_v10, %v6041_v46 }
 0x127   :  { %v301_v26 = vpop.f32.mrf.mxu0  ;;  %v394_v28 = vpop.f32.mrf.mxu1 }
 0x128   :  { %7525 = vst [vmem:[#allocation41_spill] sm:$0xff] %v6073_v2  ;;  %7526 = vst [vmem:[#allocation42_spill] sm:$0xff] %v6076_v3  ;;  %v6079_v59 = vadd.f32 %v301_v26, %v5968_v6  ;;  %v6082_v9 = vadd.f32 %v394_v28, %v6037_v12 }
 0x129   :  { %v303_v33 = vpop.f32.mrf.mxu0  ;;  %v6084_v13 = vpop.f32.mrf.mxu1 }
 0x12a   :  { %7527 = vst [vmem:[#allocation43_spill] sm:$0xff] %v6079_v59  ;;  %7528 = vst [vmem:[#allocation44_spill] sm:$0xff] %v6082_v9  ;;  %v6087_v18 = vadd.f32 %v303_v33, %v5972_v7 }
 0x12b   :  { %7529 = vst [vmem:[#allocation45_spill] sm:$0xff] %v6084_v13  ;;  %v307_v23 = vpop.f32.mrf.mxu0  ;;  %v400_v63 = vpop.f32.mrf.mxu1 }
 0x12c   :  { %7530 = vst [vmem:[#allocation46_spill] sm:$0xff] %v6087_v18  ;;  %v6090_v2 = vadd.f32 %v307_v23, %v5968_v6  ;;  %v6093_v10 = vadd.f32 %v400_v63, %v6037_v12 }
 0x12d   :  { %v309_v3 = vpop.f32.mrf.mxu0  ;;  %v402_v26 = vpop.f32.mrf.mxu1 }
 0x12e   :  { %7531 = vst [vmem:[#allocation47_spill] sm:$0xff] %v6090_v2  ;;  %7532 = vst [vmem:[#allocation48_spill] sm:$0xff] %v6093_v10  ;;  %v6096_v59 = vadd.f32 %v309_v3, %v5972_v7  ;;  %v6099_v28 = vadd.f32 %v402_v26, %v6041_v46 }
 0x12f   :  { %v311_v9 = vpop.f32.mrf.mxu0  ;;  %v404_v13 = vpop.f32.mrf.mxu1 }
 0x130   :  { %7533 = vst [vmem:[#allocation49_spill] sm:$0xff] %v6096_v59  ;;  %7534 = vst [vmem:[#allocation50_spill] sm:$0xff] %v6099_v28  ;;  %v6102_v33 = vadd.f32 %v311_v9, %v5968_v6  ;;  %v6105_v18 = vadd.f32 %v404_v13, %v6037_v12  ;;  %v258_v9 = vadd.f32 %v5974_v8, %v5968_v6 }
 0x131   :  { %v313_v23 = vpop.f32.mrf.mxu0  ;;  %v6107_v2 = vpop.f32.mrf.mxu1  ;;  %v260_v13 = vadd.f32 %v5979_v11, %v5972_v7  ;;  %v264_v8 = vadd.f32 %v5989_v22, %v5972_v7 }
 0x132   :  { %7535 = vst [vmem:[#allocation51_spill] sm:$0xff] %v6102_v33  ;;  %7536 = vst [vmem:[#allocation52_spill] sm:$0xff] %v6105_v18  ;;  %v6110_v63 = vadd.f32 %v313_v23, %v5972_v7 }
 0x133   :  { %7537 = vst [vmem:[#allocation53_spill] sm:$0xff] %v6107_v2  ;;  %v410_v10 = vpop.f32.mrf.mxu1  ;;  %v755_v3 = vpop.f32.mrf.mxu0 }
 0x134   :  { %7538 = vst [vmem:[#allocation54_spill] sm:$0xff] %v6110_v63  ;;  %v6113_v59 = vadd.f32 %v410_v10, %v6037_v12  ;;  %v807_v2 = vadd.f32 %v755_v3, %v258_v9  ;;  %v262_v10 = vadd.f32 %v5984_v16, %v5968_v6 }
 0x135   :  { %v6115_v26 = vpop.f32.mrf.mxu1  ;;  %v757_v28 = vpop.f32.mrf.mxu0 }
 0x136   :  { %7539 = vst [vmem:[#allocation55_spill] sm:$0xff] %v6113_v59  ;;  %7540 = vst [vmem:[#allocation56_spill] sm:$0xff] %v6115_v26  ;;  %v808_v63 = vadd.f32 %v757_v28, %v260_v13  ;;  %v4358_v11 = vmul.f32 -1.442695, %v807_v2 }
 0x137   :  { %v414_v33 = vpop.f32.mrf.mxu1  ;;  %v759_v18 = vpop.f32.mrf.mxu0 }
 0x138   :  { %v6122_v23 = vadd.f32 %v414_v33, %v6037_v12  ;;  %v811_v55 = vadd.f32 %v759_v18, %v262_v10  ;;  %v4360_v33 = vmul.f32 -1.442695, %v808_v63  ;;  %4846 = vpow2.f32 %v4358_v11 }
 0x139   :  { %v416_v4 = vpop.f32.mrf.mxu1  ;;  %v761_v26 = vpop.f32.mrf.mxu0 }
 0x13a   :  { %7541 = vst [vmem:[#allocation57_spill] sm:$0xff] %v6122_v23  ;;  %v6127_v59 = vadd.f32 %v416_v4, %v6041_v46  ;;  %v812_v9 = vadd.f32 %v761_v26, %v264_v8  ;;  %v4359_v16 = vmul.f32 -1.442695, %v811_v55  ;;  %4848 = vpow2.f32 %v4360_v33 }
 0x13b   :  { %v420_v51 = vpop.f32.mrf.mxu1 }
 0x13c   :  { %v6132_v3 = vadd.f32 %v420_v51, %v6037_v12  ;;  %v4361_v22 = vmul.f32 -1.442695, %v812_v9  ;;  %4850 = vpow2.f32 %v4359_v16 }
 0x13d   :  { %v422_v28 = vpop.f32.mrf.mxu1 }
 0x13e   :  { %v6135_v13 = vadd.f32 %v422_v28, %v6041_v46  ;;  %4852 = vpow2.f32 %v4361_v22 }
 0x13f   :  { %v424_v6 = vpop.f32.mrf.mxu1 }
 0x140   :  { %v6138_v4 = vadd.f32 %v424_v6, %v6037_v12 }
 0x141   :  { %v426_v23 = vpop.f32.mrf.mxu1 }
 0x142   :  { %7542 = vst [vmem:[#allocation58_spill] sm:$0xff] %v6138_v4  ;;  %v6141_v2 = vadd.f32 %v426_v23, %v6041_v46 }
 0x143   :  { %v430_v51 = vpop.f32.mrf.mxu1 }
 0x144   :  { %v6144_v18 = vadd.f32 %v430_v51, %v6037_v12 }
 0x145   :  { %v432_v63 = vpop.f32.mrf.mxu1  ;;  %v4847_v9 = vpop.eup %4846 }
 0x146   :  { %7543 = vst [vmem:[#allocation59_spill] sm:$0xff] %v6144_v18  ;;  %v6147_v26 = vadd.f32 %v432_v63, %v6041_v46  ;;  %v821_v51 = vadd.f32 1.0, %v4847_v9 }
 0x147   :  { %v434_v55 = vpop.f32.mrf.mxu1  ;;  %v4849_v6 = vpop.eup %4848 }
 0x148   :  { %7544 = vst [vmem:[#allocation60_spill] sm:$0xff] %v6147_v26  ;;  %v6150_v10 = vadd.f32 %v434_v55, %v6037_v12  ;;  %4854 = vrcp.f32 %v821_v51 }
 0x149   :  { %v436_v8 = vpop.f32.mrf.mxu1  ;;  %v4851_v55 = vpop.eup %4850 }
 0x14a   :  { %7545 = vst [vmem:[#allocation61_spill] sm:$0xff] %v6150_v10  ;;  %v6153_v11 = vadd.f32 %v436_v8, %v6041_v46  ;;  %v833_v10 = vadd.f32 1.0, %v4849_v6  ;;  %v375_v6 = vadd.f32 %v6025_v5, %v6037_v12 }
 0x14b   :  { %v440_v23 = vpop.f32.mrf.mxu1  ;;  %v4853_v8 = vpop.eup %4852 }
 0x14c   :  { %7546 = vst [vmem:[#allocation62_spill] sm:$0xff] %v6153_v11  ;;  %v6156_v33 = vadd.f32 %v440_v23, %v6037_v12  ;;  %v371_v11 = vadd.f32 %v6015_v17, %v6037_v12  ;;  %4856 = vrcp.f32 %v833_v10  ;;  %v377_v17 = vadd.f32 %v6033_v0, %v6041_v46 }
 0x14d   :  { %v442_v28 = vpop.f32.mrf.mxu1 }
 0x14e   :  { %7547 = vst [vmem:[#allocation63_spill] sm:$0xff] %v6156_v33  ;;  %v6159_v16 = vadd.f32 %v442_v28, %v6041_v46  ;;  %v373_v28 = vadd.f32 %v6022_v34, %v6041_v46 }
 0x14f   :  { %v444_v22 = vpop.f32.mrf.mxu1 }
 0x150   :  { %7548 = vst [vmem:[#allocation64_spill] sm:$0xff] %v6159_v16  ;;  %v6162_v63 = vadd.f32 %v444_v22, %v6037_v12  ;;  %v822_v16 = vadd.f32 1.0, %v4851_v55  ;;  %v834_v22 = vadd.f32 1.0, %v4853_v8 }
 0x151   :  { %v446_v18 = vpop.f32.mrf.mxu1 }
 0x152   :  { %7549 = vst [vmem:[#allocation65_spill] sm:$0xff] %v6162_v63  ;;  %v6167_v23 = vadd.f32 %v446_v18, %v6041_v46 }
 0x153   :  { %v798_v33 = vpop.f32.mrf.mxu1 }
 0x154   :  { %7550 = vst [vmem:[#allocation66_spill] sm:$0xff] %v6167_v23  ;;  %v809_v9 = vadd.f32 %v798_v33, %v371_v11 }
 0x155   :  { %v800_v63 = vpop.f32.mrf.mxu1  ;;  %v4855_v11 = vpop.eup %4854 }
 0x156   :  { %4858 = vtanh.f32 %v809_v9  ;;  %v810_v26 = vadd.f32 %v800_v63, %v373_v28 }
 0x157   :  { %v802_v4 = vpop.f32.mrf.mxu1  ;;  %4860 = vrcp.f32 %v822_v16 }
 0x158   :  { %v4362_v18 = vmul.f32 -1.442695, %v810_v26  ;;  %v813_v23 = vadd.f32 %v802_v4, %v375_v6  ;;  %4862 = vrcp.f32 %v834_v22 }
 0x159   :  { %v804_v34 = vpop.f32.mrf.mxu1  ;;  %v4857_v33 = vpop.eup %4856 }
 0x15a   :  { %4864 = vpow2.f32 %v4362_v18  ;;  %v814_v51 = vadd.f32 %v804_v34, %v377_v17  ;;  %v841_v63 = vmul.f32 0.0, %v4857_v33 }
 0x15b   :  { %4866 = vtanh.f32 %v813_v23 }
 0x15c   :  { %v4363_v10 = vmul.f32 -1.442695, %v814_v51 }
 0x15e   :  { %4868 = vpow2.f32 %v4363_v10 }
 0x163   :  { %v4859_v55 = vpop.eup %4858 }
 0x164   :  { %v843_v5 = vmul.f32 %v4859_v55, %v4855_v11  ;;  %v4861_v12 = vpop.eup %4860  ;;  %v7551_v55 = vmov 0  }
 0x165   :  { %v4863_v8 = vpop.eup %4862 }
 0x166   :  { %v6175_v9 = vadd.f32 %v843_v5, %v841_v63  ;;  %v842_v4 = vmul.f32 0.0, %v4863_v8 }
 0x167   :  { %v4865_v28 = vpop.eup %4864 }
 0x168   :  { %v4867_v0 = vpop.eup %4866  ;;  %v853_v26 = vadd.f32 1.0, %v4865_v28  ;;  %4870 = vtanh.f32 %v6175_v9  ;;  %v7552_v28 = vld [vmem:[#allocation37_spill] sm:$0xff] }
 0x169   :  { %v844_v16 = vmul.f32 %v4867_v0, %v4861_v12  ;;  %v387_v0 = vadd.f32 %v7552_v28, %v6041_v46 }
 0x16a   :  { %4872 = vrcp.f32 %v853_v26 }
 0x16b   :  { %v4869_v22 = vpop.eup %4868  ;;  %v6178_v23 = vadd.f32 %v844_v16, %v842_v4 }
 0x16c   :  { %v854_v6 = vadd.f32 1.0, %v4869_v22 }
 0x16d   :  { %4874 = vtanh.f32 %v6178_v23 }
 0x16e   :  { %4876 = vrcp.f32 %v854_v6 }
 0x175   :  { %v4871_v17 = vpop.eup %4870 }
 0x177   :  { %v4873_v18 = vpop.eup %4872 }
 0x178   :  { %v861_v10 = vmul.f32 %v4873_v18, %v4871_v17 }
 0x17a   :  { %v4875_v34 = vpop.eup %4874 }
 0x17b   :  { %v4877_v51 = vpop.eup %4876 }
 0x17c   :  { %v862_v11 = vmul.f32 %v4877_v51, %v4875_v34 }
 0x17e   :  { %v863_v33 = vpack.c.bf16 %v862_v11, %v861_v10 }
 0x180   :  { %4569 = vst [vmem:[#allocation3] sm:$0xff] %v863_v33   ;;  %917 = vmatmul.mubr.bf16.vlgmr.msra.gmra.mxu0 %v863_v33  ;;  %960 = vmatmul.mubr.bf16.vlgmr.msra.gmra.mxu1 %v863_v33 }
 0x181   :  { %1049 = vmatpush1.bf16.msra.mxu0 %v5666_v15  ;;  %1092 = vmatpush1.bf16.msra.mxu1 %v5741_v31 }
 0x182   :  { %1050 = vmatprep.subr.bf16.mxu0 %v5691_v20  ;;  %1093 = vmatprep.subr.bf16.mxu1 %v5746_v32 }
 0x183   :  { %1080 = vmatprep.mubr.bf16.mxu0 %v7551_v55  ;;  %1123 = vmatprep.mubr.bf16.mxu1 %v7551_v55 }
 0x185   :  { %1051 = vmatpush1.bf16.msra.mxu0 %v5698_v21  ;;  %1094 = vmatpush1.bf16.msra.mxu1 %v5757_v35 }
 0x186   :  { %1052 = vmatprep.subr.bf16.mxu0 %v5706_v24  ;;  %1095 = vmatprep.subr.bf16.mxu1 %v5784_v39 }
 0x189   :  { %1053 = vmatpush1.bf16.msra.mxu0 %v5712_v25  ;;  %1096 = vmatpush1.bf16.msra.mxu1 %v5792_v41 }
 0x18a   :  { %1054 = vmatprep.subr.bf16.mxu0 %v5723_v27  ;;  %1097 = vmatprep.subr.bf16.mxu1 %v5809_v44 }
 0x18d   :  { %1055 = vmatpush1.bf16.msra.mxu0 %v5735_v29  ;;  %1098 = vmatpush1.bf16.msra.mxu1 %v5827_v48 }
 0x18e   :  { %1056 = vmatprep.subr.bf16.mxu0 %v5763_v36  ;;  %1099 = vmatprep.subr.bf16.mxu1 %v5839_v50  ;;  %v274_v36 = vadd.f32 %v6011_v1, %v5972_v7  ;;  %v7553_v1 = vld [vmem:[#allocation33_spill] sm:$0xff] }
 0x191   :  { %1057 = vmatpush1.bf16.msra.mxu0 %v5770_v37  ;;  %1100 = vmatpush1.bf16.msra.mxu1 %v5853_v53 }
 0x192   :  { %1058 = vmatprep.subr.bf16.mxu0 %v5777_v38  ;;  %1101 = vmatprep.subr.bf16.mxu1 %v5858_v54 }
 0x195   :  { %1059 = vmatpush1.bf16.msra.mxu0 %v5799_v42  ;;  %1102 = vmatpush1.bf16.msra.mxu1 %v5875_v57 }
 0x196   :  { %1060 = vmatprep.subr.bf16.mxu0 %v5804_v43  ;;  %1103 = vmatprep.subr.bf16.mxu1 %v5882_v58 }
 0x199   :  { %1061 = vmatpush1.bf16.msra.mxu0 %v5822_v47  ;;  %1104 = vmatpush1.bf16.msra.mxu1 %v5891_v60 }
 0x19a   :  { %1062 = vmatprep.subr.bf16.mxu0 %v5834_v49  ;;  %1105 = vmatprep.subr.bf16.mxu1 %v5896_v61 }
 0x19d   :  { %1063 = vmatpush1.bf16.msra.mxu0 %v5848_v52  ;;  %1106 = vmatpush1.bf16.msra.mxu1 %v5905_v62 }
 0x19e   :  { %1212 = vmatprep.subr.bf16.mxu0 %v5661_v14  ;;  %1255 = vmatprep.subr.bf16.mxu1 %v5684_v19 }
 0x240   :  { %v918_v15 = vpop.f32.mrf.mxu0  ;;  %v961_v21 = vpop.f32.mrf.mxu1 }
 0x241   :  { %v970_v20 = vadd.f32 %v918_v15, %v5994_v30  ;;  %v972_v26 = vadd.f32 %v961_v21, %v7553_v1 }
 0x242   :  { %v920_v24 = vpop.f32.mrf.mxu0  ;;  %v963_v38 = vpop.f32.mrf.mxu1 }
 0x243   :  { %v4366_v25 = vmul.f32 -1.442695, %v970_v20  ;;  %v971_v27 = vadd.f32 %v920_v24, %v6000_v45  ;;  %v973_v8 = vadd.f32 %v963_v38, %v6053_v40 }
 0x244   :  { %v922_v29 = vpop.f32.mrf.mxu0  ;;  %v965_v30 = vpop.f32.mrf.mxu1 }
 0x245   :  { %4878 = vpow2.f32 %v4366_v25  ;;  %v4368_v37 = vmul.f32 -1.442695, %v971_v27  ;;  %v974_v5 = vadd.f32 %v922_v29, %v6006_v56  ;;  %v4370_v4 = vmul.f32 -1.442695, %v973_v8  ;;  %v7554_v56 = vld [vmem:[#allocation36_spill] sm:$0xff] }
 0x246   :  { %v924_v14 = vpop.f32.mrf.mxu0  ;;  %v967_v45 = vpop.f32.mrf.mxu1  ;;  %v976_v6 = vadd.f32 %v965_v30, %v7554_v56 }
 0x247   :  { %4880 = vpow2.f32 %v4368_v37  ;;  %v4367_v19 = vmul.f32 -1.442695, %v974_v5  ;;  %v975_v12 = vadd.f32 %v924_v14, %v274_v36  ;;  %v977_v16 = vadd.f32 %v967_v45, %v387_v0 }
 0x249   :  { %4882 = vpow2.f32 %v4367_v19  ;;  %v4369_v63 = vmul.f32 -1.442695, %v975_v12  ;;  %v4371_v34 = vmul.f32 -1.442695, %v977_v16  ;;  %v6252_v16 = vld [vmem:[%s7481_s2 + $0xc0] ss:$16 sps:$4 sm:$0xff]  }
 0x24b   :  { %4884 = vpow2.f32 %v4369_v63 }
 0x24c   :  { %4886 = vtanh.f32 %v972_v26 }
 0x24d   :  { %4888 = vpow2.f32 %v4370_v4  ;;  %v6243_v4 = vld [vmem:[%s7481_s2 + $0xc4] ss:$16 sps:$4 sm:$0xff]  }
 0x252   :  { %v4879_v22 = vpop.eup %4878 }
 0x253   :  { %v984_v17 = vadd.f32 1.0, %v4879_v22 }
 0x254   :  { %v4881_v18 = vpop.eup %4880 }
 0x255   :  { %4890 = vrcp.f32 %v984_v17  ;;  %v996_v51 = vadd.f32 1.0, %v4881_v18  ;;  %v7558_v17 = vld [vmem:[#allocation30_spill] sm:$0xff] }
 0x256   :  { %v4883_v10 = vpop.eup %4882  ;;  %4892 = vtanh.f32 %v976_v6 }
 0x257   :  { %4894 = vrcp.f32 %v996_v51  ;;  %v985_v40 = vadd.f32 1.0, %v4883_v10 }
 0x258   :  { %v4885_v11 = vpop.eup %4884  ;;  %4896 = vpow2.f32 %v4371_v34 }
 0x259   :  { %4898 = vrcp.f32 %v985_v40  ;;  %v997_v33 = vadd.f32 1.0, %v4885_v11  ;;  %v4887_v15 = vpop.eup %4886 }
 0x25a   :  { %v4889_v20 = vpop.eup %4888 }
 0x25b   :  { %4900 = vrcp.f32 %v997_v33  ;;  %v1016_v38 = vadd.f32 1.0, %v4889_v20  ;;  %v7559_v33 = vld [vmem:[#allocation42_spill] sm:$0xff] }
 0x25d   :  { %4902 = vrcp.f32 %v1016_v38  ;;  %v7562_v38 = vld [vmem:[#allocation44_spill] sm:$0xff] }
 0x262   :  { %v4891_v21 = vpop.eup %4890 }
 0x263   :  { %v4893_v24 = vpop.eup %4892  ;;  %v1006_v25 = vmul.f32 %v4891_v21, %v4887_v15  ;;  %v7560_v21 = vld [vmem:[#allocation45_spill] sm:$0xff] }
 0x264   :  { %v4895_v27 = vpop.eup %4894 }
 0x265   :  { %v4897_v29 = vpop.eup %4896  ;;  %v1004_v36 = vmul.f32 %v4895_v27, %v6175_v9 }
 0x266   :  { %v4899_v37 = vpop.eup %4898  ;;  %v1017_v12 = vadd.f32 1.0, %v4897_v29 }
 0x267   :  { %v6226_v5 = vadd.f32 %v1006_v25, %v1004_v36  ;;  %v1007_v14 = vmul.f32 %v4899_v37, %v4893_v24  ;;  %v397_v24 = vadd.f32 %v7560_v21, %v6041_v46  ;;  %v7561_v25 = vld [vmem:[#allocation40_spill] sm:$0xff]  ;;  %v6387_v21 = vld [vmem:[%s7481_s2 + $0x8c] ss:$16 sps:$4 sm:$0xff]  }
 0x268   :  { %v4901_v19 = vpop.eup %4900 }
 0x269   :  { %v1005_v30 = vmul.f32 %v4901_v19, %v6178_v23  ;;  %4904 = vtanh.f32 %v6226_v5  ;;  %v6236_v23 = vld [vmem:[%s7481_s2 + $0xe0] ss:$16 sps:$4 sm:$0xff]  }
 0x26a   :  { %4906 = vrcp.f32 %v1017_v12  ;;  %v4903_v8 = vpop.eup %4902 }
 0x26b   :  { %v6229_v63 = vadd.f32 %v1007_v14, %v1005_v30 }
 0x26d   :  { %4908 = vtanh.f32 %v6229_v63 }
 0x276   :  { %v4905_v45 = vpop.eup %4904 }
 0x277   :  { %v4907_v9 = vpop.eup %4906  ;;  %v1024_v0 = vmul.f32 %v4905_v45, %v4903_v8 }
 0x27a   :  { %v4909_v28 = vpop.eup %4908 }
 0x27b   :  { %v1025_v1 = vmul.f32 %v4909_v28, %v4907_v9 }
 0x27d   :  { %v1026_v26 = vpack.c.bf16 %v1025_v1, %v1024_v0 }
 0x27f   :  { %4574 = vst [vmem:[#allocation3 + $0x8] sm:$0xff] %v1026_v26   ;;  %1081 = vmatmul.mubr.bf16.vlgmr.msra.gmra.mxu0 %v1026_v26  ;;  %1124 = vmatmul.mubr.bf16.vlgmr.msra.gmra.mxu1 %v1026_v26 }
 0x280   :  { %1213 = vmatpush1.bf16.msra.mxu0 %v6236_v23  ;;  %1256 = vmatpush1.bf16.msra.mxu1 %v5741_v31  ;;  %v6259_v31 = vld [vmem:[%s7481_s2 + $0xa4] ss:$16 sps:$4 sm:$0xff]  }
 0x281   :  { %1214 = vmatprep.subr.bf16.mxu0 %v6243_v4  ;;  %1257 = vmatprep.subr.bf16.mxu1 %v5746_v32  ;;  %v6266_v32 = vld [vmem:[%s7481_s2 + $0xa0] ss:$16 sps:$4 sm:$0xff]  }
 0x282   :  { %1244 = vmatprep.mubr.bf16.mxu0 %v7551_v55  ;;  %1287 = vmatprep.mubr.bf16.mxu1 %v7551_v55 }
 0x284   :  { %1215 = vmatpush1.bf16.msra.mxu0 %v6252_v16  ;;  %1258 = vmatpush1.bf16.msra.mxu1 %v5757_v35  ;;  %v6273_v35 = vld [vmem:[%s7481_s2 + $0x84] ss:$16 sps:$4 sm:$0xff]  }
 0x285   :  { %1216 = vmatprep.subr.bf16.mxu0 %v6259_v31  ;;  %1259 = vmatprep.subr.bf16.mxu1 %v5784_v39  ;;  %v6280_v39 = vld [vmem:[%s7481_s2 + $0x80] ss:$16 sps:$4 sm:$0xff]  }
 0x288   :  { %1217 = vmatpush1.bf16.msra.mxu0 %v6266_v32  ;;  %1260 = vmatpush1.bf16.msra.mxu1 %v5792_v41  ;;  %v6287_v41 = vld [vmem:[%s7481_s2 + $0x64] ss:$16 sps:$4 sm:$0xff]  }
 0x289   :  { %1218 = vmatprep.subr.bf16.mxu0 %v6273_v35  ;;  %1261 = vmatprep.subr.bf16.mxu1 %v5809_v44  ;;  %v6294_v44 = vld [vmem:[%s7481_s2 + $0x60] ss:$16 sps:$4 sm:$0xff]  }
 0x28c   :  { %1219 = vmatpush1.bf16.msra.mxu0 %v6280_v39  ;;  %1262 = vmatpush1.bf16.msra.mxu1 %v5827_v48  ;;  %v6301_v48 = vld [vmem:[%s7481_s2 + $0x44] ss:$16 sps:$4 sm:$0xff]  }
 0x28d   :  { %1220 = vmatprep.subr.bf16.mxu0 %v6287_v41  ;;  %1263 = vmatprep.subr.bf16.mxu1 %v5839_v50 }
 0x290   :  { %1221 = vmatpush1.bf16.msra.mxu0 %v6294_v44  ;;  %1264 = vmatpush1.bf16.msra.mxu1 %v5853_v53 }
 0x291   :  { %1222 = vmatprep.subr.bf16.mxu0 %v6301_v48  ;;  %1265 = vmatprep.subr.bf16.mxu1 %v5858_v54 }
 0x294   :  { %1223 = vmatpush1.bf16.msra.mxu0 %v5799_v42  ;;  %1266 = vmatpush1.bf16.msra.mxu1 %v5875_v57  ;;  %v6318_v42 = vld [vmem:[%s7481_s2 + $0xe4] ss:$16 sps:$4 sm:$0xff]  }
 0x295   :  { %1224 = vmatprep.subr.bf16.mxu0 %v5804_v43  ;;  %1267 = vmatprep.subr.bf16.mxu1 %v5882_v58  ;;  %v6324_v43 = vld [vmem:[%s7481_s2 + $0xec] ss:$16 sps:$4 sm:$0xff]  }
 0x298   :  { %1225 = vmatpush1.bf16.msra.mxu0 %v5822_v47  ;;  %1268 = vmatpush1.bf16.msra.mxu1 %v5891_v60 }
 0x299   :  { %1226 = vmatprep.subr.bf16.mxu0 %v5834_v49  ;;  %1269 = vmatprep.subr.bf16.mxu1 %v5896_v61  ;;  %v7555_v49 = vld [vmem:[#allocation29_spill] sm:$0xff] }
 0x29a   :  { %v280_v50 = vadd.f32 %v7555_v49, %v5972_v7 }
 0x29c   :  { %1227 = vmatpush1.bf16.msra.mxu0 %v5848_v52  ;;  %1270 = vmatpush1.bf16.msra.mxu1 %v5905_v62  ;;  %v7556_v52 = vld [vmem:[#allocation28_spill] sm:$0xff]  ;;  %v7557_v62 = vld [vmem:[#allocation31_spill] sm:$0xff] }
 0x29d   :  { %1376 = vmatprep.subr.bf16.mxu0 %v6318_v42  ;;  %1419 = vmatprep.subr.bf16.mxu1 %v6324_v43  ;;  %v284_v22 = vadd.f32 %v7557_v62, %v5972_v7 }
 0x33f   :  { %v1082_v47 = vpop.f32.mrf.mxu0  ;;  %v1125_v54 = vpop.f32.mrf.mxu1 }
 0x340   :  { %v1134_v53 = vadd.f32 %v1082_v47, %v7556_v52  ;;  %v1136_v27 = vadd.f32 %v1125_v54, %v7561_v25  ;;  %v6401_v25 = vld [vmem:[%s7481_s2 + $0x6c] ss:$16 sps:$4 sm:$0xff]  }
 0x341   :  { %v1084_v57 = vpop.f32.mrf.mxu0  ;;  %v1127_v6 = vpop.f32.mrf.mxu1 }
 0x342   :  { %v4374_v58 = vmul.f32 -1.442695, %v1134_v53  ;;  %v1135_v60 = vadd.f32 %v1084_v57, %v280_v50  ;;  %v1137_v15 = vadd.f32 %v1127_v6, %v7559_v33  ;;  %v6366_v33 = vld [vmem:[%s7481_s2 + $0xc8] ss:$16 sps:$4 sm:$0xff]  }
 0x343   :  { %v1086_v61 = vpop.f32.mrf.mxu0  ;;  %v1129_v40 = vpop.f32.mrf.mxu1 }
 0x344   :  { %4910 = vpow2.f32 %v4374_v58  ;;  %v4376_v56 = vmul.f32 -1.442695, %v1135_v60  ;;  %v1138_v18 = vadd.f32 %v1086_v61, %v7558_v17  ;;  %v4378_v29 = vmul.f32 -1.442695, %v1137_v15  ;;  %v6373_v15 = vld [vmem:[%s7481_s2 + $0xac] ss:$16 sps:$4 sm:$0xff]  }
 0x345   :  { %v1088_v34 = vpop.f32.mrf.mxu0  ;;  %v1131_v20 = vpop.f32.mrf.mxu1  ;;  %v1140_v14 = vadd.f32 %v1129_v40, %v7562_v38  ;;  %v6433_v38 = vld [vmem:[%s7481_s2 + $0x24] ss:$16 sps:$4 sm:$0xff]  }
 0x346   :  { %4912 = vpow2.f32 %v4376_v56  ;;  %v4375_v51 = vmul.f32 -1.442695, %v1138_v18  ;;  %v1139_v10 = vadd.f32 %v1088_v34, %v284_v22  ;;  %v1141_v36 = vadd.f32 %v1131_v20, %v397_v24  ;;  %v6380_v20 = vld [vmem:[%s7481_s2 + $0xa8] ss:$16 sps:$4 sm:$0xff]  }
 0x347   :  { %v6394_v24 = vld [vmem:[%s7481_s2 + $0x88] ss:$16 sps:$4 sm:$0xff]  }
 0x348   :  { %4914 = vpow2.f32 %v4375_v51  ;;  %v4377_v11 = vmul.f32 -1.442695, %v1139_v10  ;;  %v4379_v30 = vmul.f32 -1.442695, %v1141_v36  ;;  %v6421_v36 = vld [vmem:[%s7481_s2 + $0x40] ss:$16 sps:$4 sm:$0xff]  }
 0x34a   :  { %4916 = vpow2.f32 %v4377_v11  ;;  %v6357_v11 = vld [vmem:[%s7481_s2 + $0xcc] ss:$16 sps:$4 sm:$0xff]  }
 0x34b   :  { %4918 = vtanh.f32 %v1136_v27  ;;  %v6408_v27 = vld [vmem:[%s7481_s2 + $0x68] ss:$16 sps:$4 sm:$0xff]  }
 0x34c   :  { %4920 = vpow2.f32 %v4378_v29  ;;  %v6415_v29 = vld [vmem:[%s7481_s2 + $0x4c] ss:$16 sps:$4 sm:$0xff]  }
 0x351   :  { %v4911_v37 = vpop.eup %4910 }
 0x352   :  { %v1148_v19 = vadd.f32 1.0, %v4911_v37  ;;  %v6427_v37 = vld [vmem:[%s7481_s2 + $0x48] ss:$16 sps:$4 sm:$0xff]  }
 0x353   :  { %v4913_v12 = vpop.eup %4912 }
 0x354   :  { %4922 = vrcp.f32 %v1148_v19  ;;  %v1160_v8 = vadd.f32 1.0, %v4913_v12  ;;  %v6445_v19 = vld [vmem:[%s7481_s2 + $0x20] ss:$16 sps:$4 sm:$0xff]   ;;  %v6451_v12 = vld [vmem:[%s7481_s2 + $0x28] ss:$16 sps:$4 sm:$0xff]  }
 0x355   :  { %v4915_v45 = vpop.eup %4914  ;;  %4924 = vtanh.f32 %v1140_v14  ;;  %v6439_v14 = vld [vmem:[%s7481_s2 + $0x2c] ss:$16 sps:$4 sm:$0xff]  }
 0x356   :  { %4926 = vrcp.f32 %v1160_v8  ;;  %v1149_v9 = vadd.f32 1.0, %v4915_v45  ;;  %v6463_v8 = vld [vmem:[%s7481_s2 + $0xc] ss:$16 sps:$4 sm:$0xff]   ;;  %v6469_v45 = vld [vmem:[%s7481_s2] ss:$16 sps:$4 sm:$0xff]  }
 0x357   :  { %v4917_v28 = vpop.eup %4916  ;;  %4928 = vpow2.f32 %v4379_v30  ;;  %v6457_v30 = vld [vmem:[%s7481_s2 + $0x4] ss:$16 sps:$4 sm:$0xff]  }
 0x358   :  { %4930 = vrcp.f32 %v1149_v9  ;;  %v1161_v0 = vadd.f32 1.0, %v4917_v28  ;;  %v4919_v1 = vpop.eup %4918  ;;  %v6475_v9 = vld [vmem:[%s7481_s2 + $0x8] ss:$16 sps:$4 sm:$0xff]  }
 0x359   :  { %v4921_v26 = vpop.eup %4920 }
 0x35a   :  { %4932 = vrcp.f32 %v1161_v0  ;;  %v1180_v58 = vadd.f32 1.0, %v4921_v26  ;;  %v7563_v0 = vld [vmem:[#allocation32_spill] sm:$0xff] }
 0x35c   :  { %4934 = vrcp.f32 %v1180_v58  ;;  %v7565_v58 = vld [vmem:[#allocation35_spill] sm:$0xff] }
 0x361   :  { %v4923_v47 = vpop.eup %4922 }
 0x362   :  { %v4925_v49 = vpop.eup %4924  ;;  %v1170_v50 = vmul.f32 %v4923_v47, %v4919_v1 }
 0x363   :  { %v4927_v52 = vpop.eup %4926 }
 0x364   :  { %v4929_v53 = vpop.eup %4928  ;;  %v1168_v54 = vmul.f32 %v4927_v52, %v6226_v5 }
 0x365   :  { %v4931_v57 = vpop.eup %4930  ;;  %v1181_v22 = vadd.f32 1.0, %v4929_v53 }
 0x366   :  { %v6339_v60 = vadd.f32 %v1170_v50, %v1168_v54  ;;  %v1171_v61 = vmul.f32 %v4931_v57, %v4925_v49  ;;  %v7564_v50 = vld [vmem:[#allocation34_spill] sm:$0xff] }
 0x367   :  { %v4933_v62 = vpop.eup %4932 }
 0x368   :  { %v1169_v56 = vmul.f32 %v4933_v62, %v6229_v63  ;;  %4936 = vtanh.f32 %v6339_v60  ;;  %v6350_v63 = vld [vmem:[%s7481_s2 + $0xe8] ss:$16 sps:$4 sm:$0xff]  }
 0x369   :  { %4938 = vrcp.f32 %v1181_v22  ;;  %v4935_v17 = vpop.eup %4934 }
 0x36a   :  { %v6342_v6 = vadd.f32 %v1171_v61, %v1169_v56  ;;  %v7566_v56 = vld [vmem:[#allocation38_spill] sm:$0xff] }
 0x36c   :  { %4940 = vtanh.f32 %v6342_v6 }
 0x375   :  { %v4937_v18 = vpop.eup %4936 }
 0x376   :  { %v4939_v5 = vpop.eup %4938  ;;  %v1188_v51 = vmul.f32 %v4937_v18, %v4935_v17 }
 0x379   :  { %v4941_v34 = vpop.eup %4940 }
 0x37a   :  { %v1189_v10 = vmul.f32 %v4941_v34, %v4939_v5  ;;  %v7567_v34 = vld [vmem:[#allocation50_spill] sm:$0xff] }
 0x37c   :  { %v1190_v40 = vpack.c.bf16 %v1189_v10, %v1188_v51 }
 0x37e   :  { %4579 = vst [vmem:[#allocation3 + $0x10] sm:$0xff] %v1190_v40   ;;  %1245 = vmatmul.mubr.bf16.vlgmr.msra.gmra.mxu0 %v1190_v40  ;;  %1288 = vmatmul.mubr.bf16.vlgmr.msra.gmra.mxu1 %v1190_v40  ;;  %v7568_v40 = vld [vmem:[#allocation53_spill] sm:$0xff] }
 0x37f   :  { %1377 = vmatpush1.bf16.msra.mxu0 %v6236_v23  ;;  %1420 = vmatpush1.bf16.msra.mxu1 %v6350_v63 }
 0x380   :  { %1378 = vmatprep.subr.bf16.mxu0 %v6243_v4  ;;  %1421 = vmatprep.subr.bf16.mxu1 %v6357_v11 }
 0x381   :  { %1408 = vmatprep.mubr.bf16.mxu0 %v7551_v55  ;;  %1451 = vmatprep.mubr.bf16.mxu1 %v7551_v55 }
 0x383   :  { %1379 = vmatpush1.bf16.msra.mxu0 %v6252_v16  ;;  %1422 = vmatpush1.bf16.msra.mxu1 %v6366_v33 }
 0x384   :  { %1380 = vmatprep.subr.bf16.mxu0 %v6259_v31  ;;  %1423 = vmatprep.subr.bf16.mxu1 %v6373_v15 }
 0x387   :  { %1381 = vmatpush1.bf16.msra.mxu0 %v6266_v32  ;;  %1424 = vmatpush1.bf16.msra.mxu1 %v6380_v20 }
 0x388   :  { %1382 = vmatprep.subr.bf16.mxu0 %v6273_v35  ;;  %1425 = vmatprep.subr.bf16.mxu1 %v6387_v21 }
 0x38b   :  { %1383 = vmatpush1.bf16.msra.mxu0 %v6280_v39  ;;  %1426 = vmatpush1.bf16.msra.mxu1 %v6394_v24 }
 0x38c   :  { %1384 = vmatprep.subr.bf16.mxu0 %v6287_v41  ;;  %1427 = vmatprep.subr.bf16.mxu1 %v6401_v25 }
 0x38f   :  { %1385 = vmatpush1.bf16.msra.mxu0 %v6294_v44  ;;  %1428 = vmatpush1.bf16.msra.mxu1 %v6408_v27 }
 0x390   :  { %1386 = vmatprep.subr.bf16.mxu0 %v6301_v48  ;;  %1429 = vmatprep.subr.bf16.mxu1 %v6415_v29 }
 0x393   :  { %1387 = vmatpush1.bf16.msra.mxu0 %v6421_v36  ;;  %1430 = vmatpush1.bf16.msra.mxu1 %v6427_v37 }
 0x394   :  { %1388 = vmatprep.subr.bf16.mxu0 %v6433_v38  ;;  %1431 = vmatprep.subr.bf16.mxu1 %v6439_v14 }
 0x397   :  { %1389 = vmatpush1.bf16.msra.mxu0 %v6445_v19  ;;  %1432 = vmatpush1.bf16.msra.mxu1 %v6451_v12 }
 0x398   :  { %1390 = vmatprep.subr.bf16.mxu0 %v6457_v30  ;;  %1433 = vmatprep.subr.bf16.mxu1 %v6463_v8 }
 0x39b   :  { %1391 = vmatpush1.bf16.msra.mxu0 %v6469_v45  ;;  %1434 = vmatpush1.bf16.msra.mxu1 %v6475_v9 }
 0x39c   :  { %1540 = vmatprep.subr.bf16.mxu0 %v6318_v42  ;;  %1583 = vmatprep.subr.bf16.mxu1 %v6324_v43 }
 0x43e   :  { %v1246_v28 = vpop.f32.mrf.mxu0  ;;  %v1289_v26 = vpop.f32.mrf.mxu1 }
 0x43f   :  { %v1298_v1 = vadd.f32 %v1246_v28, %v7563_v0  ;;  %v407_v28 = vadd.f32 %v7568_v40, %v6041_v46  ;;  %v7569_v0 = vld [vmem:[#allocation48_spill] sm:$0xff] }
 0x440   :  { %v1248_v47 = vpop.f32.mrf.mxu0  ;;  %v1291_v57 = vpop.f32.mrf.mxu1 }
 0x441   :  { %v4382_v49 = vmul.f32 -1.442695, %v1298_v1  ;;  %v1299_v52 = vadd.f32 %v1248_v47, %v7564_v50  ;;  %v1301_v51 = vadd.f32 %v1291_v57, %v7567_v34  ;;  %v1300_v1 = vadd.f32 %v1289_v26, %v7569_v0 }
 0x442   :  { %v1250_v53 = vpop.f32.mrf.mxu0  ;;  %v1293_v18 = vpop.f32.mrf.mxu1 }
 0x443   :  { %4942 = vpow2.f32 %v4382_v49  ;;  %v4384_v54 = vmul.f32 -1.442695, %v1299_v52  ;;  %v1302_v61 = vadd.f32 %v1250_v53, %v7565_v58  ;;  %v4386_v47 = vmul.f32 -1.442695, %v1301_v51  ;;  %v7570_v52 = vld [vmem:[#allocation52_spill] sm:$0xff] }
 0x444   :  { %v1252_v62 = vpop.f32.mrf.mxu0  ;;  %v1295_v10 = vpop.f32.mrf.mxu1  ;;  %v1304_v53 = vadd.f32 %v1293_v18, %v7570_v52 }
 0x445   :  { %4944 = vpow2.f32 %v4384_v54  ;;  %v4383_v22 = vmul.f32 -1.442695, %v1302_v61  ;;  %v1303_v17 = vadd.f32 %v1252_v62, %v7566_v56  ;;  %v1305_v49 = vadd.f32 %v1295_v10, %v407_v28 }
 0x447   :  { %4946 = vpow2.f32 %v4383_v22  ;;  %v4385_v5 = vmul.f32 -1.442695, %v1303_v17  ;;  %v4387_v61 = vmul.f32 -1.442695, %v1305_v49 }
 0x449   :  { %4948 = vpow2.f32 %v4385_v5 }
 0x44a   :  { %4950 = vtanh.f32 %v1300_v1 }
 0x44b   :  { %4952 = vpow2.f32 %v4386_v47 }
 0x450   :  { %v4943_v50 = vpop.eup %4942 }
 0x451   :  { %v1312_v54 = vadd.f32 1.0, %v4943_v50 }
 0x452   :  { %v4945_v58 = vpop.eup %4944 }
 0x453   :  { %4954 = vrcp.f32 %v1312_v54  ;;  %v1324_v62 = vadd.f32 1.0, %v4945_v58 }
 0x454   :  { %v4947_v22 = vpop.eup %4946  ;;  %4956 = vtanh.f32 %v1304_v53 }
 0x455   :  { %4958 = vrcp.f32 %v1324_v62  ;;  %v1313_v57 = vadd.f32 1.0, %v4947_v22 }
 0x456   :  { %v4949_v56 = vpop.eup %4948  ;;  %4960 = vpow2.f32 %v4387_v61 }
 0x457   :  { %4962 = vrcp.f32 %v1313_v57  ;;  %v1325_v26 = vadd.f32 1.0, %v4949_v56  ;;  %v4951_v17 = vpop.eup %4950 }
 0x458   :  { %v4953_v5 = vpop.eup %4952 }
 0x459   :  { %4964 = vrcp.f32 %v1325_v26  ;;  %v1344_v1 = vadd.f32 1.0, %v4953_v5  ;;  %v7571_v26 = vld [vmem:[#allocation39_spill] sm:$0xff] }
 0x45b   :  { %4966 = vrcp.f32 %v1344_v1  ;;  %v7573_v1 = vld [vmem:[#allocation43_spill] sm:$0xff] }
 0x460   :  { %v4955_v34 = vpop.eup %4954 }
 0x461   :  { %v4957_v18 = vpop.eup %4956  ;;  %v1334_v51 = vmul.f32 %v4955_v34, %v4951_v17 }
 0x462   :  { %v4959_v10 = vpop.eup %4958 }
 0x463   :  { %v4961_v40 = vpop.eup %4960  ;;  %v1332_v28 = vmul.f32 %v4959_v10, %v6339_v60 }
 0x464   :  { %v4963_v0 = vpop.eup %4962  ;;  %v1345_v52 = vadd.f32 1.0, %v4961_v40 }
 0x465   :  { %v6490_v47 = vadd.f32 %v1334_v51, %v1332_v28  ;;  %v1335_v49 = vmul.f32 %v4963_v0, %v4957_v18  ;;  %v7572_v51 = vld [vmem:[#allocation41_spill] sm:$0xff] }
 0x466   :  { %v4965_v50 = vpop.eup %4964 }
 0x467   :  { %v1333_v53 = vmul.f32 %v4965_v50, %v6342_v6  ;;  %4968 = vtanh.f32 %v6490_v47 }
 0x468   :  { %4970 = vrcp.f32 %v1345_v52  ;;  %v4967_v58 = vpop.eup %4966 }
 0x469   :  { %v6493_v54 = vadd.f32 %v1335_v49, %v1333_v53  ;;  %v7574_v53 = vld [vmem:[#allocation46_spill] sm:$0xff] }
 0x46b   :  { %4972 = vtanh.f32 %v6493_v54 }
 0x474   :  { %v4969_v61 = vpop.eup %4968 }
 0x475   :  { %v4971_v60 = vpop.eup %4970  ;;  %v1352_v22 = vmul.f32 %v4969_v61, %v4967_v58 }
 0x478   :  { %v4973_v62 = vpop.eup %4972 }
 0x479   :  { %v1353_v57 = vmul.f32 %v4973_v62, %v4971_v60  ;;  %v7575_v62 = vld [vmem:[#allocation56_spill] sm:$0xff] }
 0x47b   :  { %v1354_v56 = vpack.c.bf16 %v1353_v57, %v1352_v22  ;;  %v413_v22 = vadd.f32 %v7575_v62, %v6041_v46 }
 0x47d   :  { %4584 = vst [vmem:[#allocation3 + $0x18] sm:$0xff] %v1354_v56   ;;  %1409 = vmatmul.mubr.bf16.vlgmr.msra.gmra.mxu0 %v1354_v56  ;;  %1452 = vmatmul.mubr.bf16.vlgmr.msra.gmra.mxu1 %v1354_v56 }
 0x47e   :  { %1541 = vmatpush1.bf16.msra.mxu0 %v6236_v23  ;;  %1584 = vmatpush1.bf16.msra.mxu1 %v6350_v63 }
 0x47f   :  { %1542 = vmatprep.subr.bf16.mxu0 %v6243_v4  ;;  %1585 = vmatprep.subr.bf16.mxu1 %v6357_v11 }
 0x480   :  { %1572 = vmatprep.mubr.bf16.mxu0 %v7551_v55  ;;  %1615 = vmatprep.mubr.bf16.mxu1 %v7551_v55 }
 0x482   :  { %1543 = vmatpush1.bf16.msra.mxu0 %v6252_v16  ;;  %1586 = vmatpush1.bf16.msra.mxu1 %v6366_v33 }
 0x483   :  { %1544 = vmatprep.subr.bf16.mxu0 %v6259_v31  ;;  %1587 = vmatprep.subr.bf16.mxu1 %v6373_v15 }
 0x486   :  { %1545 = vmatpush1.bf16.msra.mxu0 %v6266_v32  ;;  %1588 = vmatpush1.bf16.msra.mxu1 %v6380_v20 }
 0x487   :  { %1546 = vmatprep.subr.bf16.mxu0 %v6273_v35  ;;  %1589 = vmatprep.subr.bf16.mxu1 %v6387_v21 }
 0x48a   :  { %1547 = vmatpush1.bf16.msra.mxu0 %v6280_v39  ;;  %1590 = vmatpush1.bf16.msra.mxu1 %v6394_v24 }
 0x48b   :  { %1548 = vmatprep.subr.bf16.mxu0 %v6287_v41  ;;  %1591 = vmatprep.subr.bf16.mxu1 %v6401_v25 }
 0x48e   :  { %1549 = vmatpush1.bf16.msra.mxu0 %v6294_v44  ;;  %1592 = vmatpush1.bf16.msra.mxu1 %v6408_v27 }
 0x48f   :  { %1550 = vmatprep.subr.bf16.mxu0 %v6301_v48  ;;  %1593 = vmatprep.subr.bf16.mxu1 %v6415_v29 }
 0x492   :  { %1551 = vmatpush1.bf16.msra.mxu0 %v6421_v36  ;;  %1594 = vmatpush1.bf16.msra.mxu1 %v6427_v37 }
 0x493   :  { %1552 = vmatprep.subr.bf16.mxu0 %v6433_v38  ;;  %1595 = vmatprep.subr.bf16.mxu1 %v6439_v14 }
 0x496   :  { %1553 = vmatpush1.bf16.msra.mxu0 %v6445_v19  ;;  %1596 = vmatpush1.bf16.msra.mxu1 %v6451_v12 }
 0x497   :  { %1554 = vmatprep.subr.bf16.mxu0 %v6457_v30  ;;  %1597 = vmatprep.subr.bf16.mxu1 %v6463_v8 }
 0x49a   :  { %1555 = vmatpush1.bf16.msra.mxu0 %v6469_v45  ;;  %1598 = vmatpush1.bf16.msra.mxu1 %v6475_v9 }
 0x49b   :  { %1704 = vmatprep.subr.bf16.mxu0 %v6318_v42  ;;  %1747 = vmatprep.subr.bf16.mxu1 %v6324_v43 }
 0x53d   :  { %v1410_v6 = vpop.f32.mrf.mxu0  ;;  %v1453_v5 = vpop.f32.mrf.mxu1 }
 0x53e   :  { %v1462_v17 = vadd.f32 %v1410_v6, %v7571_v26  ;;  %v7576_v6 = vld [vmem:[#allocation55_spill] sm:$0xff] }
 0x53f   :  { %v1412_v34 = vpop.f32.mrf.mxu0  ;;  %v1455_v0 = vpop.f32.mrf.mxu1  ;;  %v1464_v26 = vadd.f32 %v1453_v5, %v7576_v6 }
 0x540   :  { %v4390_v18 = vmul.f32 -1.442695, %v1462_v17  ;;  %v1463_v10 = vadd.f32 %v1412_v34, %v7572_v51  ;;  %v1465_v57 = vadd.f32 %v1455_v0, %v413_v22  ;;  %v7577_v51 = vld [vmem:[#allocation57_spill] sm:$0xff] }
 0x541   :  { %v1414_v40 = vpop.f32.mrf.mxu0  ;;  %v1457_v61 = vpop.f32.mrf.mxu1 }
 0x542   :  { %4974 = vpow2.f32 %v4390_v18  ;;  %v4392_v28 = vmul.f32 -1.442695, %v1463_v10  ;;  %v1466_v49 = vadd.f32 %v1414_v40, %v7573_v1  ;;  %v4394_v17 = vmul.f32 -1.442695, %v1465_v57 }
 0x543   :  { %v1416_v50 = vpop.f32.mrf.mxu0  ;;  %v1459_v56 = vpop.f32.mrf.mxu1  ;;  %v1468_v10 = vadd.f32 %v1457_v61, %v7577_v51 }
 0x544   :  { %4976 = vpow2.f32 %v4392_v28  ;;  %v4391_v52 = vmul.f32 -1.442695, %v1466_v49  ;;  %v1467_v58 = vadd.f32 %v1416_v50, %v7574_v53  ;;  %v1469_v34 = vadd.f32 %v1459_v56, %v6127_v59 }
 0x546   :  { %4978 = vpow2.f32 %v4391_v52  ;;  %v4393_v60 = vmul.f32 -1.442695, %v1467_v58  ;;  %v4395_v1 = vmul.f32 -1.442695, %v1469_v34 }
 0x548   :  { %4980 = vpow2.f32 %v4393_v60 }
 0x549   :  { %4982 = vtanh.f32 %v1464_v26 }
 0x54a   :  { %4984 = vpow2.f32 %v4394_v17 }
 0x54f   :  { %v4975_v18 = vpop.eup %4974 }
 0x550   :  { %v1476_v40 = vadd.f32 1.0, %v4975_v18 }
 0x551   :  { %v4977_v28 = vpop.eup %4976 }
 0x552   :  { %4986 = vrcp.f32 %v1476_v40  ;;  %v1488_v49 = vadd.f32 1.0, %v4977_v28 }
 0x553   :  { %v4979_v50 = vpop.eup %4978  ;;  %4988 = vtanh.f32 %v1468_v10 }
 0x554   :  { %4990 = vrcp.f32 %v1488_v49  ;;  %v1477_v46 = vadd.f32 1.0, %v4979_v50 }
 0x555   :  { %v4981_v0 = vpop.eup %4980  ;;  %4992 = vpow2.f32 %v4395_v1 }
 0x556   :  { %4994 = vrcp.f32 %v1477_v46  ;;  %v1489_v5 = vadd.f32 1.0, %v4981_v0  ;;  %v4983_v59 = vpop.eup %4982  ;;  %v7578_v46 = vld [vmem:[#allocation47_spill] sm:$0xff] }
 0x557   :  { %v4985_v52 = vpop.eup %4984 }
 0x558   :  { %4996 = vrcp.f32 %v1489_v5  ;;  %v1508_v56 = vadd.f32 1.0, %v4985_v52 }
 0x55a   :  { %4998 = vrcp.f32 %v1508_v56 }
 0x55f   :  { %v4987_v53 = vpop.eup %4986 }
 0x560   :  { %v4989_v58 = vpop.eup %4988  ;;  %v1498_v61 = vmul.f32 %v4987_v53, %v4983_v59  ;;  %v7579_v53 = vld [vmem:[#allocation49_spill] sm:$0xff] }
 0x561   :  { %v4991_v60 = vpop.eup %4990 }
 0x562   :  { %v4993_v62 = vpop.eup %4992  ;;  %v1496_v22 = vmul.f32 %v4991_v60, %v6490_v47 }
 0x563   :  { %v4995_v57 = vpop.eup %4994  ;;  %v1509_v34 = vadd.f32 1.0, %v4993_v62 }
 0x564   :  { %v6541_v6 = vadd.f32 %v1498_v61, %v1496_v22  ;;  %v1499_v26 = vmul.f32 %v4995_v57, %v4989_v58  ;;  %v7580_v22 = vld [vmem:[#allocation51_spill] sm:$0xff] }
 0x565   :  { %v4997_v17 = vpop.eup %4996 }
 0x566   :  { %v1497_v18 = vmul.f32 %v4997_v17, %v6493_v54  ;;  %5000 = vtanh.f32 %v6541_v6 }
 0x567   :  { %5002 = vrcp.f32 %v1509_v34  ;;  %v4999_v10 = vpop.eup %4998 }
 0x568   :  { %v6544_v51 = vadd.f32 %v1499_v26, %v1497_v18 }
 0x56a   :  { %5004 = vtanh.f32 %v6544_v51 }
 0x573   :  { %v5001_v40 = vpop.eup %5000 }
 0x574   :  { %v5003_v47 = vpop.eup %5002  ;;  %v1516_v1 = vmul.f32 %v5001_v40, %v4999_v10 }
 0x577   :  { %v5005_v28 = vpop.eup %5004 }
 0x578   :  { %v1517_v49 = vmul.f32 %v5005_v28, %v5003_v47 }
 0x57a   :  { %v1518_v50 = vpack.c.bf16 %v1517_v49, %v1516_v1  ;;  %v7582_v49 = vld [vmem:[#allocation58_spill] sm:$0xff] }
 0x57c   :  { %4589 = vst [vmem:[#allocation3 + $0x20] sm:$0xff] %v1518_v50   ;;  %1573 = vmatmul.mubr.bf16.vlgmr.msra.gmra.mxu0 %v1518_v50  ;;  %1616 = vmatmul.mubr.bf16.vlgmr.msra.gmra.mxu1 %v1518_v50 }
 0x57d   :  { %1705 = vmatpush1.bf16.msra.mxu0 %v6236_v23  ;;  %1748 = vmatpush1.bf16.msra.mxu1 %v6350_v63 }
 0x57e   :  { %1706 = vmatprep.subr.bf16.mxu0 %v6243_v4  ;;  %1749 = vmatprep.subr.bf16.mxu1 %v6357_v11 }
 0x57f   :  { %1736 = vmatprep.mubr.bf16.mxu0 %v7551_v55  ;;  %1779 = vmatprep.mubr.bf16.mxu1 %v7551_v55 }
 0x581   :  { %1707 = vmatpush1.bf16.msra.mxu0 %v6252_v16  ;;  %1750 = vmatpush1.bf16.msra.mxu1 %v6366_v33 }
 0x582   :  { %1708 = vmatprep.subr.bf16.mxu0 %v6259_v31  ;;  %1751 = vmatprep.subr.bf16.mxu1 %v6373_v15 }
 0x585   :  { %1709 = vmatpush1.bf16.msra.mxu0 %v6266_v32  ;;  %1752 = vmatpush1.bf16.msra.mxu1 %v6380_v20 }
 0x586   :  { %1710 = vmatprep.subr.bf16.mxu0 %v6273_v35  ;;  %1753 = vmatprep.subr.bf16.mxu1 %v6387_v21 }
 0x589   :  { %1711 = vmatpush1.bf16.msra.mxu0 %v6280_v39  ;;  %1754 = vmatpush1.bf16.msra.mxu1 %v6394_v24 }
 0x58a   :  { %1712 = vmatprep.subr.bf16.mxu0 %v6287_v41  ;;  %1755 = vmatprep.subr.bf16.mxu1 %v6401_v25 }
 0x58d   :  { %1713 = vmatpush1.bf16.msra.mxu0 %v6294_v44  ;;  %1756 = vmatpush1.bf16.msra.mxu1 %v6408_v27 }
 0x58e   :  { %1714 = vmatprep.subr.bf16.mxu0 %v6301_v48  ;;  %1757 = vmatprep.subr.bf16.mxu1 %v6415_v29 }
 0x591   :  { %1715 = vmatpush1.bf16.msra.mxu0 %v6421_v36  ;;  %1758 = vmatpush1.bf16.msra.mxu1 %v6427_v37 }
 0x592   :  { %1716 = vmatprep.subr.bf16.mxu0 %v6433_v38  ;;  %1759 = vmatprep.subr.bf16.mxu1 %v6439_v14 }
 0x595   :  { %1717 = vmatpush1.bf16.msra.mxu0 %v6445_v19  ;;  %1760 = vmatpush1.bf16.msra.mxu1 %v6451_v12 }
 0x596   :  { %1718 = vmatprep.subr.bf16.mxu0 %v6457_v30  ;;  %1761 = vmatprep.subr.bf16.mxu1 %v6463_v8 }
 0x599   :  { %1719 = vmatpush1.bf16.msra.mxu0 %v6469_v45  ;;  %1762 = vmatpush1.bf16.msra.mxu1 %v6475_v9 }
 0x59a   :  { %1868 = vmatprep.subr.bf16.mxu0 %v6318_v42  ;;  %1911 = vmatprep.subr.bf16.mxu1 %v6324_v43  ;;  %v7581_v42 = vld [vmem:[#allocation54_spill] sm:$0xff] }
 0x63c   :  { %v1574_v54 = vpop.f32.mrf.mxu0  ;;  %v1617_v5 = vpop.f32.mrf.mxu1 }
 0x63d   :  { %v1626_v0 = vadd.f32 %v1574_v54, %v7578_v46  ;;  %v1628_v40 = vadd.f32 %v1617_v5, %v6132_v3 }
 0x63e   :  { %v1576_v59 = vpop.f32.mrf.mxu0  ;;  %v1619_v62 = vpop.f32.mrf.mxu1 }
 0x63f   :  { %v4398_v52 = vmul.f32 -1.442695, %v1626_v0  ;;  %v1627_v58 = vadd.f32 %v1576_v59, %v7579_v53  ;;  %v1629_v18 = vadd.f32 %v1619_v62, %v6135_v13 }
 0x640   :  { %v1578_v61 = vpop.f32.mrf.mxu0  ;;  %v1621_v43 = vpop.f32.mrf.mxu1 }
 0x641   :  { %5006 = vpow2.f32 %v4398_v52  ;;  %v4400_v60 = vmul.f32 -1.442695, %v1627_v58  ;;  %v1630_v57 = vadd.f32 %v1578_v61, %v7580_v22  ;;  %v4402_v47 = vmul.f32 -1.442695, %v1629_v18 }
 0x642   :  { %v1580_v56 = vpop.f32.mrf.mxu0  ;;  %v1623_v10 = vpop.f32.mrf.mxu1  ;;  %v1632_v50 = vadd.f32 %v1621_v43, %v7582_v49 }
 0x643   :  { %5008 = vpow2.f32 %v4400_v60  ;;  %v4399_v26 = vmul.f32 -1.442695, %v1630_v57  ;;  %v1631_v17 = vadd.f32 %v1580_v56, %v7581_v42  ;;  %v1633_v28 = vadd.f32 %v1623_v10, %v6141_v2 }
 0x645   :  { %5010 = vpow2.f32 %v4399_v26  ;;  %v4401_v34 = vmul.f32 -1.442695, %v1631_v17  ;;  %v4403_v0 = vmul.f32 -1.442695, %v1633_v28 }
 0x647   :  { %5012 = vpow2.f32 %v4401_v34 }
 0x648   :  { %5014 = vtanh.f32 %v1628_v40 }
 0x649   :  { %5016 = vpow2.f32 %v4402_v47 }
 0x64e   :  { %v5007_v1 = vpop.eup %5006 }
 0x64f   :  { %v1640_v54 = vadd.f32 1.0, %v5007_v1 }
 0x650   :  { %v5009_v46 = vpop.eup %5008 }
 0x651   :  { %5018 = vrcp.f32 %v1640_v54  ;;  %v1652_v59 = vadd.f32 1.0, %v5009_v46  ;;  %v7590_v54 = vld [vmem:[#allocation61_spill] sm:$0xff] }
 0x652   :  { %v5011_v52 = vpop.eup %5010  ;;  %5020 = vtanh.f32 %v1632_v50 }
 0x653   :  { %5022 = vrcp.f32 %v1652_v59  ;;  %v1641_v13 = vadd.f32 1.0, %v5011_v52 }
 0x654   :  { %v5013_v53 = vpop.eup %5012  ;;  %5024 = vpow2.f32 %v4403_v0 }
 0x655   :  { %5026 = vrcp.f32 %v1641_v13  ;;  %v1653_v3 = vadd.f32 1.0, %v5013_v53  ;;  %v5015_v2 = vpop.eup %5014 }
 0x656   :  { %v5017_v5 = vpop.eup %5016 }
 0x657   :  { %5028 = vrcp.f32 %v1653_v3  ;;  %v1672_v26 = vadd.f32 1.0, %v5017_v5 }
 0x659   :  { %5030 = vrcp.f32 %v1672_v26 }
 0x65e   :  { %v5019_v58 = vpop.eup %5018 }
 0x65f   :  { %v5021_v61 = vpop.eup %5020  ;;  %v1662_v60 = vmul.f32 %v5019_v58, %v5015_v2 }
 0x660   :  { %v5023_v62 = vpop.eup %5022 }
 0x661   :  { %v5025_v22 = vpop.eup %5024  ;;  %v1660_v57 = vmul.f32 %v5023_v62, %v6541_v6 }
 0x662   :  { %v5027_v56 = vpop.eup %5026  ;;  %v1673_v34 = vadd.f32 1.0, %v5025_v22 }
 0x663   :  { %v6591_v42 = vadd.f32 %v1662_v60, %v1660_v57  ;;  %v1663_v17 = vmul.f32 %v5027_v56, %v5021_v61 }
 0x664   :  { %v5029_v43 = vpop.eup %5028 }
 0x665   :  { %v1661_v18 = vmul.f32 %v5029_v43, %v6544_v51  ;;  %5032 = vtanh.f32 %v6591_v42 }
 0x666   :  { %5034 = vrcp.f32 %v1673_v34  ;;  %v5031_v40 = vpop.eup %5030 }
 0x667   :  { %v6594_v10 = vadd.f32 %v1663_v17, %v1661_v18 }
 0x669   :  { %5036 = vtanh.f32 %v6594_v10 }
 0x672   :  { %v5033_v47 = vpop.eup %5032 }
 0x673   :  { %v5035_v6 = vpop.eup %5034  ;;  %v1680_v1 = vmul.f32 %v5033_v47, %v5031_v40 }
 0x676   :  { %v5037_v28 = vpop.eup %5036 }
 0x677   :  { %v1681_v49 = vmul.f32 %v5037_v28, %v5035_v6 }
 0x679   :  { %v1682_v50 = vpack.c.bf16 %v1681_v49, %v1680_v1 }
 0x67b   :  { %4594 = vst [vmem:[#allocation3 + $0x28] sm:$0xff] %v1682_v50   ;;  %1737 = vmatmul.mubr.bf16.vlgmr.msra.gmra.mxu0 %v1682_v50  ;;  %1780 = vmatmul.mubr.bf16.vlgmr.msra.gmra.mxu1 %v1682_v50 }
 0x67c   :  { %1869 = vmatpush1.bf16.msra.mxu0 %v6236_v23  ;;  %1912 = vmatpush1.bf16.msra.mxu1 %v6350_v63  ;;  %v4744_v23 = vld [vmem:[#allocation8 + $0xe4] ss:$16 sps:$4 sm:$0xff]  }
 0x67d   :  { %1870 = vmatprep.subr.bf16.mxu0 %v6243_v4  ;;  %1913 = vmatprep.subr.bf16.mxu1 %v6357_v11  ;;  %v4747_v4 = vld [vmem:[#allocation8 + $0xec] ss:$16 sps:$4 sm:$0xff]  }
 0x67e   :  { %1900 = vmatprep.mubr.bf16.mxu0 %v7551_v55  ;;  %1943 = vmatprep.mubr.bf16.mxu1 %v7551_v55  ;;  %v7585_v11 = vld [vmem:[#allocation23_spill] sm:$0xff] }
 0x680   :  { %1871 = vmatpush1.bf16.msra.mxu0 %v6252_v16  ;;  %1914 = vmatpush1.bf16.msra.mxu1 %v6366_v33  ;;  %v324_v33 = vadd.f32 %v7585_v11, %v5972_v7  ;;  %v4757_v11 = vld [vmem:[#allocation8 + $0xa8] ss:$16 sps:$4 sm:$0xff]  }
 0x681   :  { %1872 = vmatprep.subr.bf16.mxu0 %v6259_v31  ;;  %1915 = vmatprep.subr.bf16.mxu1 %v6373_v15  ;;  %v7583_v31 = vld [vmem:[#allocation20_spill] sm:$0xff] }
 0x684   :  { %1873 = vmatpush1.bf16.msra.mxu0 %v6266_v32  ;;  %1916 = vmatpush1.bf16.msra.mxu1 %v6380_v20 }
 0x685   :  { %1874 = vmatprep.subr.bf16.mxu0 %v6273_v35  ;;  %1917 = vmatprep.subr.bf16.mxu1 %v6387_v21  ;;  %v7586_v21 = vld [vmem:[#allocation22_spill] sm:$0xff] }
 0x688   :  { %1875 = vmatpush1.bf16.msra.mxu0 %v6280_v39  ;;  %1918 = vmatpush1.bf16.msra.mxu1 %v6394_v24 }
 0x689   :  { %1876 = vmatprep.subr.bf16.mxu0 %v6287_v41  ;;  %1919 = vmatprep.subr.bf16.mxu1 %v6401_v25 }
 0x68c   :  { %1877 = vmatpush1.bf16.msra.mxu0 %v6294_v44  ;;  %1920 = vmatpush1.bf16.msra.mxu1 %v6408_v27  ;;  %v7584_v44 = vld [vmem:[#allocation21_spill] sm:$0xff] }
 0x68d   :  { %1878 = vmatprep.subr.bf16.mxu0 %v6301_v48  ;;  %1921 = vmatprep.subr.bf16.mxu1 %v6415_v29 }
 0x690   :  { %1879 = vmatpush1.bf16.msra.mxu0 %v6421_v36  ;;  %1922 = vmatpush1.bf16.msra.mxu1 %v6427_v37 }
 0x691   :  { %1880 = vmatprep.subr.bf16.mxu0 %v6433_v38  ;;  %1923 = vmatprep.subr.bf16.mxu1 %v6439_v14  ;;  %v7587_v38 = vld [vmem:[#allocation60_spill] sm:$0xff] }
 0x694   :  { %1881 = vmatpush1.bf16.msra.mxu0 %v6445_v19  ;;  %1924 = vmatpush1.bf16.msra.mxu1 %v6451_v12  ;;  %v7588_v12 = vld [vmem:[#allocation59_spill] sm:$0xff] }
 0x695   :  { %1882 = vmatprep.subr.bf16.mxu0 %v6457_v30  ;;  %1925 = vmatprep.subr.bf16.mxu1 %v6463_v8 }
 0x698   :  { %1883 = vmatpush1.bf16.msra.mxu0 %v6469_v45  ;;  %1926 = vmatpush1.bf16.msra.mxu1 %v6475_v9  ;;  %v7589_v45 = vld [vmem:[#allocation62_spill] sm:$0xff] }
 0x699   :  { %2303 = vmatprep.subr.bf16.mxu0 %v4744_v23  ;;  %2416 = vmatprep.subr.bf16.mxu1 %v4747_v4 }
 0x73b   :  { %v1738_v16 = vpop.f32.mrf.mxu0  ;;  %v1781_v35 = vpop.f32.mrf.mxu1 }
 0x73c   :  { %v1790_v32 = vadd.f32 %v1738_v16, %v7583_v31  ;;  %v1792_v30 = vadd.f32 %v1781_v35, %v7588_v12  ;;  %v4742_v16 = vld [vmem:[#allocation8 + $0xe0] ss:$16 sps:$4 sm:$0xff]   ;;  %v4745_v31 = vld [vmem:[#allocation8 + $0xe8] ss:$16 sps:$4 sm:$0xff]   ;;  %v4750_v35 = vld [vmem:[#allocation8 + $0xc4] ss:$16 sps:$4 sm:$0xff]  }
 0x73d   :  { %v1740_v39 = vpop.f32.mrf.mxu0  ;;  %v1783_v20 = vpop.f32.mrf.mxu1  ;;  %v4783_v12 = vld [vmem:[#allocation8 + $0x2c] ss:$16 sps:$4 sm:$0xff]  }
 0x73e   :  { %v4406_v41 = vmul.f32 -1.442695, %v1790_v32  ;;  %v1791_v48 = vadd.f32 %v1740_v39, %v7584_v44  ;;  %v1793_v14 = vadd.f32 %v1783_v20, %v7587_v38  ;;  %v4753_v39 = vld [vmem:[#allocation8 + $0xcc] ss:$16 sps:$4 sm:$0xff]   ;;  %v4756_v44 = vld [vmem:[#allocation8 + $0xa4] ss:$16 sps:$4 sm:$0xff]  }
 0x73f   :  { %v1742_v63 = vpop.f32.mrf.mxu0  ;;  %v1785_v36 = vpop.f32.mrf.mxu1  ;;  %v4760_v20 = vld [vmem:[#allocation8 + $0x80] ss:$16 sps:$4 sm:$0xff]  }
 0x740   :  { %5038 = vpow2.f32 %v4406_v41  ;;  %v4408_v15 = vmul.f32 -1.442695, %v1791_v48  ;;  %v1794_v24 = vadd.f32 %v1742_v63, %v7586_v21  ;;  %v4410_v8 = vmul.f32 -1.442695, %v1793_v14  ;;  %v4751_v41 = vld [vmem:[#allocation8 + $0xc8] ss:$16 sps:$4 sm:$0xff]  }
 0x741   :  { %v1744_v25 = vpop.f32.mrf.mxu0  ;;  %v1787_v19 = vpop.f32.mrf.mxu1  ;;  %v1796_v46 = vadd.f32 %v1785_v36, %v7590_v54  ;;  %v4759_v48 = vld [vmem:[#allocation8 + $0xac] ss:$16 sps:$4 sm:$0xff]   ;;  %v4754_v63 = vld [vmem:[#allocation8 + $0xa0] ss:$16 sps:$4 sm:$0xff]   ;;  %v4763_v21 = vld [vmem:[#allocation8 + $0x88] ss:$16 sps:$4 sm:$0xff]  }
 0x742   :  { %5040 = vpow2.f32 %v4408_v15  ;;  %v4407_v27 = vmul.f32 -1.442695, %v1794_v24  ;;  %v1795_v29 = vadd.f32 %v1744_v25, %v324_v33  ;;  %v1797_v9 = vadd.f32 %v1787_v19, %v7589_v45  ;;  %v4762_v33 = vld [vmem:[#allocation8 + $0x84] ss:$16 sps:$4 sm:$0xff]   ;;  %v4765_v15 = vld [vmem:[#allocation8 + $0x8c] ss:$16 sps:$4 sm:$0xff]  }
 0x743   :  { %v4768_v24 = vld [vmem:[#allocation8 + $0x64] ss:$16 sps:$4 sm:$0xff]   ;;  %v4771_v25 = vld [vmem:[#allocation8 + $0x6c] ss:$16 sps:$4 sm:$0xff]   ;;  %v4772_v38 = vld [vmem:[#allocation8 + $0x40] ss:$16 sps:$4 sm:$0xff]  }
 0x744   :  { %5042 = vpow2.f32 %v4407_v27  ;;  %v4409_v37 = vmul.f32 -1.442695, %v1795_v29  ;;  %v4411_v52 = vmul.f32 -1.442695, %v1797_v9  ;;  %v4766_v27 = vld [vmem:[#allocation8 + $0x60] ss:$16 sps:$4 sm:$0xff]  }
 0x745   :  { %v4769_v29 = vld [vmem:[#allocation8 + $0x68] ss:$16 sps:$4 sm:$0xff]   ;;  %v4774_v36 = vld [vmem:[#allocation8 + $0x44] ss:$16 sps:$4 sm:$0xff]   ;;  %v4789_v9 = vld [vmem:[#allocation8 + $0xc] ss:$16 sps:$4 sm:$0xff]  }
 0x746   :  { %5044 = vpow2.f32 %v4409_v37  ;;  %v4777_v37 = vld [vmem:[#allocation8 + $0x4c] ss:$16 sps:$4 sm:$0xff]   ;;  %v4775_v14 = vld [vmem:[#allocation8 + $0x48] ss:$16 sps:$4 sm:$0xff]   ;;  %v4780_v19 = vld [vmem:[#allocation8 + $0x24] ss:$16 sps:$4 sm:$0xff]  }
 0x747   :  { %5046 = vtanh.f32 %v1792_v30  ;;  %v4778_v30 = vld [vmem:[#allocation8 + $0x20] ss:$16 sps:$4 sm:$0xff]   ;;  %v4786_v45 = vld [vmem:[#allocation8 + $0x4] ss:$16 sps:$4 sm:$0xff]   ;;  %v4787_v54 = vld [vmem:[#allocation8 + $0x8] ss:$16 sps:$4 sm:$0xff]  }
 0x748   :  { %5048 = vpow2.f32 %v4410_v8  ;;  %v4781_v8 = vld [vmem:[#allocation8 + $0x28] ss:$16 sps:$4 sm:$0xff]  }
 0x74d   :  { %v5039_v51 = vpop.eup %5038 }
 0x74e   :  { %v1804_v0 = vadd.f32 1.0, %v5039_v51  ;;  %v4784_v51 = vld [vmem:[#allocation8] ss:$16 sps:$4 sm:$0xff]  }
 0x74f   :  { %v5041_v59 = vpop.eup %5040 }
 0x750   :  { %5050 = vrcp.f32 %v1804_v0  ;;  %v1816_v13 = vadd.f32 1.0, %v5041_v59  ;;  %v4791_v0 = vld [vmem:[#allocation3 + $0x8] sm:$0xff]   ;;  %v4792_v59 = vld [vmem:[#allocation3 + $0x10] sm:$0xff]  }
 0x751   :  { %v5043_v53 = vpop.eup %5042  ;;  %5052 = vtanh.f32 %v1796_v46  ;;  %v4790_v46 = vld [vmem:[#allocation3] sm:$0xff]  }
 0x752   :  { %5054 = vrcp.f32 %v1816_v13  ;;  %v1805_v3 = vadd.f32 1.0, %v5043_v53  ;;  %v4794_v13 = vld [vmem:[#allocation3 + $0x20] sm:$0xff]   ;;  %v4795_v53 = vld [vmem:[#allocation3 + $0x28] sm:$0xff]  }
 0x753   :  { %v5045_v2 = vpop.eup %5044  ;;  %5056 = vpow2.f32 %v4411_v52  ;;  %v4793_v52 = vld [vmem:[#allocation3 + $0x18] sm:$0xff]  }
 0x754   :  { %5058 = vrcp.f32 %v1805_v3  ;;  %v1817_v5 = vadd.f32 1.0, %v5045_v2  ;;  %v5047_v58 = vpop.eup %5046  ;;  %v6663_v2 = vld [vmem:[#allocation10 + $0xe4] ss:$16 sps:$4 sm:$0xff]  }
 0x755   :  { %v5049_v61 = vpop.eup %5048 }
 0x756   :  { %5060 = vrcp.f32 %v1817_v5  ;;  %v1836_v43 = vadd.f32 1.0, %v5049_v61  ;;  %v6665_v5 = vld [vmem:[#allocation10 + $0xec] ss:$16 sps:$4 sm:$0xff]   ;;  %v6669_v61 = vld [vmem:[#allocation10 + $0xe8] ss:$16 sps:$4 sm:$0xff]  }
 0x758   :  { %5062 = vrcp.f32 %v1836_v43  ;;  %v6693_v43 = vld [vmem:[#allocation10 + $0xa8] ss:$16 sps:$4 sm:$0xff]  }
 0x75d   :  { %v5051_v60 = vpop.eup %5050 }
 0x75e   :  { %v5053_v62 = vpop.eup %5052  ;;  %v1826_v22 = vmul.f32 %v5051_v60, %v5047_v58  ;;  %v6667_v58 = vld [vmem:[#allocation10 + $0xe0] ss:$16 sps:$4 sm:$0xff]   ;;  %v6675_v60 = vld [vmem:[#allocation10 + $0xc4] ss:$16 sps:$4 sm:$0xff]  }
 0x75f   :  { %v5055_v57 = vpop.eup %5054 }
 0x760   :  { %v5057_v56 = vpop.eup %5056  ;;  %v1824_v26 = vmul.f32 %v5055_v57, %v6591_v42  ;;  %v6681_v57 = vld [vmem:[#allocation10 + $0xc8] ss:$16 sps:$4 sm:$0xff]  }
 0x761   :  { %v5059_v17 = vpop.eup %5058  ;;  %v1837_v47 = vadd.f32 1.0, %v5057_v56  ;;  %v6687_v56 = vld [vmem:[#allocation10 + $0xa4] ss:$16 sps:$4 sm:$0xff]  }
 0x762   :  { %v6640_v34 = vadd.f32 %v1826_v22, %v1824_v26  ;;  %v1827_v18 = vmul.f32 %v5059_v17, %v5053_v62  ;;  %v6677_v62 = vld [vmem:[#allocation10 + $0xcc] ss:$16 sps:$4 sm:$0xff]   ;;  %v6679_v22 = vld [vmem:[#allocation10 + $0xc0] ss:$16 sps:$4 sm:$0xff]  }
 0x763   :  { %v5061_v40 = vpop.eup %5060  ;;  %v6689_v26 = vld [vmem:[#allocation10 + $0xac] ss:$16 sps:$4 sm:$0xff]   ;;  %v6691_v17 = vld [vmem:[#allocation10 + $0xa0] ss:$16 sps:$4 sm:$0xff]  }
 0x764   :  { %v1825_v6 = vmul.f32 %v5061_v40, %v6594_v10  ;;  %5064 = vtanh.f32 %v6640_v34  ;;  %v4748_v10 = vld [vmem:[#allocation8 + $0xc0] ss:$16 sps:$4 sm:$0xff]   ;;  %v6701_v40 = vld [vmem:[#allocation10 + $0x8c] ss:$16 sps:$4 sm:$0xff]  }
 0x765   :  { %5066 = vrcp.f32 %v1837_v47  ;;  %v5063_v1 = vpop.eup %5062  ;;  %v6703_v47 = vld [vmem:[#allocation10 + $0x80] ss:$16 sps:$4 sm:$0xff]  }
 0x766   :  { %v6643_v28 = vadd.f32 %v1827_v18, %v1825_v6  ;;  %v6699_v18 = vld [vmem:[#allocation10 + $0x84] ss:$16 sps:$4 sm:$0xff]   ;;  %v6705_v6 = vld [vmem:[#allocation10 + $0x88] ss:$16 sps:$4 sm:$0xff]  }
 0x768   :  { %5068 = vtanh.f32 %v6643_v28 }
 0x771   :  { %v5065_v49 = vpop.eup %5064 }
 0x772   :  { %v5067_v42 = vpop.eup %5066  ;;  %v1844_v23 = vmul.f32 %v5065_v49, %v5063_v1  ;;  %v6708_v1 = vld [vmem:[#allocation10 + $0x64] ss:$16 sps:$4 sm:$0xff]   ;;  %v6712_v49 = vld [vmem:[#allocation10 + $0x60] ss:$16 sps:$4 sm:$0xff]  }
 0x775   :  { %v5069_v50 = vpop.eup %5068 }
 0x776   :  { %v1845_v4 = vmul.f32 %v5069_v50, %v5067_v42  ;;  %v6716_v42 = vld [vmem:[#allocation10 + $0x44] ss:$16 sps:$4 sm:$0xff]   ;;  %v6718_v50 = vld [vmem:[#allocation10 + $0x6c] ss:$16 sps:$4 sm:$0xff]  }
 0x778   :  { %v1846_v32 = vpack.c.bf16 %v1845_v4, %v1844_v23  ;;  %v6720_v23 = vld [vmem:[#allocation10 + $0x68] ss:$16 sps:$4 sm:$0xff]   ;;  %v6724_v4 = vld [vmem:[#allocation10 + $0x40] ss:$16 sps:$4 sm:$0xff]  }
 0x77a   :  { %4599 = vst [vmem:[#allocation3 + $0x30] sm:$0xff] %v1846_v32   ;;  %1901 = vmatmul.mubr.bf16.vlgmr.msra.gmra.mxu0 %v1846_v32  ;;  %1944 = vmatmul.mubr.bf16.vlgmr.msra.gmra.mxu1 %v1846_v32  ;;  %v6732_v32 = vld [vmem:[#allocation10 + $0x48] ss:$16 sps:$4 sm:$0xff]  }
 0x77b   :  { %2304 = vmatpush1.bf16.msra.mxu0 %v4742_v16  ;;  %2417 = vmatpush1.bf16.msra.mxu1 %v4745_v31  ;;  %v6728_v16 = vld [vmem:[#allocation10 + $0x24] ss:$16 sps:$4 sm:$0xff]   ;;  %v6730_v31 = vld [vmem:[#allocation10 + $0x4c] ss:$16 sps:$4 sm:$0xff]  }
 0x77c   :  { %2305 = vmatprep.subr.bf16.mxu0 %v4750_v35  ;;  %2418 = vmatprep.subr.bf16.mxu1 %v4753_v39  ;;  %v6736_v35 = vld [vmem:[#allocation10 + $0x20] ss:$16 sps:$4 sm:$0xff]   ;;  %v6740_v39 = vld [vmem:[#allocation10 + $0x2c] ss:$16 sps:$4 sm:$0xff]  }
 0x77d   :  { %2335 = vmatprep.mubr.bf16.mxu0 %v7551_v55  ;;  %2448 = vmatprep.mubr.bf16.mxu1 %v7551_v55 }
 0x77f   :  { %2306 = vmatpush1.bf16.msra.mxu0 %v4748_v10  ;;  %2419 = vmatpush1.bf16.msra.mxu1 %v4751_v41  ;;  %v6742_v10 = vld [vmem:[#allocation10 + $0x28] ss:$16 sps:$4 sm:$0xff]   ;;  %v6744_v41 = vld [vmem:[#allocation10 + $0x4] ss:$16 sps:$4 sm:$0xff]  }
 0x780   :  { %2307 = vmatprep.subr.bf16.mxu0 %v4756_v44  ;;  %2420 = vmatprep.subr.bf16.mxu1 %v4759_v48  ;;  %v6748_v44 = vld [vmem:[#allocation10] ss:$16 sps:$4 sm:$0xff]   ;;  %v6752_v48 = vld [vmem:[#allocation10 + $0xc] ss:$16 sps:$4 sm:$0xff]  }
 0x781   :  { %v4796_v3 = vld [vmem:[#allocation3 + $0x30] sm:$0xff]  }
 0x783   :  { %2308 = vmatpush1.bf16.msra.mxu0 %v4754_v63  ;;  %2421 = vmatpush1.bf16.msra.mxu1 %v4757_v11  ;;  %v6754_v63 = vld [vmem:[#allocation10 + $0x8] ss:$16 sps:$4 sm:$0xff]  }
 0x784   :  { %2309 = vmatprep.subr.bf16.mxu0 %v4762_v33  ;;  %2422 = vmatprep.subr.bf16.mxu1 %v4765_v15  ;;  %v7591_v33 = vld [vmem:[#allocation24_spill] sm:$0xff] }
 0x787   :  { %2310 = vmatpush1.bf16.msra.mxu0 %v4760_v20  ;;  %2423 = vmatpush1.bf16.msra.mxu1 %v4763_v21 }
 0x788   :  { %2311 = vmatprep.subr.bf16.mxu0 %v4768_v24  ;;  %2424 = vmatprep.subr.bf16.mxu1 %v4771_v25  ;;  %v7592_v25 = vld [vmem:[#allocation25_spill] sm:$0xff] }
 0x78b   :  { %2312 = vmatpush1.bf16.msra.mxu0 %v4766_v27  ;;  %2425 = vmatpush1.bf16.msra.mxu1 %v4769_v29 }
 0x78c   :  { %2313 = vmatprep.subr.bf16.mxu0 %v4774_v36  ;;  %2426 = vmatprep.subr.bf16.mxu1 %v4777_v37  ;;  %v7593_v36 = vld [vmem:[#allocation27_spill] sm:$0xff] }
 0x78d   :  { %v334_v37 = vadd.f32 %v7593_v36, %v5972_v7  ;;  %v7597_v7 = vld [vmem:[#allocation66_spill] sm:$0xff] }
 0x78f   :  { %2314 = vmatpush1.bf16.msra.mxu0 %v4772_v38  ;;  %2427 = vmatpush1.bf16.msra.mxu1 %v4775_v14 }
 0x790   :  { %2315 = vmatprep.subr.bf16.mxu0 %v4780_v19  ;;  %2428 = vmatprep.subr.bf16.mxu1 %v4783_v12  ;;  %v7594_v19 = vld [vmem:[#allocation26_spill] sm:$0xff] }
 0x793   :  { %2316 = vmatpush1.bf16.msra.mxu0 %v4778_v30  ;;  %2429 = vmatpush1.bf16.msra.mxu1 %v4781_v8 }
 0x794   :  { %2317 = vmatprep.subr.bf16.mxu0 %v4786_v45  ;;  %2430 = vmatprep.subr.bf16.mxu1 %v4789_v9 }
 0x797   :  { %2318 = vmatpush1.bf16.msra.mxu0 %v4784_v51  ;;  %2431 = vmatpush1.bf16.msra.mxu1 %v4787_v54  ;;  %v7595_v54 = vld [vmem:[#allocation64_spill] sm:$0xff] }
 0x798   :  { %2798 = vmatprep.subr.bf16.mxu0 %v6663_v2  ;;  %2841 = vmatprep.subr.bf16.mxu1 %v6665_v5 }
 0x79a   :  { %2336 = vmatmul.mubr.bf16.vlgmr.msra.gmra.mxu0 %v4790_v46  ;;  %2449 = vmatmul.mubr.bf16.vlgmr.msra.gmra.mxu1 %v4790_v46 }
 0x79b   :  { %2345 = vmatprep.mubr.bf16.mxu0 %v7551_v55  ;;  %2458 = vmatprep.mubr.bf16.mxu1 %v7551_v55 }
 0x79c   :  { %2799 = vmatpush1.bf16.msra.mxu0 %v6667_v58  ;;  %2842 = vmatpush1.bf16.msra.mxu1 %v6669_v61 }
 0x79d   :  { %2800 = vmatprep.subr.bf16.mxu0 %v6675_v60  ;;  %2843 = vmatprep.subr.bf16.mxu1 %v6677_v62 }
 0x7a0   :  { %2801 = vmatpush1.bf16.msra.mxu0 %v6679_v22  ;;  %2844 = vmatpush1.bf16.msra.mxu1 %v6681_v57 }
 0x7a1   :  { %2802 = vmatprep.subr.bf16.mxu0 %v6687_v56  ;;  %2845 = vmatprep.subr.bf16.mxu1 %v6689_v26 }
 0x7a2   :  { %2346 = vmatmul.mubr.bf16.gmra.mxu0 %v4791_v0  ;;  %2459 = vmatmul.mubr.bf16.gmra.mxu1 %v4791_v0 }
 0x7a3   :  { %2355 = vmatprep.mubr.bf16.mxu0 %v7551_v55  ;;  %2468 = vmatprep.mubr.bf16.mxu1 %v7551_v55 }
 0x7a4   :  { %2803 = vmatpush1.bf16.msra.mxu0 %v6691_v17  ;;  %2846 = vmatpush1.bf16.msra.mxu1 %v6693_v43 }
 0x7a5   :  { %2804 = vmatprep.subr.bf16.mxu0 %v6699_v18  ;;  %2847 = vmatprep.subr.bf16.mxu1 %v6701_v40 }
 0x7a8   :  { %2805 = vmatpush1.bf16.msra.mxu0 %v6703_v47  ;;  %2848 = vmatpush1.bf16.msra.mxu1 %v6705_v6 }
 0x7a9   :  { %2806 = vmatprep.subr.bf16.mxu0 %v6708_v1  ;;  %2849 = vmatprep.subr.bf16.mxu1 %v6718_v50 }
 0x7aa   :  { %2356 = vmatmul.mubr.bf16.gmra.mxu0 %v4792_v59  ;;  %2469 = vmatmul.mubr.bf16.gmra.mxu1 %v4792_v59  ;;  %v7596_v59 = vld [vmem:[#allocation63_spill] sm:$0xff] }
 0x7ab   :  { %2365 = vmatprep.mubr.bf16.mxu0 %v7551_v55  ;;  %2478 = vmatprep.mubr.bf16.mxu1 %v7551_v55 }
 0x7ac   :  { %2807 = vmatpush1.bf16.msra.mxu0 %v6712_v49  ;;  %2850 = vmatpush1.bf16.msra.mxu1 %v6720_v23 }
 0x7ad   :  { %2808 = vmatprep.subr.bf16.mxu0 %v6716_v42  ;;  %2851 = vmatprep.subr.bf16.mxu1 %v6730_v31 }
 0x7b0   :  { %2809 = vmatpush1.bf16.msra.mxu0 %v6724_v4  ;;  %2852 = vmatpush1.bf16.msra.mxu1 %v6732_v32 }
 0x7b1   :  { %2810 = vmatprep.subr.bf16.mxu0 %v6728_v16  ;;  %2853 = vmatprep.subr.bf16.mxu1 %v6740_v39 }
 0x7b2   :  { %2366 = vmatmul.mubr.bf16.gmra.mxu0 %v4793_v52  ;;  %2479 = vmatmul.mubr.bf16.gmra.mxu1 %v4793_v52 }
 0x7b3   :  { %2375 = vmatprep.mubr.bf16.mxu0 %v7551_v55  ;;  %2488 = vmatprep.mubr.bf16.mxu1 %v7551_v55 }
 0x7b4   :  { %2811 = vmatpush1.bf16.msra.mxu0 %v6736_v35  ;;  %2854 = vmatpush1.bf16.msra.mxu1 %v6742_v10 }
 0x7b5   :  { %2812 = vmatprep.subr.bf16.mxu0 %v6744_v41  ;;  %2855 = vmatprep.subr.bf16.mxu1 %v6752_v48 }
 0x7b8   :  { %2813 = vmatpush1.bf16.msra.mxu0 %v6748_v44  ;;  %2856 = vmatpush1.bf16.msra.mxu1 %v6754_v63 }
 0x7b9   :  { %2949 = vmatprep.subr.bf16.mxu0 %v6663_v2  ;;  %2992 = vmatprep.subr.bf16.mxu1 %v6665_v5 }
 0x7ba   :  { %2376 = vmatmul.mubr.bf16.gmra.mxu0 %v4794_v13  ;;  %2489 = vmatmul.mubr.bf16.gmra.mxu1 %v4794_v13 }
 0x7bb   :  { %2385 = vmatprep.mubr.bf16.mxu0 %v7551_v55  ;;  %2498 = vmatprep.mubr.bf16.mxu1 %v7551_v55 }
 0x7c2   :  { %2386 = vmatmul.mubr.bf16.gmra.mxu0 %v4795_v53  ;;  %2499 = vmatmul.mubr.bf16.gmra.mxu1 %v4795_v53 }
 0x7c3   :  { %2395 = vmatprep.mubr.bf16.mxu0 %v7551_v55  ;;  %2508 = vmatprep.mubr.bf16.mxu1 %v7551_v55 }
 0x7ca   :  { %2396 = vmatmul.mubr.bf16.gmra.mxu0 %v4796_v3  ;;  %2509 = vmatmul.mubr.bf16.gmra.mxu1 %v4796_v3 }
 0x7cb   :  { %2405 = vmatprep.mubr.bf16.mxu0 %v7551_v55  ;;  %2518 = vmatprep.mubr.bf16.mxu1 %v7551_v55 }
 0x83a   :  { %v1902_v11 = vpop.f32.mrf.mxu0  ;;  %v1945_v20 = vpop.f32.mrf.mxu1 }
 0x83b   :  { %v1954_v15 = vadd.f32 %v1902_v11, %v7591_v33  ;;  %v1956_v52 = vadd.f32 %v1945_v20, %v7596_v59  ;;  %v7598_v11 = vld [vmem:[#allocation65_spill] sm:$0xff] }
 0x83c   :  { %v1904_v21 = vpop.f32.mrf.mxu0  ;;  %v1947_v14 = vpop.f32.mrf.mxu1 }
 0x83d   :  { %v4414_v24 = vmul.f32 -1.442695, %v1954_v15  ;;  %v1955_v27 = vadd.f32 %v1904_v21, %v7592_v25  ;;  %v1957_v46 = vadd.f32 %v1947_v14, %v7595_v54 }
 0x83e   :  { %v1906_v29 = vpop.f32.mrf.mxu0  ;;  %v1949_v9 = vpop.f32.mrf.mxu1 }
 0x83f   :  { %5070 = vpow2.f32 %v4414_v24  ;;  %v4416_v38 = vmul.f32 -1.442695, %v1955_v27  ;;  %v1958_v12 = vadd.f32 %v1906_v29, %v7594_v19  ;;  %v4418_v13 = vmul.f32 -1.442695, %v1957_v46 }
 0x840   :  { %v1908_v30 = vpop.f32.mrf.mxu0  ;;  %v1951_v0 = vpop.f32.mrf.mxu1  ;;  %v1960_v33 = vadd.f32 %v1949_v9, %v7598_v11 }
 0x841   :  { %5072 = vpow2.f32 %v4416_v38  ;;  %v4415_v8 = vmul.f32 -1.442695, %v1958_v12  ;;  %v1959_v45 = vadd.f32 %v1908_v30, %v334_v37  ;;  %v1961_v53 = vadd.f32 %v1951_v0, %v7597_v7 }
 0x843   :  { %5074 = vpow2.f32 %v4415_v8  ;;  %v4417_v51 = vmul.f32 -1.442695, %v1959_v45  ;;  %v4419_v24 = vmul.f32 -1.442695, %v1961_v53 }
 0x845   :  { %5076 = vpow2.f32 %v4417_v51 }
 0x846   :  { %5078 = vtanh.f32 %v1956_v52 }
 0x847   :  { %5080 = vpow2.f32 %v4418_v13 }
 0x84c   :  { %v5071_v3 = vpop.eup %5070 }
 0x84d   :  { %v1968_v15 = vadd.f32 1.0, %v5071_v3 }
 0x84e   :  { %v5073_v21 = vpop.eup %5072 }
 0x84f   :  { %5082 = vrcp.f32 %v1968_v15  ;;  %v1980_v25 = vadd.f32 1.0, %v5073_v21 }
 0x850   :  { %v5075_v27 = vpop.eup %5074  ;;  %5084 = vtanh.f32 %v1960_v33 }
 0x851   :  { %5086 = vrcp.f32 %v1980_v25  ;;  %v1969_v29 = vadd.f32 1.0, %v5075_v27 }
 0x852   :  { %v5077_v36 = vpop.eup %5076  ;;  %5088 = vpow2.f32 %v4419_v24  ;;  %v7599_v24 = vmov 0.0|0.0  }
 0x853   :  { %5090 = vrcp.f32 %v1969_v29  ;;  %v1981_v20 = vadd.f32 1.0, %v5077_v36  ;;  %v5079_v37 = vpop.eup %5078 }
 0x854   :  { %v5081_v38 = vpop.eup %5080 }
 0x855   :  { %5092 = vrcp.f32 %v1981_v20  ;;  %v2000_v8 = vadd.f32 1.0, %v5081_v38 }
 0x857   :  { %5094 = vrcp.f32 %v2000_v8 }
 0x85a   :  { %v6812_v25 = vpop.f32.mrf.mxu1 }
 0x85c   :  { %v5083_v14 = vpop.eup %5082  ;;  %v6816_v29 = vpop.f32.mrf.mxu1 }
 0x85d   :  { %v5085_v19 = vpop.eup %5084  ;;  %v1990_v12 = vmul.f32 %v5083_v14, %v5079_v37 }
 0x85e   :  { %v5087_v30 = vpop.eup %5086  ;;  %v6820_v20 = vpop.f32.mrf.mxu1 }
 0x85f   :  { %v5089_v45 = vpop.eup %5088  ;;  %v1988_v9 = vmul.f32 %v5087_v30, %v6640_v34 }
 0x860   :  { %v5091_v51 = vpop.eup %5090  ;;  %v2001_v59 = vadd.f32 1.0, %v5089_v45  ;;  %v6824_v38 = vpop.f32.mrf.mxu1 }
 0x861   :  { %v1992_v54 = vadd.f32 %v1990_v12, %v1988_v9  ;;  %v1991_v46 = vmul.f32 %v5091_v51, %v5085_v19 }
 0x862   :  { %v5093_v0 = vpop.eup %5092  ;;  %v6828_v19 = vpop.f32.mrf.mxu1 }
 0x863   :  { %5096 = vtanh.f32 %v1992_v54  ;;  %v1989_v52 = vmul.f32 %v5093_v0, %v6643_v28  ;;  %v6810_v28 = vpop.f32.mrf.mxu0  ;;  %7600 = vst [vmem:[#allocation37_spill] sm:$0xff] %v6828_v19 }
 0x864   :  { %5098 = vrcp.f32 %v2001_v59  ;;  %v5095_v7 = vpop.eup %5094  ;;  %v6832_v30 = vpop.f32.mrf.mxu1 }
 0x865   :  { %v1993_v13 = vadd.f32 %v1991_v46, %v1989_v52  ;;  %v6814_v27 = vpop.f32.mrf.mxu0  ;;  %7601 = vst [vmem:[#allocation33_spill] sm:$0xff] %v6832_v30 }
 0x866   :  { %v6836_v45 = vpop.f32.mrf.mxu1 }
 0x867   :  { %5100 = vtanh.f32 %v1993_v13  ;;  %v6818_v36 = vpop.f32.mrf.mxu0  ;;  %7602 = vst [vmem:[#allocation36_spill] sm:$0xff] %v6836_v45 }
 0x868   :  { %v6840_v51 = vpop.f32.mrf.mxu1 }
 0x869   :  { %v6822_v37 = vpop.f32.mrf.mxu0  ;;  %7603 = vst [vmem:[#allocation29_spill] sm:$0xff] %v6840_v51 }
 0x86a   :  { %v6844_v46 = vpop.f32.mrf.mxu1 }
 0x86b   :  { %v6826_v14 = vpop.f32.mrf.mxu0  ;;  %7605 = vst [vmem:[#allocation31_spill] sm:$0xff] %v6844_v46 }
 0x86c   :  { %v6848_v59 = vpop.f32.mrf.mxu1 }
 0x86d   :  { %v6830_v12 = vpop.f32.mrf.mxu0  ;;  %7607 = vst [vmem:[#allocation42_spill] sm:$0xff] %v6848_v59 }
 0x86e   :  { %v6852_v13 = vpop.f32.mrf.mxu1 }
 0x86f   :  { %v6834_v8 = vpop.f32.mrf.mxu0  ;;  %7609 = vst [vmem:[#allocation40_spill] sm:$0xff] %v6852_v13 }
 0x870   :  { %v5097_v53 = vpop.eup %5096 }
 0x871   :  { %v2008_v3 = vmul.f32 %v5097_v53, %v5095_v7  ;;  %v5099_v11 = vpop.eup %5098  ;;  %v6838_v9 = vpop.f32.mrf.mxu0 }
 0x872   :  { %v6856_v53 = vpop.f32.mrf.mxu1 }
 0x873   :  { %v6842_v54 = vpop.f32.mrf.mxu0  ;;  %7611 = vst [vmem:[#allocation32_spill] sm:$0xff] %v6856_v53 }
 0x874   :  { %v5101_v33 = vpop.eup %5100  ;;  %7604 = vst [vmem:[#allocation28_spill] sm:$0xff] %v6842_v54 }
 0x875   :  { %v2009_v15 = vmul.f32 %v5101_v33, %v5099_v11  ;;  %v6846_v0 = vpop.f32.mrf.mxu0  ;;  %v6860_v11 = vpop.f32.mrf.mxu1 }
 0x876   :  { %7606 = vst [vmem:[#allocation30_spill] sm:$0xff] %v6846_v0  ;;  %7613 = vst [vmem:[#allocation35_spill] sm:$0xff] %v6860_v11 }
 0x877   :  { %v4603_v21 = vpack.c.bf16 %v2009_v15, %v2008_v3  ;;  %v6850_v52 = vpop.f32.mrf.mxu0  ;;  %v6864_v15 = vpop.f32.mrf.mxu1 }
 0x878   :  { %7608 = vst [vmem:[#allocation45_spill] sm:$0xff] %v6850_v52  ;;  %7615 = vst [vmem:[#allocation50_spill] sm:$0xff] %v6864_v15 }
 0x879   :  { %4604 = vst [vmem:[#allocation3 + $0x38] sm:$0xff] %v4603_v21   ;;  %v6854_v7 = vpop.f32.mrf.mxu0 }
 0x87a   :  { %7610 = vst [vmem:[#allocation44_spill] sm:$0xff] %v6854_v7 }
 0x87b   :  { %v6858_v3 = vpop.f32.mrf.mxu0 }
 0x87c   :  { %7612 = vst [vmem:[#allocation34_spill] sm:$0xff] %v6858_v3 }
 0x87d   :  { %v6862_v33 = vpop.f32.mrf.mxu0 }
 0x87e   :  { %7614 = vst [vmem:[#allocation38_spill] sm:$0xff] %v6862_v33 }
 0x87f   :  { %v6866_v21 = vpop.f32.mrf.mxu0 }
 0x880   :  { %v4836_v34 = vld [vmem:[#allocation3 + $0x38] sm:$0xff]   ;;  %7616 = vst [vmem:[#allocation53_spill] sm:$0xff] %v6866_v21 }
 0x881   :  { %2406 = vmatmul.mubr.bf16.gmra.mxu0 %v4836_v34  ;;  %2519 = vmatmul.mubr.bf16.gmra.mxu1 %v4836_v34  ;;  %v6868_v34 = vpop.f32.mrf.mxu1 }
 0x882   :  { %2830 = vmatprep.mubr.bf16.mxu0 %v7551_v55  ;;  %2873 = vmatprep.mubr.bf16.mxu1 %v7551_v55  ;;  %7617 = vst [vmem:[#allocation48_spill] sm:$0xff] %v6868_v34 }
 0x883   :  { %v6872_v46 = vpop.f32.mrf.mxu1 }
 0x884   :  { %7619 = vst [vmem:[#allocation39_spill] sm:$0xff] %v6872_v46 }
 0x885   :  { %v6876_v59 = vpop.f32.mrf.mxu1 }
 0x886   :  { %7621 = vst [vmem:[#allocation43_spill] sm:$0xff] %v6876_v59 }
 0x887   :  { %v6880_v3 = vpop.f32.mrf.mxu1 }
 0x888   :  { %7623 = vst [vmem:[#allocation56_spill] sm:$0xff] %v6880_v3 }
 0x889   :  { %2831 = vmatmul.mubr.bf16.vlgmr.msra.gmra.mxu0 %v7599_v24  ;;  %2874 = vmatmul.mubr.bf16.vlgmr.msra.gmra.mxu1 %v7599_v24  ;;  %v6870_v24 = vpop.f32.mrf.mxu0  ;;  %v6884_v33 = vpop.f32.mrf.mxu1 }
 0x88a   :  { %2950 = vmatpush1.bf16.msra.mxu0 %v6667_v58  ;;  %2993 = vmatpush1.bf16.msra.mxu1 %v6669_v61  ;;  %7618 = vst [vmem:[#allocation52_spill] sm:$0xff] %v6870_v24  ;;  %7625 = vst [vmem:[#allocation57_spill] sm:$0xff] %v6884_v33 }
 0x88b   :  { %2951 = vmatprep.subr.bf16.mxu0 %v6675_v60  ;;  %2994 = vmatprep.subr.bf16.mxu1 %v6677_v62  ;;  %v6874_v13 = vpop.f32.mrf.mxu0  ;;  %v6888_v21 = vpop.f32.mrf.mxu1 }
 0x88c   :  { %2981 = vmatprep.mubr.bf16.mxu0 %v7551_v55  ;;  %3024 = vmatprep.mubr.bf16.mxu1 %v7551_v55  ;;  %7620 = vst [vmem:[#allocation41_spill] sm:$0xff] %v6874_v13  ;;  %7627 = vst [vmem:[#allocation49_spill] sm:$0xff] %v6888_v21 }
 0x88d   :  { %v6878_v53 = vpop.f32.mrf.mxu0  ;;  %v6892_v24 = vpop.f32.mrf.mxu1 }
 0x88e   :  { %2952 = vmatpush1.bf16.msra.mxu0 %v6679_v22  ;;  %2995 = vmatpush1.bf16.msra.mxu1 %v6681_v57  ;;  %7622 = vst [vmem:[#allocation46_spill] sm:$0xff] %v6878_v53  ;;  %7629 = vst [vmem:[#allocation54_spill] sm:$0xff] %v6892_v24 }
 0x88f   :  { %2953 = vmatprep.subr.bf16.mxu0 %v6687_v56  ;;  %2996 = vmatprep.subr.bf16.mxu1 %v6689_v26  ;;  %v6882_v11 = vpop.f32.mrf.mxu0  ;;  %v6896_v13 = vpop.f32.mrf.mxu1 }
 0x890   :  { %7624 = vst [vmem:[#allocation55_spill] sm:$0xff] %v6882_v11  ;;  %7631 = vst [vmem:[#allocation20_spill] sm:$0xff] %v6896_v13 }
 0x891   :  { %v6886_v15 = vpop.f32.mrf.mxu0  ;;  %v6900_v53 = vpop.f32.mrf.mxu1 }
 0x892   :  { %2954 = vmatpush1.bf16.msra.mxu0 %v6691_v17  ;;  %2997 = vmatpush1.bf16.msra.mxu1 %v6693_v43  ;;  %7626 = vst [vmem:[#allocation47_spill] sm:$0xff] %v6886_v15  ;;  %7633 = vst [vmem:[#allocation23_spill] sm:$0xff] %v6900_v53  ;;  %v2073_v53 = vld [vmem:[#allocation12] sm:$0xf] }
 0x893   :  { %2955 = vmatprep.subr.bf16.mxu0 %v6699_v18  ;;  %2998 = vmatprep.subr.bf16.mxu1 %v6701_v40  ;;  %v6890_v34 = vpop.f32.mrf.mxu0  ;;  %v6904_v11 = vpop.f32.mrf.mxu1 }
 0x894   :  { %7628 = vst [vmem:[#allocation51_spill] sm:$0xff] %v6890_v34  ;;  %7635 = vst [vmem:[#allocation60_spill] sm:$0xff] %v6904_v11 }
 0x895   :  { %v6894_v46 = vpop.f32.mrf.mxu0  ;;  %v6908_v15 = vpop.f32.mrf.mxu1 }
 0x896   :  { %2956 = vmatpush1.bf16.msra.mxu0 %v6703_v47  ;;  %2999 = vmatpush1.bf16.msra.mxu1 %v6705_v6  ;;  %7630 = vst [vmem:[#allocation58_spill] sm:$0xff] %v6894_v46  ;;  %7637 = vst [vmem:[#allocation62_spill] sm:$0xff] %v6908_v15 }
 0x897   :  { %2957 = vmatprep.subr.bf16.mxu0 %v6708_v1  ;;  %3000 = vmatprep.subr.bf16.mxu1 %v6718_v50  ;;  %v6898_v59 = vpop.f32.mrf.mxu0  ;;  %v6912_v34 = vpop.f32.mrf.mxu1 }
 0x898   :  { %7632 = vst [vmem:[#allocation21_spill] sm:$0xff] %v6898_v59  ;;  %7639 = vst [vmem:[#allocation24_spill] sm:$0xff] %v6912_v34 }
 0x899   :  { %v6902_v3 = vpop.f32.mrf.mxu0  ;;  %v6916_v46 = vpop.f32.mrf.mxu1 }
 0x89a   :  { %2958 = vmatpush1.bf16.msra.mxu0 %v6712_v49  ;;  %3001 = vmatpush1.bf16.msra.mxu1 %v6720_v23  ;;  %7634 = vst [vmem:[#allocation22_spill] sm:$0xff] %v6902_v3  ;;  %7641 = vst [vmem:[#allocation27_spill] sm:$0xff] %v6916_v46 }
 0x89b   :  { %2959 = vmatprep.subr.bf16.mxu0 %v6716_v42  ;;  %3002 = vmatprep.subr.bf16.mxu1 %v6730_v31  ;;  %v6906_v33 = vpop.f32.mrf.mxu0  ;;  %v6920_v59 = vpop.f32.mrf.mxu1 }
 0x89c   :  { %7636 = vst [vmem:[#allocation59_spill] sm:$0xff] %v6906_v33  ;;  %7643 = vst [vmem:[#allocation64_spill] sm:$0xff] %v6920_v59 }
 0x89d   :  { %v6910_v21 = vpop.f32.mrf.mxu0 }
 0x89e   :  { %2960 = vmatpush1.bf16.msra.mxu0 %v6724_v4  ;;  %3003 = vmatpush1.bf16.msra.mxu1 %v6732_v32  ;;  %7638 = vst [vmem:[#allocation61_spill] sm:$0xff] %v6910_v21  ;;  %v7648_v21 = vld [vmem:[#allocation19_spill] sm:$0xff] }
 0x89f   :  { %2961 = vmatprep.subr.bf16.mxu0 %v6728_v16  ;;  %3004 = vmatprep.subr.bf16.mxu1 %v6740_v39  ;;  %v6914_v24 = vpop.f32.mrf.mxu0  ;;  %v7649_v7 = vsub.s32 0, %v7648_v21  ;;  %v7655_v19 = vsub.s32 3, %v7648_v21 }
 0x8a0   :  { %7640 = vst [vmem:[#allocation25_spill] sm:$0xff] %v6914_v24 }
 0x8a1   :  { %v6918_v13 = vpop.f32.mrf.mxu0  ;;  %v6932_v34 = vrot.slane %v2073_v53, %v7649_v7  ;;  %v6956_v30 = vrot.slane %v2073_v53, %v7655_v19 }
 0x8a2   :  { %2962 = vmatpush1.bf16.msra.mxu0 %v6736_v35  ;;  %3005 = vmatpush1.bf16.msra.mxu1 %v6742_v10  ;;  %7642 = vst [vmem:[#allocation26_spill] sm:$0xff] %v6918_v13  ;;  %v7652_v13 = vsub.s32 1, %v7648_v21 }
 0x8a3   :  { %2963 = vmatprep.subr.bf16.mxu0 %v6744_v41  ;;  %3006 = vmatprep.subr.bf16.mxu1 %v6752_v48 }
 0x8a4   :  { %v6940_v59 = vrot.slane %v2073_v53, %v7652_v13 }
 0x8a6   :  { %2964 = vmatpush1.bf16.msra.mxu0 %v6748_v44  ;;  %3007 = vmatpush1.bf16.msra.mxu1 %v6754_v63  ;;  %v2340_v7 = vadd.f32 %v6814_v27, %v6940_v59 }
 0x8a7   :  { %3100 = vmatprep.subr.bf16.mxu0 %v6663_v2  ;;  %3143 = vmatprep.subr.bf16.mxu1 %v6665_v5 }
 0x941   :  { %v6922_v3 = vpop.f32.mrf.mxu0  ;;  %v6924_v11 = vpop.f32.mrf.mxu1 }
 0x942   :  { %7644 = vst [vmem:[#allocation63_spill] sm:$0xff] %v6922_v3  ;;  %7645 = vst [vmem:[#allocation66_spill] sm:$0xff] %v6924_v11  ;;  %v2338_v11 = vadd.f32 %v6810_v28, %v6932_v34 }
 0x943   :  { %v6926_v33 = vpop.f32.mrf.mxu0  ;;  %v6928_v15 = vpop.f32.mrf.mxu1 }
 0x944   :  { %7646 = vst [vmem:[#allocation65_spill] sm:$0xff] %v6926_v33  ;;  %7647 = vst [vmem:[#allocation67_spill] sm:$0xff] %v6928_v15 }
 0x945   :  { %v6934_v24 = vpop.f32.mrf.mxu0  ;;  %v6936_v46 = vpop.f32.mrf.mxu1 }
 0x946   :  { %7650 = vst [vmem:[#allocation19_spill] sm:$0xff] %v6934_v24  ;;  %7651 = vst [vmem:[#allocation68_spill] sm:$0xff] %v6936_v46  ;;  %v2342_v46 = vadd.f32 %v6818_v36, %v6932_v34  ;;  %v7656_v36 = vsub.s32 2, %v7648_v21 }
 0x947   :  { %v6942_v52 = vpop.f32.mrf.mxu0  ;;  %v6944_v3 = vpop.f32.mrf.mxu1 }
 0x948   :  { %7653 = vst [vmem:[#allocation69_spill] sm:$0xff] %v6942_v52  ;;  %7654 = vst [vmem:[#allocation70_spill] sm:$0xff] %v6944_v3  ;;  %v2344_v52 = vadd.f32 %v6822_v37, %v6940_v59  ;;  %v2453_v37 = vadd.f32 %v6816_v29, %v6956_v30 }
 0x949   :  { %v2832_v15 = vpop.f32.mrf.mxu0  ;;  %v2875_v0 = vpop.f32.mrf.mxu1 }
 0x94a   :  { %v2884_v33 = vadd.f32 %v2832_v15, %v2338_v11 }
 0x94b   :  { %v2834_v24 = vpop.f32.mrf.mxu0  ;;  %v2877_v51 = vpop.f32.mrf.mxu1 }
 0x94c   :  { %v4494_v54 = vmul.f32 -1.442695, %v2884_v33  ;;  %v2885_v13 = vadd.f32 %v2834_v24, %v2340_v7  ;;  %v6960_v33 = vrot.slane %v2073_v53, %v7656_v36 }
 0x94d   :  { %v2836_v45 = vpop.f32.mrf.mxu0  ;;  %v2879_v24 = vpop.f32.mrf.mxu1 }
 0x94e   :  { %5102 = vpow2.f32 %v4494_v54  ;;  %v4496_v3 = vmul.f32 -1.442695, %v2885_v13  ;;  %v2888_v28 = vadd.f32 %v2836_v45, %v2342_v46  ;;  %v2887_v45 = vadd.f32 %v2877_v51, %v2453_v37 }
 0x94f   :  { %v2838_v27 = vpop.f32.mrf.mxu0  ;;  %v2451_v19 = vadd.f32 %v6812_v25, %v6960_v33  ;;  %v2881_v54 = vpop.f32.mrf.mxu1  ;;  %v2457_v46 = vadd.f32 %v6824_v38, %v6956_v30  ;;  %v2455_v53 = vadd.f32 %v6820_v20, %v6960_v33 }
 0x950   :  { %5104 = vpow2.f32 %v4496_v3  ;;  %v4495_v11 = vmul.f32 -1.442695, %v2888_v28  ;;  %v2889_v15 = vadd.f32 %v2838_v27, %v2344_v52  ;;  %v4498_v3 = vmul.f32 -1.442695, %v2887_v45 }
 0x951   :  { %v2886_v52 = vadd.f32 %v2875_v0, %v2451_v19  ;;  %v2891_v21 = vadd.f32 %v2881_v54, %v2457_v46  ;;  %v2890_v28 = vadd.f32 %v2879_v24, %v2455_v53 }
 0x952   :  { %5106 = vpow2.f32 %v4495_v11  ;;  %v4497_v7 = vmul.f32 -1.442695, %v2889_v15 }
 0x953   :  { %v4499_v51 = vmul.f32 -1.442695, %v2891_v21 }
 0x954   :  { %5108 = vpow2.f32 %v4497_v7 }
 0x955   :  { %5110 = vtanh.f32 %v2886_v52 }
 0x956   :  { %5112 = vpow2.f32 %v4498_v3 }
 0x95b   :  { %v5103_v13 = vpop.eup %5102 }
 0x95c   :  { %v2898_v27 = vadd.f32 1.0, %v5103_v13 }
 0x95d   :  { %v5105_v29 = vpop.eup %5104 }
 0x95e   :  { %5114 = vrcp.f32 %v2898_v27  ;;  %v2910_v11 = vadd.f32 1.0, %v5105_v29 }
 0x95f   :  { %v5107_v25 = vpop.eup %5106  ;;  %5116 = vtanh.f32 %v2890_v28 }
 0x960   :  { %5118 = vrcp.f32 %v2910_v11  ;;  %v2899_v15 = vadd.f32 1.0, %v5107_v25 }
 0x961   :  { %v5109_v38 = vpop.eup %5108  ;;  %5120 = vpow2.f32 %v4499_v51 }
 0x962   :  { %5122 = vrcp.f32 %v2899_v15  ;;  %v2911_v0 = vadd.f32 1.0, %v5109_v38  ;;  %v5111_v20 = vpop.eup %5110 }
 0x963   :  { %v5113_v36 = vpop.eup %5112 }
 0x964   :  { %5124 = vrcp.f32 %v2911_v0  ;;  %v2930_v52 = vadd.f32 1.0, %v5113_v36 }
 0x966   :  { %5126 = vrcp.f32 %v2930_v52 }
 0x96b   :  { %v5115_v7 = vpop.eup %5114 }
 0x96c   :  { %v5117_v24 = vpop.eup %5116  ;;  %v2920_v37 = vmul.f32 %v5115_v7, %v5111_v20  ;;  %v2348_v20 = vadd.f32 %v6826_v14, %v6932_v34  ;;  %v2350_v7 = vadd.f32 %v6830_v12, %v6940_v59 }
 0x96d   :  { %v5119_v45 = vpop.eup %5118 }
 0x96e   :  { %v5121_v19 = vpop.eup %5120  ;;  %v2918_v54 = vmul.f32 0.0, %v5119_v45 }
 0x96f   :  { %v5123_v46 = vpop.eup %5122  ;;  %v2931_v13 = vadd.f32 1.0, %v5121_v19  ;;  %v2352_v19 = vadd.f32 %v6834_v8, %v6932_v34 }
 0x970   :  { %v6970_v53 = vadd.f32 %v2920_v37, %v2918_v54  ;;  %v2921_v3 = vmul.f32 %v5123_v46, %v5117_v24 }
 0x971   :  { %v5125_v21 = vpop.eup %5124 }
 0x972   :  { %v2919_v28 = vmul.f32 0.0, %v5125_v21  ;;  %5128 = vtanh.f32 %v6970_v53 }
 0x973   :  { %5130 = vrcp.f32 %v2931_v13  ;;  %v5127_v29 = vpop.eup %5126 }
 0x974   :  { %v6973_v27 = vadd.f32 %v2921_v3, %v2919_v28  ;;  %v2354_v3 = vadd.f32 %v6838_v9, %v6940_v59 }
 0x976   :  { %5132 = vtanh.f32 %v6973_v27 }
 0x97f   :  { %v5129_v51 = vpop.eup %5128 }
 0x980   :  { %v5131_v11 = vpop.eup %5130  ;;  %v2938_v15 = vmul.f32 %v5129_v51, %v5127_v29 }
 0x983   :  { %v5133_v25 = vpop.eup %5132 }
 0x984   :  { %v2939_v38 = vmul.f32 %v5133_v25, %v5131_v11  ;;  %v7657_v25 = vld [vmem:[#allocation33_spill] sm:$0xff] }
 0x985   :  { %v2463_v8 = vadd.f32 %v7657_v25, %v6956_v30 }
 0x986   :  { %v2948_v0 = vpack.c.bf16 %v2939_v38, %v2938_v15  ;;  %v7658_v38 = vld [vmem:[#allocation37_spill] sm:$0xff] }
 0x988   :  { %2982 = vmatmul.mubr.bf16.vlgmr.msra.gmra.mxu0 %v2948_v0  ;;  %3025 = vmatmul.mubr.bf16.vlgmr.msra.gmra.mxu1 %v2948_v0  ;;  %v2461_v0 = vadd.f32 %v7658_v38, %v6960_v33 }
 0x989   :  { %3101 = vmatpush1.bf16.msra.mxu0 %v6667_v58  ;;  %3144 = vmatpush1.bf16.msra.mxu1 %v6669_v61 }
 0x98a   :  { %3102 = vmatprep.subr.bf16.mxu0 %v6675_v60  ;;  %3145 = vmatprep.subr.bf16.mxu1 %v6677_v62 }
 0x98b   :  { %3132 = vmatprep.mubr.bf16.mxu0 %v7551_v55  ;;  %3175 = vmatprep.mubr.bf16.mxu1 %v7551_v55 }
 0x98d   :  { %3103 = vmatpush1.bf16.msra.mxu0 %v6679_v22  ;;  %3146 = vmatpush1.bf16.msra.mxu1 %v6681_v57 }
 0x98e   :  { %3104 = vmatprep.subr.bf16.mxu0 %v6687_v56  ;;  %3147 = vmatprep.subr.bf16.mxu1 %v6689_v26 }
 0x991   :  { %3105 = vmatpush1.bf16.msra.mxu0 %v6691_v17  ;;  %3148 = vmatpush1.bf16.msra.mxu1 %v6693_v43 }
 0x992   :  { %3106 = vmatprep.subr.bf16.mxu0 %v6699_v18  ;;  %3149 = vmatprep.subr.bf16.mxu1 %v6701_v40 }
 0x995   :  { %3107 = vmatpush1.bf16.msra.mxu0 %v6703_v47  ;;  %3150 = vmatpush1.bf16.msra.mxu1 %v6705_v6 }
 0x996   :  { %3108 = vmatprep.subr.bf16.mxu0 %v6708_v1  ;;  %3151 = vmatprep.subr.bf16.mxu1 %v6718_v50 }
 0x999   :  { %3109 = vmatpush1.bf16.msra.mxu0 %v6712_v49  ;;  %3152 = vmatpush1.bf16.msra.mxu1 %v6720_v23 }
 0x99a   :  { %3110 = vmatprep.subr.bf16.mxu0 %v6716_v42  ;;  %3153 = vmatprep.subr.bf16.mxu1 %v6730_v31 }
 0x99d   :  { %3111 = vmatpush1.bf16.msra.mxu0 %v6724_v4  ;;  %3154 = vmatpush1.bf16.msra.mxu1 %v6732_v32 }
 0x99e   :  { %3112 = vmatprep.subr.bf16.mxu0 %v6728_v16  ;;  %3155 = vmatprep.subr.bf16.mxu1 %v6740_v39 }
 0x9a1   :  { %3113 = vmatpush1.bf16.msra.mxu0 %v6736_v35  ;;  %3156 = vmatpush1.bf16.msra.mxu1 %v6742_v10 }
 0x9a2   :  { %3114 = vmatprep.subr.bf16.mxu0 %v6744_v41  ;;  %3157 = vmatprep.subr.bf16.mxu1 %v6752_v48 }
 0x9a5   :  { %3115 = vmatpush1.bf16.msra.mxu0 %v6748_v44  ;;  %3158 = vmatpush1.bf16.msra.mxu1 %v6754_v63 }
 0x9a6   :  { %3251 = vmatprep.subr.bf16.mxu0 %v6663_v2  ;;  %3294 = vmatprep.subr.bf16.mxu1 %v6665_v5 }
 0xa48   :  { %v2983_v36 = vpop.f32.mrf.mxu0  ;;  %v3026_v37 = vpop.f32.mrf.mxu1 }
 0xa49   :  { %v3035_v24 = vadd.f32 %v2983_v36, %v2348_v20  ;;  %v7659_v20 = vld [vmem:[#allocation29_spill] sm:$0xff] }
 0xa4a   :  { %v2985_v45 = vpop.f32.mrf.mxu0  ;;  %v3028_v13 = vpop.f32.mrf.mxu1  ;;  %v2467_v36 = vadd.f32 %v7659_v20, %v6956_v30 }
 0xa4b   :  { %v4500_v54 = vmul.f32 -1.442695, %v3035_v24  ;;  %v3036_v46 = vadd.f32 %v2985_v45, %v2350_v7  ;;  %v3038_v15 = vadd.f32 %v3028_v13, %v2463_v8  ;;  %v3037_v7 = vadd.f32 %v3026_v37, %v2461_v0  ;;  %v7660_v24 = vld [vmem:[#allocation36_spill] sm:$0xff] }
 0xa4c   :  { %v2987_v52 = vpop.f32.mrf.mxu0  ;;  %v3030_v51 = vpop.f32.mrf.mxu1  ;;  %v2465_v45 = vadd.f32 %v7660_v24, %v6960_v33 }
 0xa4d   :  { %5134 = vpow2.f32 %v4500_v54  ;;  %v4502_v21 = vmul.f32 -1.442695, %v3036_v46  ;;  %v3039_v14 = vadd.f32 %v2987_v52, %v2352_v19  ;;  %v4504_v19 = vmul.f32 -1.442695, %v3038_v15 }
 0xa4e   :  { %v2989_v28 = vpop.f32.mrf.mxu0  ;;  %v3032_v9 = vpop.f32.mrf.mxu1  ;;  %v3041_v52 = vadd.f32 %v3030_v51, %v2465_v45 }
 0xa4f   :  { %5136 = vpow2.f32 %v4502_v21  ;;  %v4501_v29 = vmul.f32 -1.442695, %v3039_v14  ;;  %v3040_v12 = vadd.f32 %v2989_v28, %v2354_v3  ;;  %v3042_v54 = vadd.f32 %v3032_v9, %v2467_v36 }
 0xa51   :  { %5138 = vpow2.f32 %v4501_v29  ;;  %v4503_v11 = vmul.f32 -1.442695, %v3040_v12  ;;  %v4505_v13 = vmul.f32 -1.442695, %v3042_v54 }
 0xa53   :  { %5140 = vpow2.f32 %v4503_v11 }
 0xa54   :  { %5142 = vtanh.f32 %v3037_v7 }
 0xa55   :  { %5144 = vpow2.f32 %v4504_v19 }
 0xa5a   :  { %v5135_v46 = vpop.eup %5134 }
 0xa5b   :  { %v3049_v3 = vadd.f32 1.0, %v5135_v46 }
 0xa5c   :  { %v5137_v21 = vpop.eup %5136 }
 0xa5d   :  { %5146 = vrcp.f32 %v3049_v3  ;;  %v3061_v14 = vadd.f32 1.0, %v5137_v21 }
 0xa5e   :  { %v5139_v28 = vpop.eup %5138  ;;  %5148 = vtanh.f32 %v3041_v52 }
 0xa5f   :  { %5150 = vrcp.f32 %v3061_v14  ;;  %v3050_v29 = vadd.f32 1.0, %v5139_v28 }
 0xa60   :  { %v5141_v12 = vpop.eup %5140  ;;  %5152 = vpow2.f32 %v4505_v13 }
 0xa61   :  { %5154 = vrcp.f32 %v3050_v29  ;;  %v3062_v37 = vadd.f32 1.0, %v5141_v12  ;;  %v5143_v11 = vpop.eup %5142 }
 0xa62   :  { %v5145_v25 = vpop.eup %5144 }
 0xa63   :  { %5156 = vrcp.f32 %v3062_v37  ;;  %v3081_v36 = vadd.f32 1.0, %v5145_v25 }
 0xa65   :  { %5158 = vrcp.f32 %v3081_v36 }
 0xa6a   :  { %v5147_v8 = vpop.eup %5146 }
 0xa6b   :  { %v5149_v51 = vpop.eup %5148  ;;  %v3071_v15 = vmul.f32 %v5147_v8, %v5143_v11 }
 0xa6c   :  { %v5151_v38 = vpop.eup %5150 }
 0xa6d   :  { %v5153_v0 = vpop.eup %5152  ;;  %v3069_v9 = vmul.f32 %v5151_v38, %v6970_v53 }
 0xa6e   :  { %v5155_v20 = vpop.eup %5154  ;;  %v3082_v19 = vadd.f32 1.0, %v5153_v0 }
 0xa6f   :  { %v7027_v7 = vadd.f32 %v3071_v15, %v3069_v9  ;;  %v3072_v24 = vmul.f32 %v5155_v20, %v5149_v51 }
 0xa70   :  { %v5157_v45 = vpop.eup %5156 }
 0xa71   :  { %v3070_v54 = vmul.f32 %v5157_v45, %v6973_v27  ;;  %5160 = vtanh.f32 %v7027_v7  ;;  %v7668_v27 = vld [vmem:[#allocation40_spill] sm:$0xff] }
 0xa72   :  { %5162 = vrcp.f32 %v3082_v19  ;;  %v5159_v52 = vpop.eup %5158  ;;  %v2475_v29 = vadd.f32 %v7668_v27, %v6960_v33  ;;  %v7160_v27 = vld [vmem:[#allocation10 + $0x24] ss:$16 sps:$4 sm:$0xff]  }
 0xa73   :  { %v7030_v46 = vadd.f32 %v3072_v24, %v3070_v54 }
 0xa75   :  { %5164 = vtanh.f32 %v7030_v46 }
 0xa7e   :  { %v5161_v3 = vpop.eup %5160 }
 0xa7f   :  { %v5163_v53 = vpop.eup %5162  ;;  %v3089_v13 = vmul.f32 %v5161_v3, %v5159_v52 }
 0xa82   :  { %v5165_v21 = vpop.eup %5164 }
 0xa83   :  { %v3090_v14 = vmul.f32 %v5165_v21, %v5163_v53 }
 0xa85   :  { %v3099_v28 = vpack.c.bf16 %v3090_v14, %v3089_v13 }
 0xa87   :  { %3133 = vmatmul.mubr.bf16.vlgmr.msra.gmra.mxu0 %v3099_v28  ;;  %3176 = vmatmul.mubr.bf16.vlgmr.msra.gmra.mxu1 %v3099_v28 }
 0xa88   :  { %3252 = vmatpush1.bf16.msra.mxu0 %v6667_v58  ;;  %3295 = vmatpush1.bf16.msra.mxu1 %v6669_v61  ;;  %v7661_v58 = vld [vmem:[#allocation28_spill] sm:$0xff] }
 0xa89   :  { %3253 = vmatprep.subr.bf16.mxu0 %v6675_v60  ;;  %3296 = vmatprep.subr.bf16.mxu1 %v6677_v62  ;;  %v2358_v61 = vadd.f32 %v7661_v58, %v6932_v34  ;;  %v7662_v62 = vld [vmem:[#allocation30_spill] sm:$0xff] }
 0xa8a   :  { %3283 = vmatprep.mubr.bf16.mxu0 %v7551_v55  ;;  %3326 = vmatprep.mubr.bf16.mxu1 %v7551_v55 }
 0xa8c   :  { %3254 = vmatpush1.bf16.msra.mxu0 %v6679_v22  ;;  %3297 = vmatpush1.bf16.msra.mxu1 %v6681_v57  ;;  %v2360_v22 = vadd.f32 %v7662_v62, %v6940_v59 }
 0xa8d   :  { %3255 = vmatprep.subr.bf16.mxu0 %v6687_v56  ;;  %3298 = vmatprep.subr.bf16.mxu1 %v6689_v26 }
 0xa90   :  { %3256 = vmatpush1.bf16.msra.mxu0 %v6691_v17  ;;  %3299 = vmatpush1.bf16.msra.mxu1 %v6693_v43  ;;  %v7663_v17 = vld [vmem:[#allocation45_spill] sm:$0xff] }
 0xa91   :  { %3257 = vmatprep.subr.bf16.mxu0 %v6699_v18  ;;  %3300 = vmatprep.subr.bf16.mxu1 %v6701_v40  ;;  %v2362_v43 = vadd.f32 %v7663_v17, %v6932_v34 }
 0xa94   :  { %3258 = vmatpush1.bf16.msra.mxu0 %v6703_v47  ;;  %3301 = vmatpush1.bf16.msra.mxu1 %v6705_v6 }
 0xa95   :  { %3259 = vmatprep.subr.bf16.mxu0 %v6708_v1  ;;  %3302 = vmatprep.subr.bf16.mxu1 %v6718_v50 }
 0xa98   :  { %3260 = vmatpush1.bf16.msra.mxu0 %v6712_v49  ;;  %3303 = vmatpush1.bf16.msra.mxu1 %v6720_v23 }
 0xa99   :  { %3261 = vmatprep.subr.bf16.mxu0 %v6716_v42  ;;  %3304 = vmatprep.subr.bf16.mxu1 %v6730_v31  ;;  %v7665_v31 = vld [vmem:[#allocation42_spill] sm:$0xff] }
 0xa9c   :  { %3262 = vmatpush1.bf16.msra.mxu0 %v6724_v4  ;;  %3305 = vmatpush1.bf16.msra.mxu1 %v6732_v32  ;;  %v2473_v32 = vadd.f32 %v7665_v31, %v6956_v30  ;;  %v7133_v31 = vld [vmem:[#allocation10 + $0x88] ss:$16 sps:$4 sm:$0xff]  }
 0xa9d   :  { %3263 = vmatprep.subr.bf16.mxu0 %v6728_v16  ;;  %3306 = vmatprep.subr.bf16.mxu1 %v6740_v39  ;;  %v7666_v39 = vld [vmem:[#allocation31_spill] sm:$0xff] }
 0xaa0   :  { %3264 = vmatpush1.bf16.msra.mxu0 %v6736_v35  ;;  %3307 = vmatpush1.bf16.msra.mxu1 %v6742_v10  ;;  %v2471_v10 = vadd.f32 %v7666_v39, %v6960_v33  ;;  %v7142_v39 = vld [vmem:[#allocation10 + $0x60] ss:$16 sps:$4 sm:$0xff]  }
 0xaa1   :  { %3265 = vmatprep.subr.bf16.mxu0 %v6744_v41  ;;  %3308 = vmatprep.subr.bf16.mxu1 %v6752_v48 }
 0xaa4   :  { %3266 = vmatpush1.bf16.msra.mxu0 %v6748_v44  ;;  %3309 = vmatpush1.bf16.msra.mxu1 %v6754_v63  ;;  %v7667_v44 = vld [vmem:[#allocation32_spill] sm:$0xff] }
 0xaa5   :  { %3402 = vmatprep.subr.bf16.mxu0 %v6663_v2  ;;  %3445 = vmatprep.subr.bf16.mxu1 %v6665_v5  ;;  %v7664_v2 = vld [vmem:[#allocation44_spill] sm:$0xff]  ;;  %v2477_v48 = vadd.f32 %v7667_v44, %v6956_v30  ;;  %v7151_v44 = vld [vmem:[#allocation10 + $0x4c] ss:$16 sps:$4 sm:$0xff]  }
 0xaa6   :  { %v2364_v6 = vadd.f32 %v7664_v2, %v6940_v59  ;;  %v7101_v2 = vld [vmem:[#allocation10 + $0xcc] ss:$16 sps:$4 sm:$0xff]  }
 0xb47   :  { %v3134_v60 = vpop.f32.mrf.mxu0  ;;  %v3177_v56 = vpop.f32.mrf.mxu1 }
 0xb48   :  { %v3186_v57 = vadd.f32 %v3134_v60, %v2358_v61  ;;  %v3188_v63 = vadd.f32 %v3177_v56, %v2471_v10  ;;  %v7145_v10 = vld [vmem:[#allocation10 + $0x68] ss:$16 sps:$4 sm:$0xff]  }
 0xb49   :  { %v3136_v26 = vpop.f32.mrf.mxu0  ;;  %v3179_v1 = vpop.f32.mrf.mxu1 }
 0xb4a   :  { %v4506_v18 = vmul.f32 -1.442695, %v3186_v57  ;;  %v3187_v40 = vadd.f32 %v3136_v26, %v2360_v22  ;;  %v3189_v35 = vadd.f32 %v3179_v1, %v2473_v32  ;;  %v7112_v1 = vld [vmem:[#allocation10 + $0xa4] ss:$16 sps:$4 sm:$0xff]  }
 0xb4b   :  { %v3138_v47 = vpop.f32.mrf.mxu0  ;;  %v3181_v4 = vpop.f32.mrf.mxu1  ;;  %v7136_v32 = vld [vmem:[#allocation10 + $0x64] ss:$16 sps:$4 sm:$0xff]  }
 0xb4c   :  { %5166 = vpow2.f32 %v4506_v18  ;;  %v4508_v5 = vmul.f32 -1.442695, %v3187_v40  ;;  %v3190_v49 = vadd.f32 %v3138_v47, %v2362_v43  ;;  %v4510_v12 = vmul.f32 -1.442695, %v3189_v35  ;;  %v7092_v40 = vld [vmem:[#allocation10 + $0xe0] ss:$16 sps:$4 sm:$0xff]  }
 0xb4d   :  { %v3140_v42 = vpop.f32.mrf.mxu0  ;;  %v3183_v41 = vpop.f32.mrf.mxu1  ;;  %v3192_v25 = vadd.f32 %v3181_v4, %v2475_v29  ;;  %v7098_v47 = vld [vmem:[#allocation10 + $0xc4] ss:$16 sps:$4 sm:$0xff]   ;;  %v7127_v4 = vld [vmem:[#allocation10 + $0x8c] ss:$16 sps:$4 sm:$0xff]  }
 0xb4e   :  { %5168 = vpow2.f32 %v4508_v5  ;;  %v4507_v50 = vmul.f32 -1.442695, %v3190_v49  ;;  %v3191_v23 = vadd.f32 %v3140_v42, %v2364_v6  ;;  %v3193_v37 = vadd.f32 %v3183_v41, %v2477_v48  ;;  %v7106_v6 = vld [vmem:[#allocation10 + $0xc0] ss:$16 sps:$4 sm:$0xff]   ;;  %v7109_v5 = vld [vmem:[#allocation10 + $0xc8] ss:$16 sps:$4 sm:$0xff]  }
 0xb4f   :  { %v7115_v49 = vld [vmem:[#allocation10 + $0xac] ss:$16 sps:$4 sm:$0xff]   ;;  %v7118_v42 = vld [vmem:[#allocation10 + $0xa0] ss:$16 sps:$4 sm:$0xff]   ;;  %v7148_v41 = vld [vmem:[#allocation10 + $0x44] ss:$16 sps:$4 sm:$0xff]  }
 0xb50   :  { %5170 = vpow2.f32 %v4507_v50  ;;  %v4509_v16 = vmul.f32 -1.442695, %v3191_v23  ;;  %v4511_v15 = vmul.f32 -1.442695, %v3193_v37  ;;  %v7121_v50 = vld [vmem:[#allocation10 + $0xa8] ss:$16 sps:$4 sm:$0xff]  }
 0xb51   :  { %v7124_v23 = vld [vmem:[#allocation10 + $0x84] ss:$16 sps:$4 sm:$0xff]   ;;  %v7139_v35 = vld [vmem:[#allocation10 + $0x6c] ss:$16 sps:$4 sm:$0xff]   ;;  %v7154_v48 = vld [vmem:[#allocation10 + $0x40] ss:$16 sps:$4 sm:$0xff]  }
 0xb52   :  { %5172 = vpow2.f32 %v4509_v16  ;;  %v7130_v16 = vld [vmem:[#allocation10 + $0x80] ss:$16 sps:$4 sm:$0xff]   ;;  %v7163_v29 = vld [vmem:[#allocation10 + $0x2c] ss:$16 sps:$4 sm:$0xff]   ;;  %v7169_v37 = vld [vmem:[#allocation10 + $0x28] ss:$16 sps:$4 sm:$0xff]  }
 0xb53   :  { %5174 = vtanh.f32 %v3188_v63  ;;  %v7157_v63 = vld [vmem:[#allocation10 + $0x48] ss:$16 sps:$4 sm:$0xff]  }
 0xb54   :  { %5176 = vpow2.f32 %v4510_v12  ;;  %v7166_v12 = vld [vmem:[#allocation10 + $0x20] ss:$16 sps:$4 sm:$0xff]  }
 0xb59   :  { %v5167_v11 = vpop.eup %5166 }
 0xb5a   :  { %v3200_v8 = vadd.f32 1.0, %v5167_v11  ;;  %v7172_v11 = vld [vmem:[#allocation10 + $0x4] ss:$16 sps:$4 sm:$0xff]  }
 0xb5b   :  { %v5169_v51 = vpop.eup %5168 }
 0xb5c   :  { %5178 = vrcp.f32 %v3200_v8  ;;  %v3212_v38 = vadd.f32 1.0, %v5169_v51  ;;  %v7178_v8 = vld [vmem:[#allocation10] ss:$16 sps:$4 sm:$0xff]   ;;  %v7181_v51 = vld [vmem:[#allocation10 + $0x8] ss:$16 sps:$4 sm:$0xff]  }
 0xb5d   :  { %v5171_v0 = vpop.eup %5170  ;;  %5180 = vtanh.f32 %v3192_v25  ;;  %v7175_v25 = vld [vmem:[#allocation10 + $0xc] ss:$16 sps:$4 sm:$0xff]  }
 0xb5e   :  { %5182 = vrcp.f32 %v3212_v38  ;;  %v3201_v9 = vadd.f32 1.0, %v5171_v0  ;;  %v7187_v38 = vld [vmem:[#allocation10 + $0xec] ss:$16 sps:$4 sm:$0xff]   ;;  %v7669_v0 = vld [vmem:[#allocation34_spill] sm:$0xff] }
 0xb5f   :  { %v5173_v20 = vpop.eup %5172  ;;  %5184 = vpow2.f32 %v4511_v15  ;;  %v7184_v15 = vld [vmem:[#allocation10 + $0xe4] ss:$16 sps:$4 sm:$0xff]  }
 0xb60   :  { %5186 = vrcp.f32 %v3201_v9  ;;  %v3213_v36 = vadd.f32 1.0, %v5173_v20  ;;  %v5175_v24 = vpop.eup %5174  ;;  %v2368_v9 = vadd.f32 %v7669_v0, %v6932_v34 }
 0xb61   :  { %v5177_v45 = vpop.eup %5176 }
 0xb62   :  { %5188 = vrcp.f32 %v3213_v36  ;;  %v3232_v14 = vadd.f32 1.0, %v5177_v45  ;;  %v7670_v36 = vld [vmem:[#allocation38_spill] sm:$0xff] }
 0xb64   :  { %5190 = vrcp.f32 %v3232_v14  ;;  %v7672_v14 = vld [vmem:[#allocation52_spill] sm:$0xff] }
 0xb69   :  { %v5179_v19 = vpop.eup %5178 }
 0xb6a   :  { %v5181_v54 = vpop.eup %5180  ;;  %v3222_v52 = vmul.f32 %v5179_v19, %v5175_v24  ;;  %v2370_v24 = vadd.f32 %v7670_v36, %v6940_v59 }
 0xb6b   :  { %v5183_v3 = vpop.eup %5182 }
 0xb6c   :  { %v5185_v53 = vpop.eup %5184  ;;  %v3220_v21 = vmul.f32 %v5183_v3, %v7027_v7 }
 0xb6d   :  { %v5187_v13 = vpop.eup %5186  ;;  %v3233_v60 = vadd.f32 1.0, %v5185_v53 }
 0xb6e   :  { %v7085_v28 = vadd.f32 %v3222_v52, %v3220_v21  ;;  %v3223_v58 = vmul.f32 %v5187_v13, %v5181_v54  ;;  %v7671_v52 = vld [vmem:[#allocation53_spill] sm:$0xff] }
 0xb6f   :  { %v5189_v61 = vpop.eup %5188  ;;  %v2372_v3 = vadd.f32 %v7671_v52, %v6932_v34  ;;  %v7676_v52 = vld [vmem:[#allocation48_spill] sm:$0xff] }
 0xb70   :  { %v3221_v62 = vmul.f32 %v5189_v61, %v7030_v46  ;;  %5192 = vtanh.f32 %v7085_v28  ;;  %v7095_v46 = vld [vmem:[#allocation10 + $0xe8] ss:$16 sps:$4 sm:$0xff]  }
 0xb71   :  { %5194 = vrcp.f32 %v3233_v60  ;;  %v5191_v57 = vpop.eup %5190 }
 0xb72   :  { %v7088_v22 = vadd.f32 %v3223_v58, %v3221_v62  ;;  %v2374_v58 = vadd.f32 %v7672_v14, %v6940_v59 }
 0xb74   :  { %5196 = vtanh.f32 %v7088_v22 }
 0xb7d   :  { %v5193_v56 = vpop.eup %5192 }
 0xb7e   :  { %v5195_v7 = vpop.eup %5194  ;;  %v3240_v17 = vmul.f32 %v5193_v56, %v5191_v57 }
 0xb81   :  { %v5197_v26 = vpop.eup %5196 }
 0xb82   :  { %v3241_v43 = vmul.f32 %v5197_v26, %v5195_v7 }
 0xb84   :  { %v3250_v18 = vpack.c.bf16 %v3241_v43, %v3240_v17  ;;  %v7673_v43 = vld [vmem:[#allocation50_spill] sm:$0xff] }
 0xb86   :  { %3284 = vmatmul.mubr.bf16.vlgmr.msra.gmra.mxu0 %v3250_v18  ;;  %3327 = vmatmul.mubr.bf16.vlgmr.msra.gmra.mxu1 %v3250_v18  ;;  %v2483_v18 = vadd.f32 %v7673_v43, %v6956_v30 }
 0xb87   :  { %3403 = vmatpush1.bf16.msra.mxu0 %v7092_v40  ;;  %3446 = vmatpush1.bf16.msra.mxu1 %v7095_v46 }
 0xb88   :  { %3404 = vmatprep.subr.bf16.mxu0 %v7098_v47  ;;  %3447 = vmatprep.subr.bf16.mxu1 %v7101_v2 }
 0xb89   :  { %3434 = vmatprep.mubr.bf16.mxu0 %v7551_v55  ;;  %3477 = vmatprep.mubr.bf16.mxu1 %v7551_v55 }
 0xb8b   :  { %3405 = vmatpush1.bf16.msra.mxu0 %v7106_v6  ;;  %3448 = vmatpush1.bf16.msra.mxu1 %v7109_v5 }
 0xb8c   :  { %3406 = vmatprep.subr.bf16.mxu0 %v7112_v1  ;;  %3449 = vmatprep.subr.bf16.mxu1 %v7115_v49 }
 0xb8f   :  { %3407 = vmatpush1.bf16.msra.mxu0 %v7118_v42  ;;  %3450 = vmatpush1.bf16.msra.mxu1 %v7121_v50 }
 0xb90   :  { %3408 = vmatprep.subr.bf16.mxu0 %v7124_v23  ;;  %3451 = vmatprep.subr.bf16.mxu1 %v7127_v4 }
 0xb93   :  { %3409 = vmatpush1.bf16.msra.mxu0 %v7130_v16  ;;  %3452 = vmatpush1.bf16.msra.mxu1 %v7133_v31 }
 0xb94   :  { %3410 = vmatprep.subr.bf16.mxu0 %v7136_v32  ;;  %3453 = vmatprep.subr.bf16.mxu1 %v7139_v35 }
 0xb97   :  { %3411 = vmatpush1.bf16.msra.mxu0 %v7142_v39  ;;  %3454 = vmatpush1.bf16.msra.mxu1 %v7145_v10 }
 0xb98   :  { %3412 = vmatprep.subr.bf16.mxu0 %v7148_v41  ;;  %3455 = vmatprep.subr.bf16.mxu1 %v7151_v44 }
 0xb9b   :  { %3413 = vmatpush1.bf16.msra.mxu0 %v7154_v48  ;;  %3456 = vmatpush1.bf16.msra.mxu1 %v7157_v63 }
 0xb9c   :  { %3414 = vmatprep.subr.bf16.mxu0 %v7160_v27  ;;  %3457 = vmatprep.subr.bf16.mxu1 %v7163_v29 }
 0xb9f   :  { %3415 = vmatpush1.bf16.msra.mxu0 %v7166_v12  ;;  %3458 = vmatpush1.bf16.msra.mxu1 %v7169_v37 }
 0xba0   :  { %3416 = vmatprep.subr.bf16.mxu0 %v7172_v11  ;;  %3459 = vmatprep.subr.bf16.mxu1 %v7175_v25 }
 0xba3   :  { %3417 = vmatpush1.bf16.msra.mxu0 %v7178_v8  ;;  %3460 = vmatpush1.bf16.msra.mxu1 %v7181_v51 }
 0xba4   :  { %3553 = vmatprep.subr.bf16.mxu0 %v7184_v15  ;;  %3596 = vmatprep.subr.bf16.mxu1 %v7187_v38 }
 0xc46   :  { %v3285_v20 = vpop.f32.mrf.mxu0  ;;  %v3328_v19 = vpop.f32.mrf.mxu1 }
 0xc47   :  { %v3337_v45 = vadd.f32 %v3285_v20, %v2368_v9  ;;  %v7674_v9 = vld [vmem:[#allocation35_spill] sm:$0xff] }
 0xc48   :  { %v3287_v54 = vpop.f32.mrf.mxu0  ;;  %v3330_v60 = vpop.f32.mrf.mxu1  ;;  %v2481_v20 = vadd.f32 %v7674_v9, %v6960_v33 }
 0xc49   :  { %v4512_v53 = vmul.f32 -1.442695, %v3337_v45  ;;  %v3338_v21 = vadd.f32 %v3287_v54, %v2370_v24  ;;  %v3340_v0 = vadd.f32 %v3330_v60, %v2483_v18  ;;  %v7675_v24 = vld [vmem:[#allocation39_spill] sm:$0xff] }
 0xc4a   :  { %v3289_v13 = vpop.f32.mrf.mxu0  ;;  %v3332_v26 = vpop.f32.mrf.mxu1  ;;  %v2487_v45 = vadd.f32 %v7675_v24, %v6956_v30  ;;  %v3339_v54 = vadd.f32 %v3328_v19, %v2481_v20 }
 0xc4b   :  { %5198 = vpow2.f32 %v4512_v53  ;;  %v4514_v61 = vmul.f32 -1.442695, %v3338_v21  ;;  %v3341_v62 = vadd.f32 %v3289_v13, %v2372_v3  ;;  %v2485_v3 = vadd.f32 %v7676_v52, %v6960_v33 }
 0xc4c   :  { %v3291_v57 = vpop.f32.mrf.mxu0  ;;  %v3334_v36 = vpop.f32.mrf.mxu1  ;;  %v4516_v53 = vmul.f32 -1.442695, %v3340_v0 }
 0xc4d   :  { %5200 = vpow2.f32 %v4514_v61  ;;  %v4513_v56 = vmul.f32 -1.442695, %v3341_v62  ;;  %v3342_v7 = vadd.f32 %v3291_v57, %v2374_v58  ;;  %v3344_v21 = vadd.f32 %v3334_v36, %v2487_v45 }
 0xc4e   :  { %v3343_v14 = vadd.f32 %v3332_v26, %v2485_v3 }
 0xc4f   :  { %5202 = vpow2.f32 %v4513_v56  ;;  %v4515_v17 = vmul.f32 -1.442695, %v3342_v7  ;;  %v4517_v60 = vmul.f32 -1.442695, %v3344_v21 }
 0xc51   :  { %5204 = vpow2.f32 %v4515_v17 }
 0xc52   :  { %5206 = vtanh.f32 %v3339_v54 }
 0xc53   :  { %5208 = vpow2.f32 %v4516_v53 }
 0xc58   :  { %v5199_v13 = vpop.eup %5198 }
 0xc59   :  { %v3351_v58 = vadd.f32 1.0, %v5199_v13 }
 0xc5a   :  { %v5201_v61 = vpop.eup %5200 }
 0xc5b   :  { %5210 = vrcp.f32 %v3351_v58  ;;  %v3363_v62 = vadd.f32 1.0, %v5201_v61 }
 0xc5c   :  { %v5203_v57 = vpop.eup %5202  ;;  %5212 = vtanh.f32 %v3343_v14 }
 0xc5d   :  { %5214 = vrcp.f32 %v3363_v62  ;;  %v3352_v56 = vadd.f32 1.0, %v5203_v57 }
 0xc5e   :  { %v5205_v7 = vpop.eup %5204  ;;  %5216 = vpow2.f32 %v4517_v60 }
 0xc5f   :  { %5218 = vrcp.f32 %v3352_v56  ;;  %v3364_v19 = vadd.f32 1.0, %v5205_v7  ;;  %v5207_v17 = vpop.eup %5206 }
 0xc60   :  { %v5209_v43 = vpop.eup %5208 }
 0xc61   :  { %5220 = vrcp.f32 %v3364_v19  ;;  %v3383_v45 = vadd.f32 1.0, %v5209_v43  ;;  %v7678_v19 = vld [vmem:[#allocation46_spill] sm:$0xff] }
 0xc63   :  { %5222 = vrcp.f32 %v3383_v45  ;;  %v7680_v45 = vld [vmem:[#allocation47_spill] sm:$0xff] }
 0xc68   :  { %v5211_v18 = vpop.eup %5210 }
 0xc69   :  { %v5213_v26 = vpop.eup %5212  ;;  %v3373_v0 = vmul.f32 %v5211_v18, %v5207_v17  ;;  %v2380_v17 = vadd.f32 %v7678_v19, %v6940_v59 }
 0xc6a   :  { %v5215_v9 = vpop.eup %5214 }
 0xc6b   :  { %v5217_v20 = vpop.eup %5216  ;;  %v3371_v36 = vmul.f32 %v5215_v9, %v7085_v28 }
 0xc6c   :  { %v5219_v24 = vpop.eup %5218  ;;  %v3384_v53 = vadd.f32 1.0, %v5217_v20 }
 0xc6d   :  { %v7207_v54 = vadd.f32 %v3373_v0, %v3371_v36  ;;  %v3374_v52 = vmul.f32 %v5219_v24, %v5213_v26  ;;  %v7679_v0 = vld [vmem:[#allocation55_spill] sm:$0xff] }
 0xc6e   :  { %v5221_v3 = vpop.eup %5220  ;;  %v2382_v9 = vadd.f32 %v7679_v0, %v6932_v34  ;;  %v7684_v0 = vld [vmem:[#allocation57_spill] sm:$0xff] }
 0xc6f   :  { %v3372_v21 = vmul.f32 %v5221_v3, %v7088_v22  ;;  %5224 = vtanh.f32 %v7207_v54  ;;  %v7677_v22 = vld [vmem:[#allocation41_spill] sm:$0xff] }
 0xc70   :  { %5226 = vrcp.f32 %v3384_v53  ;;  %v5223_v14 = vpop.eup %5222  ;;  %v2378_v56 = vadd.f32 %v7677_v22, %v6932_v34 }
 0xc71   :  { %v7210_v13 = vadd.f32 %v3374_v52, %v3372_v21  ;;  %v2384_v52 = vadd.f32 %v7680_v45, %v6940_v59 }
 0xc73   :  { %5228 = vtanh.f32 %v7210_v13 }
 0xc7c   :  { %v5225_v58 = vpop.eup %5224 }
 0xc7d   :  { %v5227_v28 = vpop.eup %5226  ;;  %v3391_v60 = vmul.f32 %v5225_v58, %v5223_v14 }
 0xc80   :  { %v5229_v61 = vpop.eup %5228 }
 0xc81   :  { %v3392_v62 = vmul.f32 %v5229_v61, %v5227_v28 }
 0xc83   :  { %v3401_v57 = vpack.c.bf16 %v3392_v62, %v3391_v60  ;;  %v7681_v62 = vld [vmem:[#allocation56_spill] sm:$0xff] }
 0xc85   :  { %3435 = vmatmul.mubr.bf16.vlgmr.msra.gmra.mxu0 %v3401_v57  ;;  %3478 = vmatmul.mubr.bf16.vlgmr.msra.gmra.mxu1 %v3401_v57  ;;  %v2493_v57 = vadd.f32 %v7681_v62, %v6956_v30 }
 0xc86   :  { %3554 = vmatpush1.bf16.msra.mxu0 %v7092_v40  ;;  %3597 = vmatpush1.bf16.msra.mxu1 %v7095_v46 }
 0xc87   :  { %3555 = vmatprep.subr.bf16.mxu0 %v7098_v47  ;;  %3598 = vmatprep.subr.bf16.mxu1 %v7101_v2 }
 0xc88   :  { %3585 = vmatprep.mubr.bf16.mxu0 %v7551_v55  ;;  %3628 = vmatprep.mubr.bf16.mxu1 %v7551_v55 }
 0xc8a   :  { %3556 = vmatpush1.bf16.msra.mxu0 %v7106_v6  ;;  %3599 = vmatpush1.bf16.msra.mxu1 %v7109_v5 }
 0xc8b   :  { %3557 = vmatprep.subr.bf16.mxu0 %v7112_v1  ;;  %3600 = vmatprep.subr.bf16.mxu1 %v7115_v49 }
 0xc8e   :  { %3558 = vmatpush1.bf16.msra.mxu0 %v7118_v42  ;;  %3601 = vmatpush1.bf16.msra.mxu1 %v7121_v50 }
 0xc8f   :  { %3559 = vmatprep.subr.bf16.mxu0 %v7124_v23  ;;  %3602 = vmatprep.subr.bf16.mxu1 %v7127_v4 }
 0xc92   :  { %3560 = vmatpush1.bf16.msra.mxu0 %v7130_v16  ;;  %3603 = vmatpush1.bf16.msra.mxu1 %v7133_v31 }
 0xc93   :  { %3561 = vmatprep.subr.bf16.mxu0 %v7136_v32  ;;  %3604 = vmatprep.subr.bf16.mxu1 %v7139_v35 }
 0xc96   :  { %3562 = vmatpush1.bf16.msra.mxu0 %v7142_v39  ;;  %3605 = vmatpush1.bf16.msra.mxu1 %v7145_v10 }
 0xc97   :  { %3563 = vmatprep.subr.bf16.mxu0 %v7148_v41  ;;  %3606 = vmatprep.subr.bf16.mxu1 %v7151_v44 }
 0xc9a   :  { %3564 = vmatpush1.bf16.msra.mxu0 %v7154_v48  ;;  %3607 = vmatpush1.bf16.msra.mxu1 %v7157_v63 }
 0xc9b   :  { %3565 = vmatprep.subr.bf16.mxu0 %v7160_v27  ;;  %3608 = vmatprep.subr.bf16.mxu1 %v7163_v29 }
 0xc9e   :  { %3566 = vmatpush1.bf16.msra.mxu0 %v7166_v12  ;;  %3609 = vmatpush1.bf16.msra.mxu1 %v7169_v37 }
 0xc9f   :  { %3567 = vmatprep.subr.bf16.mxu0 %v7172_v11  ;;  %3610 = vmatprep.subr.bf16.mxu1 %v7175_v25 }
 0xca2   :  { %3568 = vmatpush1.bf16.msra.mxu0 %v7178_v8  ;;  %3611 = vmatpush1.bf16.msra.mxu1 %v7181_v51 }
 0xca3   :  { %3704 = vmatprep.subr.bf16.mxu0 %v7184_v15  ;;  %3747 = vmatprep.subr.bf16.mxu1 %v7187_v38 }
 0xd45   :  { %v3436_v7 = vpop.f32.mrf.mxu0  ;;  %v3479_v18 = vpop.f32.mrf.mxu1 }
 0xd46   :  { %v3488_v43 = vadd.f32 %v3436_v7, %v2378_v56  ;;  %v7682_v56 = vld [vmem:[#allocation43_spill] sm:$0xff] }
 0xd47   :  { %v3438_v26 = vpop.f32.mrf.mxu0  ;;  %v3481_v53 = vpop.f32.mrf.mxu1  ;;  %v2491_v7 = vadd.f32 %v7682_v56, %v6960_v33 }
 0xd48   :  { %v4518_v20 = vmul.f32 -1.442695, %v3488_v43  ;;  %v3489_v36 = vadd.f32 %v3438_v26, %v2380_v17  ;;  %v3491_v22 = vadd.f32 %v3481_v53, %v2493_v57  ;;  %v7683_v17 = vld [vmem:[#allocation49_spill] sm:$0xff] }
 0xd49   :  { %v3440_v24 = vpop.f32.mrf.mxu0  ;;  %v3483_v61 = vpop.f32.mrf.mxu1  ;;  %v2497_v43 = vadd.f32 %v7683_v17, %v6956_v30  ;;  %v3490_v26 = vadd.f32 %v3479_v18, %v2491_v7 }
 0xd4a   :  { %5230 = vpow2.f32 %v4518_v20  ;;  %v4520_v3 = vmul.f32 -1.442695, %v3489_v36  ;;  %v3492_v21 = vadd.f32 %v3440_v24, %v2382_v9  ;;  %v2495_v9 = vadd.f32 %v7684_v0, %v6960_v33 }
 0xd4b   :  { %v3442_v14 = vpop.f32.mrf.mxu0  ;;  %v3485_v19 = vpop.f32.mrf.mxu1  ;;  %v4522_v20 = vmul.f32 -1.442695, %v3491_v22 }
 0xd4c   :  { %5232 = vpow2.f32 %v4520_v3  ;;  %v4519_v58 = vmul.f32 -1.442695, %v3492_v21  ;;  %v3493_v28 = vadd.f32 %v3442_v14, %v2384_v52  ;;  %v3495_v36 = vadd.f32 %v3485_v19, %v2497_v43 }
 0xd4d   :  { %v3494_v45 = vadd.f32 %v3483_v61, %v2495_v9 }
 0xd4e   :  { %5234 = vpow2.f32 %v4519_v58  ;;  %v4521_v60 = vmul.f32 -1.442695, %v3493_v28  ;;  %v4523_v53 = vmul.f32 -1.442695, %v3495_v36 }
 0xd50   :  { %5236 = vpow2.f32 %v4521_v60 }
 0xd51   :  { %5238 = vtanh.f32 %v3490_v26 }
 0xd52   :  { %5240 = vpow2.f32 %v4522_v20 }
 0xd57   :  { %v5231_v24 = vpop.eup %5230 }
 0xd58   :  { %v3502_v52 = vadd.f32 1.0, %v5231_v24 }
 0xd59   :  { %v5233_v3 = vpop.eup %5232 }
 0xd5a   :  { %5242 = vrcp.f32 %v3502_v52  ;;  %v3514_v21 = vadd.f32 1.0, %v5233_v3 }
 0xd5b   :  { %v5235_v14 = vpop.eup %5234  ;;  %5244 = vtanh.f32 %v3494_v45 }
 0xd5c   :  { %5246 = vrcp.f32 %v3514_v21  ;;  %v3503_v58 = vadd.f32 1.0, %v5235_v14 }
 0xd5d   :  { %v5237_v28 = vpop.eup %5236  ;;  %5248 = vpow2.f32 %v4523_v53 }
 0xd5e   :  { %5250 = vrcp.f32 %v3503_v58  ;;  %v3515_v18 = vadd.f32 1.0, %v5237_v28  ;;  %v5239_v60 = vpop.eup %5238 }
 0xd5f   :  { %v5241_v62 = vpop.eup %5240 }
 0xd60   :  { %5252 = vrcp.f32 %v3515_v18  ;;  %v3534_v43 = vadd.f32 1.0, %v5241_v62  ;;  %v7686_v18 = vld [vmem:[#allocation58_spill] sm:$0xff] }
 0xd62   :  { %5254 = vrcp.f32 %v3534_v43 }
 0xd67   :  { %v5243_v57 = vpop.eup %5242 }
 0xd68   :  { %v5245_v61 = vpop.eup %5244  ;;  %v3524_v22 = vmul.f32 %v5243_v57, %v5239_v60  ;;  %v2390_v60 = vadd.f32 %v7686_v18, %v6940_v59 }
 0xd69   :  { %v5247_v56 = vpop.eup %5246 }
 0xd6a   :  { %v5249_v7 = vpop.eup %5248  ;;  %v3522_v19 = vmul.f32 %v5247_v56, %v7207_v54 }
 0xd6b   :  { %v5251_v17 = vpop.eup %5250  ;;  %v3535_v20 = vadd.f32 1.0, %v5249_v7 }
 0xd6c   :  { %v7265_v26 = vadd.f32 %v3524_v22, %v3522_v19  ;;  %v3525_v0 = vmul.f32 %v5251_v17, %v5245_v61  ;;  %v7687_v22 = vld [vmem:[#allocation21_spill] sm:$0xff] }
 0xd6d   :  { %v5253_v9 = vpop.eup %5252  ;;  %v2392_v56 = vadd.f32 %v7687_v22, %v6932_v34 }
 0xd6e   :  { %v3523_v36 = vmul.f32 %v5253_v9, %v7210_v13  ;;  %5256 = vtanh.f32 %v7265_v26  ;;  %v7685_v13 = vld [vmem:[#allocation51_spill] sm:$0xff] }
 0xd6f   :  { %5258 = vrcp.f32 %v3535_v20  ;;  %v5255_v45 = vpop.eup %5254  ;;  %v2388_v58 = vadd.f32 %v7685_v13, %v6932_v34 }
 0xd70   :  { %v7268_v24 = vadd.f32 %v3525_v0, %v3523_v36 }
 0xd72   :  { %5260 = vtanh.f32 %v7268_v24 }
 0xd7b   :  { %v5257_v52 = vpop.eup %5256 }
 0xd7c   :  { %v5259_v54 = vpop.eup %5258  ;;  %v3542_v53 = vmul.f32 %v5257_v52, %v5255_v45 }
 0xd7f   :  { %v5261_v3 = vpop.eup %5260 }
 0xd80   :  { %v3543_v21 = vmul.f32 %v5261_v3, %v5259_v54  ;;  %v7689_v3 = vld [vmem:[#allocation20_spill] sm:$0xff] }
 0xd82   :  { %v3552_v14 = vpack.c.bf16 %v3543_v21, %v3542_v53  ;;  %v2503_v53 = vadd.f32 %v7689_v3, %v6956_v30 }
 0xd84   :  { %3586 = vmatmul.mubr.bf16.vlgmr.msra.gmra.mxu0 %v3552_v14  ;;  %3629 = vmatmul.mubr.bf16.vlgmr.msra.gmra.mxu1 %v3552_v14  ;;  %v7690_v14 = vld [vmem:[#allocation54_spill] sm:$0xff] }
 0xd85   :  { %3705 = vmatpush1.bf16.msra.mxu0 %v7092_v40  ;;  %3748 = vmatpush1.bf16.msra.mxu1 %v7095_v46  ;;  %v2501_v13 = vadd.f32 %v7690_v14, %v6960_v33 }
 0xd86   :  { %3706 = vmatprep.subr.bf16.mxu0 %v7098_v47  ;;  %3749 = vmatprep.subr.bf16.mxu1 %v7101_v2 }
 0xd87   :  { %3736 = vmatprep.mubr.bf16.mxu0 %v7551_v55  ;;  %3779 = vmatprep.mubr.bf16.mxu1 %v7551_v55 }
 0xd89   :  { %3707 = vmatpush1.bf16.msra.mxu0 %v7106_v6  ;;  %3750 = vmatpush1.bf16.msra.mxu1 %v7109_v5 }
 0xd8a   :  { %3708 = vmatprep.subr.bf16.mxu0 %v7112_v1  ;;  %3751 = vmatprep.subr.bf16.mxu1 %v7115_v49 }
 0xd8d   :  { %3709 = vmatpush1.bf16.msra.mxu0 %v7118_v42  ;;  %3752 = vmatpush1.bf16.msra.mxu1 %v7121_v50 }
 0xd8e   :  { %3710 = vmatprep.subr.bf16.mxu0 %v7124_v23  ;;  %3753 = vmatprep.subr.bf16.mxu1 %v7127_v4 }
 0xd91   :  { %3711 = vmatpush1.bf16.msra.mxu0 %v7130_v16  ;;  %3754 = vmatpush1.bf16.msra.mxu1 %v7133_v31 }
 0xd92   :  { %3712 = vmatprep.subr.bf16.mxu0 %v7136_v32  ;;  %3755 = vmatprep.subr.bf16.mxu1 %v7139_v35 }
 0xd95   :  { %3713 = vmatpush1.bf16.msra.mxu0 %v7142_v39  ;;  %3756 = vmatpush1.bf16.msra.mxu1 %v7145_v10 }
 0xd96   :  { %3714 = vmatprep.subr.bf16.mxu0 %v7148_v41  ;;  %3757 = vmatprep.subr.bf16.mxu1 %v7151_v44 }
 0xd99   :  { %3715 = vmatpush1.bf16.msra.mxu0 %v7154_v48  ;;  %3758 = vmatpush1.bf16.msra.mxu1 %v7157_v63 }
 0xd9a   :  { %3716 = vmatprep.subr.bf16.mxu0 %v7160_v27  ;;  %3759 = vmatprep.subr.bf16.mxu1 %v7163_v29 }
 0xd9d   :  { %3717 = vmatpush1.bf16.msra.mxu0 %v7166_v12  ;;  %3760 = vmatpush1.bf16.msra.mxu1 %v7169_v37 }
 0xd9e   :  { %3718 = vmatprep.subr.bf16.mxu0 %v7172_v11  ;;  %3761 = vmatprep.subr.bf16.mxu1 %v7175_v25 }
 0xda1   :  { %3719 = vmatpush1.bf16.msra.mxu0 %v7178_v8  ;;  %3762 = vmatpush1.bf16.msra.mxu1 %v7181_v51 }
 0xda2   :  { %3855 = vmatprep.subr.bf16.mxu0 %v7184_v15  ;;  %3898 = vmatprep.subr.bf16.mxu1 %v7187_v38  ;;  %v7688_v15 = vld [vmem:[#allocation22_spill] sm:$0xff] }
 0xda3   :  { %v2394_v43 = vadd.f32 %v7688_v15, %v6940_v59 }
 0xe44   :  { %v3587_v28 = vpop.f32.mrf.mxu0  ;;  %v3630_v57 = vpop.f32.mrf.mxu1 }
 0xe45   :  { %v3639_v62 = vadd.f32 %v3587_v28, %v2388_v58  ;;  %v7691_v28 = vld [vmem:[#allocation60_spill] sm:$0xff] }
 0xe46   :  { %v3589_v61 = vpop.f32.mrf.mxu0  ;;  %v3632_v0 = vpop.f32.mrf.mxu1  ;;  %v2507_v18 = vadd.f32 %v7691_v28, %v6956_v30 }
 0xe47   :  { %v4524_v7 = vmul.f32 -1.442695, %v3639_v62  ;;  %v3640_v19 = vadd.f32 %v3589_v61, %v2390_v60  ;;  %v3642_v21 = vadd.f32 %v3632_v0, %v2503_v53  ;;  %v3641_v60 = vadd.f32 %v3630_v57, %v2501_v13  ;;  %v7692_v62 = vld [vmem:[#allocation23_spill] sm:$0xff] }
 0xe48   :  { %v3591_v17 = vpop.f32.mrf.mxu0  ;;  %v3634_v52 = vpop.f32.mrf.mxu1  ;;  %v2505_v61 = vadd.f32 %v7692_v62, %v6960_v33 }
 0xe49   :  { %5262 = vpow2.f32 %v4524_v7  ;;  %v4526_v38 = vmul.f32 -1.442695, %v3640_v19  ;;  %v3643_v9 = vadd.f32 %v3591_v17, %v2392_v56  ;;  %v4528_v22 = vmul.f32 -1.442695, %v3642_v21 }
 0xe4a   :  { %v3593_v20 = vpop.f32.mrf.mxu0  ;;  %v3636_v58 = vpop.f32.mrf.mxu1  ;;  %v3645_v19 = vadd.f32 %v3634_v52, %v2505_v61 }
 0xe4b   :  { %5264 = vpow2.f32 %v4526_v38  ;;  %v4525_v36 = vmul.f32 -1.442695, %v3643_v9  ;;  %v3644_v45 = vadd.f32 %v3593_v20, %v2394_v43  ;;  %v3646_v56 = vadd.f32 %v3636_v58, %v2507_v18 }
 0xe4d   :  { %5266 = vpow2.f32 %v4525_v36  ;;  %v4527_v54 = vmul.f32 -1.442695, %v3644_v45  ;;  %v4529_v43 = vmul.f32 -1.442695, %v3646_v56 }
 0xe4f   :  { %5268 = vpow2.f32 %v4527_v54 }
 0xe50   :  { %5270 = vtanh.f32 %v3641_v60 }
 0xe51   :  { %5272 = vpow2.f32 %v4528_v22 }
 0xe56   :  { %v5263_v7 = vpop.eup %5262 }
 0xe57   :  { %v3653_v17 = vadd.f32 1.0, %v5263_v7 }
 0xe58   :  { %v5265_v15 = vpop.eup %5264 }
 0xe59   :  { %5274 = vrcp.f32 %v3653_v17  ;;  %v3665_v38 = vadd.f32 1.0, %v5265_v15 }
 0xe5a   :  { %v5267_v0 = vpop.eup %5266  ;;  %5276 = vtanh.f32 %v3645_v19 }
 0xe5b   :  { %5278 = vrcp.f32 %v3665_v38  ;;  %v3654_v9 = vadd.f32 1.0, %v5267_v0  ;;  %v7700_v0 = vld [vmem:[#allocation27_spill] sm:$0xff] }
 0xe5c   :  { %v5269_v20 = vpop.eup %5268  ;;  %5280 = vpow2.f32 %v4529_v43 }
 0xe5d   :  { %5282 = vrcp.f32 %v3654_v9  ;;  %v3666_v57 = vadd.f32 1.0, %v5269_v20  ;;  %v5271_v36 = vpop.eup %5270  ;;  %v2515_v9 = vadd.f32 %v7700_v0, %v6960_v33  ;;  %v7702_v0 = vld [vmem:[#allocation65_spill] sm:$0xff] }
 0xe5e   :  { %v5273_v45 = vpop.eup %5272 }
 0xe5f   :  { %5284 = vrcp.f32 %v3666_v57  ;;  %v3685_v58 = vadd.f32 1.0, %v5273_v45 }
 0xe61   :  { %5286 = vrcp.f32 %v3685_v58 }
 0xe66   :  { %v5275_v54 = vpop.eup %5274 }
 0xe67   :  { %v5277_v52 = vpop.eup %5276  ;;  %v3675_v3 = vmul.f32 %v5275_v54, %v5271_v36 }
 0xe68   :  { %v5279_v53 = vpop.eup %5278 }
 0xe69   :  { %v5281_v21 = vpop.eup %5280  ;;  %v3673_v14 = vmul.f32 %v5279_v53, %v7265_v26 }
 0xe6a   :  { %v5283_v13 = vpop.eup %5282  ;;  %v3686_v62 = vadd.f32 1.0, %v5281_v21 }
 0xe6b   :  { %v7323_v28 = vadd.f32 %v3675_v3, %v3673_v14  ;;  %v3676_v18 = vmul.f32 %v5283_v13, %v5277_v52 }
 0xe6c   :  { %v5285_v60 = vpop.eup %5284 }
 0xe6d   :  { %v3674_v61 = vmul.f32 %v5285_v60, %v7268_v24  ;;  %5288 = vtanh.f32 %v7323_v28 }
 0xe6e   :  { %5290 = vrcp.f32 %v3686_v62  ;;  %v5287_v56 = vpop.eup %5286 }
 0xe6f   :  { %v7327_v22 = vadd.f32 %v3676_v18, %v3674_v61 }
 0xe71   :  { %5292 = vtanh.f32 %v7327_v22 }
 0xe7a   :  { %v5289_v7 = vpop.eup %5288 }
 0xe7b   :  { %v5291_v26 = vpop.eup %5290  ;;  %v3693_v17 = vmul.f32 %v5289_v7, %v5287_v56 }
 0xe7e   :  { %v5293_v19 = vpop.eup %5292 }
 0xe7f   :  { %v3694_v15 = vmul.f32 %v5293_v19, %v5291_v26 }
 0xe81   :  { %v3703_v43 = vpack.c.bf16 %v3694_v15, %v3693_v17 }
 0xe83   :  { %3737 = vmatmul.mubr.bf16.vlgmr.msra.gmra.mxu0 %v3703_v43  ;;  %3780 = vmatmul.mubr.bf16.vlgmr.msra.gmra.mxu1 %v3703_v43 }
 0xe84   :  { %3856 = vmatpush1.bf16.msra.mxu0 %v7092_v40  ;;  %3899 = vmatpush1.bf16.msra.mxu1 %v7095_v46  ;;  %v7693_v40 = vld [vmem:[#allocation59_spill] sm:$0xff] }
 0xe85   :  { %3857 = vmatprep.subr.bf16.mxu0 %v7098_v47  ;;  %3900 = vmatprep.subr.bf16.mxu1 %v7101_v2  ;;  %v2398_v46 = vadd.f32 %v7693_v40, %v6932_v34  ;;  %v7694_v2 = vld [vmem:[#allocation61_spill] sm:$0xff] }
 0xe86   :  { %3887 = vmatprep.mubr.bf16.mxu0 %v7551_v55  ;;  %3930 = vmatprep.mubr.bf16.mxu1 %v7551_v55  ;;  %v7365_v55 = vld [vmem:[%s7487_s8] sm:$0x1f] }
 0xe88   :  { %3858 = vmatpush1.bf16.msra.mxu0 %v7106_v6  ;;  %3901 = vmatpush1.bf16.msra.mxu1 %v7109_v5  ;;  %v2400_v6 = vadd.f32 %v7694_v2, %v6940_v59 }
 0xe89   :  { %3859 = vmatprep.subr.bf16.mxu0 %v7112_v1  ;;  %3902 = vmatprep.subr.bf16.mxu1 %v7115_v49 }
 0xe8c   :  { %3860 = vmatpush1.bf16.msra.mxu0 %v7118_v42  ;;  %3903 = vmatpush1.bf16.msra.mxu1 %v7121_v50  ;;  %v7695_v42 = vld [vmem:[#allocation25_spill] sm:$0xff] }
 0xe8d   :  { %3861 = vmatprep.subr.bf16.mxu0 %v7124_v23  ;;  %3904 = vmatprep.subr.bf16.mxu1 %v7127_v4  ;;  %v2402_v50 = vadd.f32 %v7695_v42, %v6932_v34 }
 0xe90   :  { %3862 = vmatpush1.bf16.msra.mxu0 %v7130_v16  ;;  %3905 = vmatpush1.bf16.msra.mxu1 %v7133_v31  ;;  %v7696_v31 = vld [vmem:[#allocation26_spill] sm:$0xff] }
 0xe91   :  { %3863 = vmatprep.subr.bf16.mxu0 %v7136_v32  ;;  %3906 = vmatprep.subr.bf16.mxu1 %v7139_v35  ;;  %v2404_v32 = vadd.f32 %v7696_v31, %v6940_v59  ;;  %v4115_v31 = vld [vmem:[%s7489_s10 + $0x70] sm:$0xff] }
 0xe94   :  { %3864 = vmatpush1.bf16.msra.mxu0 %v7142_v39  ;;  %3907 = vmatpush1.bf16.msra.mxu1 %v7145_v10 }
 0xe95   :  { %3865 = vmatprep.subr.bf16.mxu0 %v7148_v41  ;;  %3908 = vmatprep.subr.bf16.mxu1 %v7151_v44 }
 0xe98   :  { %3866 = vmatpush1.bf16.msra.mxu0 %v7154_v48  ;;  %3909 = vmatpush1.bf16.msra.mxu1 %v7157_v63 }
 0xe99   :  { %3867 = vmatprep.subr.bf16.mxu0 %v7160_v27  ;;  %3910 = vmatprep.subr.bf16.mxu1 %v7163_v29  ;;  %v7697_v29 = vld [vmem:[#allocation24_spill] sm:$0xff] }
 0xe9c   :  { %3868 = vmatpush1.bf16.msra.mxu0 %v7166_v12  ;;  %3911 = vmatpush1.bf16.msra.mxu1 %v7169_v37  ;;  %v2513_v12 = vadd.f32 %v7697_v29, %v6956_v30  ;;  %v4106_v29 = vld [vmem:[%s7489_s10 + $0x28] sm:$0xff] }
 0xe9d   :  { %3869 = vmatprep.subr.bf16.mxu0 %v7172_v11  ;;  %3912 = vmatprep.subr.bf16.mxu1 %v7175_v25  ;;  %v7698_v11 = vld [vmem:[#allocation62_spill] sm:$0xff] }
 0xe9e   :  { %v2511_v25 = vadd.f32 %v7698_v11, %v6960_v33  ;;  %v4103_v11 = vld [vmem:[%s7489_s10 + $0x10] sm:$0xff] }
 0xea0   :  { %3870 = vmatpush1.bf16.msra.mxu0 %v7178_v8  ;;  %3913 = vmatpush1.bf16.msra.mxu1 %v7181_v51  ;;  %v7699_v51 = vld [vmem:[#allocation64_spill] sm:$0xff] }
 0xea1   :  { %4630 = vmatprep.subr.msk.mxu0 %vm210_vm0, %v7365_v55  ;;  %v2517_v24 = vadd.f32 %v7699_v51, %v6956_v30  ;;  %v7701_v51 = vld [vmem:[#allocation63_spill] sm:$0xff] }
 0xf43   :  { %v3738_v47 = vpop.f32.mrf.mxu0  ;;  %v3781_v1 = vpop.f32.mrf.mxu1 }
 0xf44   :  { %v3790_v5 = vadd.f32 %v3738_v47, %v2398_v46  ;;  %v3792_v38 = vadd.f32 %v3781_v1, %v2511_v25  ;;  %v4102_v25 = vld [vmem:[%s7489_s10 + $0x8] sm:$0xff] }
 0xf45   :  { %v3740_v49 = vpop.f32.mrf.mxu0  ;;  %v3783_v39 = vpop.f32.mrf.mxu1 }
 0xf46   :  { %v4530_v23 = vmul.f32 -1.442695, %v3790_v5  ;;  %v3791_v4 = vadd.f32 %v3740_v49, %v2400_v6  ;;  %v3793_v37 = vadd.f32 %v3783_v39, %v2513_v12  ;;  %v4111_v39 = vld [vmem:[%s7489_s10 + $0x50] sm:$0xff]  ;;  %v4105_v12 = vld [vmem:[%s7489_s10 + $0x20] sm:$0xff] }
 0xf47   :  { %v3742_v16 = vpop.f32.mrf.mxu0  ;;  %v3785_v63 = vpop.f32.mrf.mxu1 }
 0xf48   :  { %5294 = vpow2.f32 %v4530_v23  ;;  %v4532_v35 = vmul.f32 -1.442695, %v3791_v4  ;;  %v3794_v10 = vadd.f32 %v3742_v16, %v2402_v50  ;;  %v4534_v20 = vmul.f32 -1.442695, %v3793_v37  ;;  %v4006_v4 = vld [vmem:[%s7486_s7] sm:$0xff]  ;;  %v4116_v16 = vld [vmem:[%s7489_s10 + $0x78] sm:$0xff] }
 0xf49   :  { %v3744_v41 = vpop.f32.mrf.mxu0  ;;  %v3787_v8 = vpop.f32.mrf.mxu1  ;;  %v3796_v45 = vadd.f32 %v3785_v63, %v2515_v9  ;;  %v4118_v63 = vld [vmem:[%s7490_s11 + $0x8] sm:$0xff]  ;;  %v4104_v37 = vld [vmem:[%s7489_s10 + $0x18] sm:$0xff]  ;;  %v2410_v9 = vadd.f32 %v7702_v0, %v6940_v59 }
 0xf4a   :  { %5296 = vpow2.f32 %v4532_v35  ;;  %v4531_v44 = vmul.f32 -1.442695, %v3794_v10  ;;  %v3795_v48 = vadd.f32 %v3744_v41, %v2404_v32  ;;  %v3797_v57 = vadd.f32 %v3787_v8, %v2517_v24  ;;  %v4113_v32 = vld [vmem:[%s7489_s10 + $0x60] sm:$0xff]  ;;  %v4112_v35 = vld [vmem:[%s7489_s10 + $0x58] sm:$0xff]  ;;  %v4110_v10 = vld [vmem:[%s7489_s10 + $0x48] sm:$0xff]  ;;  %4635 = vmatprep.subr.mxu1 %v4118_v63 }
 0xf4b   :  { %v4109_v41 = vld [vmem:[%s7489_s10 + $0x40] sm:$0xff]  ;;  %v2408_v24 = vadd.f32 %v7701_v51, %v6932_v34 }
 0xf4c   :  { %5298 = vpow2.f32 %v4531_v44  ;;  %v4533_v27 = vmul.f32 -1.442695, %v3795_v48  ;;  %v4535_v3 = vmul.f32 -1.442695, %v3797_v57  ;;  %v4108_v44 = vld [vmem:[%s7489_s10 + $0x38] sm:$0xff]  ;;  %v4107_v48 = vld [vmem:[%s7489_s10 + $0x30] sm:$0xff] }
 0xf4d   :  { %v4101_v8 = vld [vmem:[%s7489_s10] sm:$0xff] }
 0xf4e   :  { %5300 = vpow2.f32 %v4533_v27  ;;  %v4117_v27 = vld [vmem:[%s7490_s11] sm:$0xff] }
 0xf4f   :  { %5302 = vtanh.f32 %v3792_v38 }
 0xf50   :  { %5304 = vpow2.f32 %v4534_v20 }
 0xf55   :  { %v5295_v36 = vpop.eup %5294 }
 0xf56   :  { %v3804_v54 = vadd.f32 1.0, %v5295_v36 }
 0xf57   :  { %v5297_v52 = vpop.eup %5296 }
 0xf58   :  { %5306 = vrcp.f32 %v3804_v54  ;;  %v3816_v53 = vadd.f32 1.0, %v5297_v52 }
 0xf59   :  { %v5299_v21 = vpop.eup %5298  ;;  %5308 = vtanh.f32 %v3796_v45  ;;  %v7703_v45 = vld [vmem:[#allocation19_spill] sm:$0xff] }
 0xf5a   :  { %5310 = vrcp.f32 %v3816_v53  ;;  %v3805_v14 = vadd.f32 1.0, %v5299_v21  ;;  %v2412_v54 = vadd.f32 %v7703_v45, %v6932_v34  ;;  %v7704_v21 = vld [vmem:[#allocation69_spill] sm:$0xff]  ;;  %v7705_v34 = vld [vmem:[#allocation67_spill] sm:$0xff] }
 0xf5b   :  { %v5301_v13 = vpop.eup %5300  ;;  %5312 = vpow2.f32 %v4535_v3 }
 0xf5c   :  { %5314 = vrcp.f32 %v3805_v14  ;;  %v3817_v58 = vadd.f32 1.0, %v5301_v13  ;;  %v5303_v18 = vpop.eup %5302  ;;  %v2414_v14 = vadd.f32 %v7704_v21, %v6940_v59 }
 0xf5d   :  { %v5305_v60 = vpop.eup %5304 }
 0xf5e   :  { %5316 = vrcp.f32 %v3817_v58  ;;  %v3836_v15 = vadd.f32 1.0, %v5305_v60 }
 0xf60   :  { %5318 = vrcp.f32 %v3836_v15 }
 0xf65   :  { %v5307_v62 = vpop.eup %5306 }
 0xf66   :  { %v5309_v61 = vpop.eup %5308  ;;  %v3826_v56 = vmul.f32 %v5307_v62, %v5303_v18 }
 0xf67   :  { %v5311_v7 = vpop.eup %5310 }
 0xf68   :  { %v5313_v26 = vpop.eup %5312  ;;  %v3824_v19 = vmul.f32 %v5311_v7, %v7323_v28 }
 0xf69   :  { %v5315_v17 = vpop.eup %5314  ;;  %v3837_v47 = vadd.f32 1.0, %v5313_v26 }
 0xf6a   :  { %v7386_v43 = vadd.f32 %v3826_v56, %v3824_v19  ;;  %v3827_v40 = vmul.f32 %v5315_v17, %v5309_v61  ;;  %v4542_v56 = vld [vmem:[#allocation13] ss:$0 sm:$0xff]  ;;  %v2523_v17 = vadd.f32 %v7705_v34, %v6956_v30 }
 0xf6b   :  { %v5317_v46 = vpop.eup %5316 }
 0xf6c   :  { %v3825_v2 = vmul.f32 %v5317_v46, %v7327_v22  ;;  %5320 = vtanh.f32 %v7386_v43  ;;  %v4007_v22 = vld [vmem:[%s7486_s7 + $0x8] sm:$0xff] }
 0xf6d   :  { %5322 = vrcp.f32 %v3837_v47  ;;  %v5319_v5 = vpop.eup %5318  ;;  %v7706_v47 = vld [vmem:[#allocation66_spill] sm:$0xff] }
 0xf6e   :  { %v7390_v6 = vadd.f32 %v3827_v40, %v3825_v2  ;;  %v2521_v2 = vadd.f32 %v7706_v47, %v6960_v33 }
 0xf70   :  { %5324 = vtanh.f32 %v7390_v6 }
 0xf79   :  { %v5321_v1 = vpop.eup %5320 }
 0xf7a   :  { %v5323_v28 = vpop.eup %5322  ;;  %v3844_v42 = vmul.f32 %v5321_v1, %v5319_v5  ;;  %v7707_v1 = vld [vmem:[#allocation70_spill] sm:$0xff] }
 0xf7d   :  { %v5325_v49 = vpop.eup %5324 }
 0xf7e   :  { %v3845_v50 = vmul.f32 %v5325_v49, %v5323_v28  ;;  %v2527_v28 = vadd.f32 %v7707_v1, %v6956_v30 }
 0xf80   :  { %v3854_v23 = vpack.c.bf16 %v3845_v50, %v3844_v42  ;;  %v7708_v42 = vld [vmem:[#allocation68_spill] sm:$0xff] }
 0xf81   :  { %v2525_v50 = vadd.f32 %v7708_v42, %v6960_v33 }
 0xf82   :  { %3888 = vmatmul.mubr.bf16.vlgmr.msra.gmra.mxu0 %v3854_v23  ;;  %3931 = vmatmul.mubr.bf16.vlgmr.msra.gmra.mxu1 %v3854_v23 }
 0xf83   :  { %4631 = vmatpush3.msk.msra.mxu0 %vm210_vm0, %v7365_v55  ;;  %4632 = vmatprep.mubr.msk.f32.mxu0 %vm4016_vm2, %v4006_v4  ;;  %v4114_v55 = vld [vmem:[%s7489_s10 + $0x68] sm:$0xff] }
 0xf84   :  { %4642 = vmatprep.subr.mxu0 %v4116_v16  ;;  %4636 = vmatpush3.msra.mxu1 %v4118_v63 }
 0xf85   :  { %4637 = vmatprep.subr.mxu1 %v4117_v27 }
 0xf86   :  { %4638 = vmatpush3.msra.mxu1 %v4117_v27 }
 0xf8a   :  { %4633 = vmatmul.mubr.msk.f32.vlgmr.msra.gmra.mxu0 %vm4016_vm2, %v4007_v22 }
 0xf8b   :  { %4643 = vmatpush3.msra.mxu0 %v4116_v16 }
 0xf8c   :  { %4644 = vmatprep.subr.mxu0 %v4115_v31 }
 0xf8d   :  { %4645 = vmatpush3.msra.mxu0 %v4115_v31 }
 0xf8e   :  { %4646 = vmatprep.subr.mxu0 %v4114_v55 }
 0xf8f   :  { %4647 = vmatpush3.msra.mxu0 %v4114_v55 }
 0xf90   :  { %4648 = vmatprep.subr.mxu0 %v4113_v32 }
 0xf91   :  { %4649 = vmatpush3.msra.mxu0 %v4113_v32 }
 0xf92   :  { %4650 = vmatprep.subr.mxu0 %v4112_v35 }
 0xf93   :  { %4651 = vmatpush3.msra.mxu0 %v4112_v35 }
 0xf94   :  { %4652 = vmatprep.subr.mxu0 %v4111_v39 }
 0xf95   :  { %4653 = vmatpush3.msra.mxu0 %v4111_v39 }
 0xf96   :  { %4654 = vmatprep.subr.mxu0 %v4110_v10 }
 0xf97   :  { %4655 = vmatpush3.msra.mxu0 %v4110_v10 }
 0xf98   :  { %4656 = vmatprep.subr.mxu0 %v4109_v41 }
 0xf99   :  { %4657 = vmatpush3.msra.mxu0 %v4109_v41 }
 0xf9a   :  { %4658 = vmatprep.subr.mxu0 %v4108_v44 }
 0xf9b   :  { %4659 = vmatpush3.msra.mxu0 %v4108_v44 }
 0xf9c   :  { %4660 = vmatprep.subr.mxu0 %v4107_v48 }
 0xf9d   :  { %4661 = vmatpush3.msra.mxu0 %v4107_v48 }
 0xf9e   :  { %4662 = vmatprep.subr.mxu0 %v4106_v29 }
 0xf9f   :  { %4663 = vmatpush3.msra.mxu0 %v4106_v29 }
 0xfa0   :  { %4664 = vmatprep.subr.mxu0 %v4105_v12 }
 0xfa1   :  { %4665 = vmatpush3.msra.mxu0 %v4105_v12 }
 0xfa2   :  { %4666 = vmatprep.subr.mxu0 %v4104_v37 }
 0xfa3   :  { %4667 = vmatpush3.msra.mxu0 %v4104_v37 }
 0xfa4   :  { %4668 = vmatprep.subr.mxu0 %v4103_v11 }
 0xfa5   :  { %4669 = vmatpush3.msra.mxu0 %v4103_v11 }
 0xfa6   :  { %4670 = vmatprep.subr.mxu0 %v4102_v25 }
 0xfa7   :  { %4671 = vmatpush3.msra.mxu0 %v4102_v25 }
 0xfa8   :  { %4672 = vmatprep.subr.mxu0 %v4101_v8 }
 0xfa9   :  { %4673 = vmatpush3.msra.mxu0 %v4101_v8 }
0x1042   :  { %v3889_v38 = vpop.f32.mrf.mxu0  ;;  %v3932_v57 = vpop.f32.mrf.mxu1 }
0x1043   :  { %v3941_v20 = vadd.f32 %v3889_v38, %v2408_v24  ;;  %v3943_v49 = vadd.f32 %v3932_v57, %v2521_v2 }
0x1044   :  { %v3891_v36 = vpop.f32.mrf.mxu0  ;;  %v3934_v58 = vpop.f32.mrf.mxu1 }
0x1045   :  { %v4536_v52 = vmul.f32 -1.442695, %v3941_v20  ;;  %v3942_v3 = vadd.f32 %v3891_v36, %v2410_v9  ;;  %v3944_v46 = vadd.f32 %v3934_v58, %v2523_v17 }
0x1046   :  { %v3893_v53 = vpop.f32.mrf.mxu0  ;;  %v3936_v26 = vpop.f32.mrf.mxu1 }
0x1047   :  { %5326 = vpow2.f32 %v4536_v52  ;;  %v4538_v13 = vmul.f32 -1.442695, %v3942_v3  ;;  %v3945_v18 = vadd.f32 %v3893_v53, %v2412_v54  ;;  %v4540_v23 = vmul.f32 -1.442695, %v3944_v46  ;;  %v4548_v53 = vld [vmem:[#allocation15] ss:$0 sm:$0xff] }
0x1048   :  { %v3895_v60 = vpop.f32.mrf.mxu0  ;;  %v3938_v5 = vpop.f32.mrf.mxu1  ;;  %v3947_v16 = vadd.f32 %v3936_v26, %v2525_v50 }
0x1049   :  { %5328 = vpow2.f32 %v4538_v13  ;;  %v4537_v62 = vmul.f32 -1.442695, %v3945_v18  ;;  %v3946_v61 = vadd.f32 %v3895_v60, %v2414_v14  ;;  %v3948_v4 = vadd.f32 %v3938_v5, %v2527_v28 }
0x104a   :  { %v4634_v7 = vpop.f32.mrf.mxu0 }
0x104b   :  { %5330 = vpow2.f32 %v4537_v62  ;;  %v4539_v19 = vmul.f32 -1.442695, %v3946_v61  ;;  %v4098_v15 = vadd.f32 %v4634_v7, %v4542_v56  ;;  %v4541_v32 = vmul.f32 -1.442695, %v3948_v4 }
0x104c   :  { %v4092_v40 = vpop.f32.mrf.mxu0 }
0x104d   :  { %5332 = vpow2.f32 %v4539_v19  ;;  %v4093_v59 = vadd.f32 %v4542_v56, %v4092_v40 }
0x104e   :  { %5334 = vtanh.f32 %v3943_v49 }
0x104f   :  { %4639 = vmatprep.mubr.msk.f32.mxu1 %vm4119_vm3, %v4093_v59  ;;  %5336 = vpow2.f32 %v4540_v23 }
0x1050   :  { %4640 = vmatmul.mubr.msk.f32.vlgmr.msra.gmra.mxu1 %vm4119_vm3, %v4098_v15 }
0x1054   :  { %v5327_v22 = vpop.eup %5326 }
0x1055   :  { %v3955_v31 = vadd.f32 1.0, %v5327_v22 }
0x1056   :  { %v5329_v55 = vpop.eup %5328 }
0x1057   :  { %5338 = vrcp.f32 %v3955_v31  ;;  %v3967_v35 = vadd.f32 1.0, %v5329_v55 }
0x1058   :  { %v5331_v39 = vpop.eup %5330  ;;  %5340 = vtanh.f32 %v3947_v16 }
0x1059   :  { %5342 = vrcp.f32 %v3967_v35  ;;  %v3956_v30 = vadd.f32 1.0, %v5331_v39 }
0x105a   :  { %v5333_v10 = vpop.eup %5332  ;;  %5344 = vpow2.f32 %v4541_v32 }
0x105b   :  { %5346 = vrcp.f32 %v3956_v30  ;;  %v3968_v41 = vadd.f32 1.0, %v5333_v10  ;;  %v5335_v33 = vpop.eup %5334 }
0x105c   :  { %v5337_v44 = vpop.eup %5336 }
0x105d   :  { %5348 = vrcp.f32 %v3968_v41  ;;  %v3987_v12 = vadd.f32 1.0, %v5337_v44 }
0x105f   :  { %5350 = vrcp.f32 %v3987_v12 }
0x1064   :  { %v5339_v48 = vpop.eup %5338 }
0x1065   :  { %v5341_v63 = vpop.eup %5340  ;;  %v3977_v27 = vmul.f32 %v5339_v48, %v5335_v33 }
0x1066   :  { %v5343_v29 = vpop.eup %5342 }
0x1067   :  { %v5345_v37 = vpop.eup %5344  ;;  %v3975_v11 = vmul.f32 %v5343_v29, %v7386_v43 }
0x1068   :  { %v5347_v25 = vpop.eup %5346  ;;  %v3988_v38 = vadd.f32 1.0, %v5345_v37 }
0x1069   :  { %v3978_v8 = vmul.f32 %v5347_v25, %v5341_v63  ;;  %v3979_v51 = vadd.f32 %v3977_v27, %v3975_v11 }
0x106a   :  { %v5349_v24 = vpop.eup %5348 }
0x106b   :  { %v3976_v0 = vmul.f32 %v5349_v24, %v7390_v6  ;;  %5352 = vtanh.f32 %v3979_v51 }
0x106c   :  { %5354 = vrcp.f32 %v3988_v38  ;;  %v5351_v20 = vpop.eup %5350 }
0x106d   :  { %v3980_v9 = vadd.f32 %v3978_v8, %v3976_v0 }
0x106f   :  { %5356 = vtanh.f32 %v3980_v9 }
0x1078   :  { %v5353_v57 = vpop.eup %5352 }
0x1079   :  { %v3995_v36 = vmul.f32 %v5353_v57, %v5351_v20  ;;  %v5355_v45 = vpop.eup %5354 }
0x107b   :  { %4674 = vmatprep.mubr.f32.mxu0 %v3995_v36 }
0x107c   :  { %v5357_v54 = vpop.eup %5356 }
0x107d   :  { %v3996_v52 = vmul.f32 %v5357_v54, %v5355_v45 }
0x107f   :  { %4675 = vmatmul.mubr.f32.vlgmr.msra.gmra.mxu0 %v3996_v52 }
0x1110   :  { %v4641_v43 = vpop.f32.mrf.mxu1 }
0x1112   :  { %v4192_v14 = vpop.f32.mrf.mxu1 }
0x113f   :  { %v4676_v3 = vpop.f32.mrf.mxu0 }
0x1140   :  { %v4273_v21 = vadd.f32 %v4676_v3, %v4641_v43 }
0x1141   :  { %v4267_v13 = vpop.f32.mrf.mxu0 }
0x1142   :  { %v4284_v58 = vadd.f32 %v4548_v53, %v4273_v21  ;;  %v4268_v6 = vadd.f32 %v4267_v13, %v4192_v14 }
0x1144   :  { %v4286_v18 = vmax.f32 %v4284_v58, 0.0  ;;  %v4283_v60 = vadd.f32 %v4548_v53, %v4268_v6 }
0x1146   :  { %4289 = vst.msk [vmem:[%s7492_s13 + $0x8] sm:$0xff] %vm4287_vm4, %v4286_v18  ;;  %v4285_v62 = vmax.f32 %v4283_v60, 0.0 }
0x1148   :  { %4288 = vst.msk [vmem:[%s7492_s13] sm:$0xff] %vm4287_vm4, %v4285_v62 }
0x1149   :  { %4294 = vsyncpa [#allocation9], 1 }
0x114a   :  { %4295 = vsyncpa [#allocation11], 1 }
0x114b   :  { %4296 = vsyncpa [#allocation14], 1 }

</bundles_post_ra>
